<compile_context>
chip_gen: v6e
topology: v6e:2x2x1
jax: 0.10.0
libtpu: 0.0.40
codegen_flags: <defaults>
</compile_context>

<pallas_src>
import functools
import math

import jax
import jax.numpy as jnp
from jax.experimental import pallas as pl
from jax.experimental.pallas import tpu as pltpu

INV_SQRT2 = 1.0 / math.sqrt(2.0)
BN_EPS = 1e-5
LANE = 128


def _round_up(v, m):
    return (v + m - 1) // m * m


def _row_tile(h, max_tile):
    t = min(h, max_tile)
    while h % t:
        t -= 1
    return t


# ------------------------------ kernel helpers ------------------------------

def _fill_slab(slab_ref, center, top, bot, th, w):
    """Assemble a (TH+2, W+2, C) zero-padded slab in VMEM.

    Interior is written once; only the four border strips get zeros (no
    full-buffer memset). Halo rows come from the neighbouring tiles and are
    masked to zero at the image top/bottom edges.
    """
    i = pl.program_id(1)
    gh = pl.num_programs(1)
    c = slab_ref.shape[-1]
    cdt = slab_ref.dtype
    zcol = jnp.zeros((th + 2, 1, c), cdt)
    slab_ref[:, 0:1, :] = zcol                                   # left halo col
    slab_ref[:, w + 1:w + 2, :] = zcol                           # right halo col
    slab_ref[1:th + 1, 1:w + 1, :] = center.astype(cdt)
    top = jnp.where(i == 0, jnp.zeros_like(top), top)            # image top edge
    slab_ref[0:1, 1:w + 1, :] = top.astype(cdt)[None]
    bot = jnp.where(i == gh - 1, jnp.zeros_like(bot), bot)       # image bottom edge
    slab_ref[th + 1:th + 2, 1:w + 1, :] = bot.astype(cdt)[None]


def _conv3x3_tile(slab_ref, w_ref, th, w):
    """3x3 'SAME' conv on one row tile as a single K=9*C MXU matmul (f32 acc)."""
    slab = slab_ref[...]
    c = slab.shape[-1]
    taps = [slab[ky:ky + th, kx:kx + w, :] for ky in range(3) for kx in range(3)]
    patches = jnp.concatenate(taps, axis=-1).reshape(th * w, 9 * c)
    return jnp.dot(patches, w_ref[...], preferred_element_type=jnp.float32)


# -------------------------------- pass kernels -------------------------------

def _pass1_kernel(xc_ref, xt_ref, xb_ref, w1_ref,
                  h1_ref, psum_ref, psq_ref, slab_ref):
    th, w, _ = xc_ref.shape
    _fill_slab(slab_ref, xc_ref[...], xt_ref[...], xb_ref[...], th, w)
    h = _conv3x3_tile(slab_ref, w1_ref, th, w)                   # (TH*W, Co) f32
    psum_ref[...] = jnp.sum(h, axis=0, keepdims=True)            # fused sum/sumsq
    psq_ref[...] = jnp.sum(h * h, axis=0, keepdims=True)
    h1_ref[...] = h.reshape(th, w, h1_ref.shape[-1])


def _pass2_kernel(hc_ref, ht_ref, hb_ref, aff1_ref, w2_ref, b2_ref,
                  h2_ref, psum_ref, psq_ref, slab_ref):
    th, w, _ = hc_ref.shape
    scale1 = aff1_ref[0:1, :]                                    # (1, Co) f32
    shift1 = aff1_ref[1:2, :]

    def act(v):                                                  # BN1 affine + ReLU
        return jnp.maximum(v * scale1 + shift1, 0.0)

    _fill_slab(slab_ref, act(hc_ref[...]), act(ht_ref[...]), act(hb_ref[...]), th, w)
    h = _conv3x3_tile(slab_ref, w2_ref, th, w) + b2_ref[...]
    psum_ref[...] = jnp.sum(h, axis=0, keepdims=True)
    psq_ref[...] = jnp.sum(h * h, axis=0, keepdims=True)
    h2_ref[...] = h.reshape(th, w, h2_ref.shape[-1])


def _pass3_kernel(h2_ref, x_ref, ws_ref, aff2_ref, out_ref):
    th, w, co = h2_ref.shape
    ci = x_ref.shape[-1]
    scale2 = aff2_ref[0:1, :]          # BN2 scale * 1/sqrt(2)
    shift2 = aff2_ref[1:2, :]          # BN2 shift * 1/sqrt(2)
    bsc = aff2_ref[2:3, :]             # nin bias * input_scale / sqrt(2)
    xs = x_ref[...].astype(ws_ref.dtype).reshape(th * w, ci)
    sc = jnp.dot(xs, ws_ref[...], preferred_element_type=jnp.float32)
    o = h2_ref[...].reshape(th * w, co) * scale2 + shift2 + sc + bsc
    out_ref[...] = jnp.maximum(o, 0.0).reshape(th, w, co).astype(out_ref.dtype)


# ---------------------------------- wrapper ----------------------------------

def _halo_specs(th, h, w, c):
    """Center tile + 1-row top/bottom halo BlockSpecs over an (N, H, W, C) array."""
    center = pl.BlockSpec((None, th, w, c), lambda n, i: (n, i, 0, 0))
    top = pl.BlockSpec((None, None, w, c),
                       lambda n, i: (n, jnp.maximum(i * th - 1, 0), 0, 0))
    bot = pl.BlockSpec((None, None, w, c),
                       lambda n, i: (n, jnp.minimum(i * th + th, h - 1), 0, 0))
    return center, top, bot


def _const_spec(shape):
    return pl.BlockSpec(shape, lambda n, i: (0,) * len(shape))


@functools.partial(jax.jit, static_argnames=("compute_dtype", "max_row_tile"))
def resnet_block_pallas_nhwc(x, params, *, compute_dtype=jnp.bfloat16, max_row_tile=8):
    """x: (N, H, W, Cin) float32 -> (N, H, W, Cout) float32. NHWC end-to-end."""
    n, h, w, cin = x.shape
    cout = params["w2"].shape[-1]
    ci = _round_up(cin, LANE)
    co = _round_up(cout, LANE)
    th = _row_tile(h, max_row_tile)
    gh = h // th
    grid = (n, gh)
    cparams = pltpu.CompilerParams(
        dimension_semantics=("parallel", "parallel"),
        vmem_limit_bytes=32 * 1024 * 1024)

    # ---- pad channels to lane-dense multiples of 128; flatten conv taps (K=9*C) ----
    xp = jnp.pad(x, ((0, 0), (0, 0), (0, 0), (0, ci - cin))) if ci != cin else x
    w1 = jnp.pad(params["w1"], ((0, 0), (0, 0), (0, ci - cin), (0, co - cout)))
    w1 = w1.reshape(9 * ci, co).astype(compute_dtype)            # tap-major rows
    w2 = jnp.pad(params["w2"], ((0, 0), (0, 0), (0, co - cout), (0, co - cout)))
    w2 = w2.reshape(9 * co, co).astype(compute_dtype)
    s = params["input_scale"] * INV_SQRT2                        # fold scale & 1/sqrt2
    ws = (jnp.pad(params["ws"], ((0, ci - cin), (0, co - cout))) * s
          ).astype(compute_dtype)
    b2c = jnp.pad(params["conv2_b"], (0, co - cout)).reshape(1, co)
    g1 = jnp.pad(params["bn1_g"], (0, co - cout))
    b1 = jnp.pad(params["bn1_b"], (0, co - cout))
    g2 = jnp.pad(params["bn2_g"], (0, co - cout))
    b2 = jnp.pad(params["bn2_b"], (0, co - cout))
    bsc = jnp.pad(params["nin_b"], (0, co - cout)) * s

    xc_spec, xt_spec, xb_spec = _halo_specs(th, h, w, ci)
    hc_spec, ht_spec, hb_spec = _halo_specs(th, h, w, co)
    tile_co = pl.BlockSpec((None, th, w, co), lambda nn, ii: (nn, ii, 0, 0))
    stat_spec = pl.BlockSpec((None, None, 1, co), lambda nn, ii: (nn, ii, 0, 0))
    stat_shape = jax.ShapeDtypeStruct((n, gh, 1, co), jnp.float32)

    # ---------------------- pass 1: conv1 + stat partials ----------------------
    h1, s1, q1 = pl.pallas_call(
        _pass1_kernel,
        out_shape=(jax.ShapeDtypeStruct((n, h, w, co), jnp.float32),
                   stat_shape, stat_shape),
        grid=grid,
        in_specs=[xc_spec, xt_spec, xb_spec, _const_spec((9 * ci, co))],
        out_specs=(tile_co, stat_spec, stat_spec),
        scratch_shapes=[pltpu.VMEM((th + 2, w + 2, ci), compute_dtype)],
        compiler_params=cparams,
    )(xp, xp, xp, w1)

    # per-channel BN1 folding (tiny, plain XLA). Biased variance, eps=1e-5.
    cnt = jnp.float32(n * h * w)
    mean1 = jnp.sum(s1, axis=(0, 1, 2)) / cnt
    var1 = jnp.maximum(jnp.sum(q1, axis=(0, 1, 2)) / cnt - mean1 * mean1, 0.0)
    a1 = g1 * jax.lax.rsqrt(var1 + BN_EPS)
    aff1 = jnp.stack([a1, b1 - mean1 * a1], axis=0)              # (2, Co) f32

    # ------------- pass 2: BN1 + ReLU + conv2(+bias) + stat partials -------------
    h2, s2, q2 = pl.pallas_call(
        _pass2_kernel,
        out_shape=(jax.ShapeDtypeStruct((n, h, w, co), jnp.float32),
                   stat_shape, stat_shape),
        grid=grid,
        in_specs=[hc_spec, ht_spec, hb_spec, _const_spec((2, co)),
                  _const_spec((9 * co, co)), _const_spec((1, co))],
        out_specs=(tile_co, stat_spec, stat_spec),
        scratch_shapes=[pltpu.VMEM((th + 2, w + 2, co), compute_dtype)],
        compiler_params=cparams,
    )(h1, h1, h1, aff1, w2, b2c)

    mean2 = jnp.sum(s2, axis=(0, 1, 2)) / cnt
    var2 = jnp.maximum(jnp.sum(q2, axis=(0, 1, 2)) / cnt - mean2 * mean2, 0.0)
    a2 = g2 * jax.lax.rsqrt(var2 + BN_EPS)
    aff2 = jnp.stack([a2 * INV_SQRT2, (b2 - mean2 * a2) * INV_SQRT2, bsc], axis=0)

    # ------ pass 3: BN2 affine + nin_shortcut(1x1) + residual merge + ReLU ------
    out = pl.pallas_call(
        _pass3_kernel,
        out_shape=jax.ShapeDtypeStruct((n, h, w, co), jnp.float32),
        grid=grid,
        in_specs=[tile_co,
                  pl.BlockSpec((None, th, w, ci), lambda nn, ii: (nn, ii, 0, 0)),
                  _const_spec((ci, co)), _const_spec((3, co))],
        out_specs=tile_co,
        compiler_params=cparams,
    )(h2, xp, ws, aff2)

    return out[..., :cout]


def resnet_block_pallas(x_nchw, params, *, compute_dtype=jnp.bfloat16, max_row_tile=8):
    """PyTorch-parity NCHW entry point; the Pallas block itself is NHWC end-to-end."""
    x = jnp.transpose(x_nchw, (0, 2, 3, 1))
    y = resnet_block_pallas_nhwc(x, params, compute_dtype=compute_dtype,
                                 max_row_tile=max_row_tile)
    return jnp.transpose(y, (0, 3, 1, 2))


# ------------------------- pure-JAX reference (check) ------------------------

def resnet_block_ref(x_nhwc, p):
    def conv3x3(x, w, bias=None):
        y = jax.lax.conv_general_dilated(
            x, w, (1, 1), "SAME", dimension_numbers=("NHWC", "HWIO", "NHWC"))
        return y if bias is None else y + bias

    def bn(h, g, b):
        mean = h.mean(axis=(0, 1, 2), keepdims=True)
        var = ((h - mean) ** 2).mean(axis=(0, 1, 2), keepdims=True)
        return (h - mean) * jax.lax.rsqrt(var + BN_EPS) * g + b

    h = conv3x3(x_nhwc, p["w1"])
    h = jnp.maximum(bn(h, p["bn1_g"], p["bn1_b"]), 0.0)
    h = conv3x3(h, p["w2"], p["conv2_b"])
    h = bn(h, p["bn2_g"], p["bn2_b"])
    sc = x_nhwc @ p["ws"] + p["nin_b"]
    return jnp.maximum((h + sc * p["input_scale"]) * INV_SQRT2, 0.0)


# ----------------------------------- main ------------------------------------

if __name__ == "__main__":
    N, Cin, Cout, H, W = 2, 4, 8, 16, 16            # Cin != Cout -> nin_shortcut path

    key = jax.random.PRNGKey(0)
    ks = jax.random.split(key, 10)
    params = {
        "w1": 0.2 * jax.random.normal(ks[0], (3, 3, Cin, Cout), jnp.float32),   # HWIO
        "bn1_g": 1.0 + 0.1 * jax.random.normal(ks[1], (Cout,), jnp.float32),
        "bn1_b": 0.1 * jax.random.normal(ks[2], (Cout,), jnp.float32),
        "w2": 0.2 * jax.random.normal(ks[3], (3, 3, Cout, Cout), jnp.float32),
        "conv2_b": 0.1 * jax.random.normal(ks[4], (Cout,), jnp.float32),
        "bn2_g": 1.0 + 0.1 * jax.random.normal(ks[5], (Cout,), jnp.float32),
        "bn2_b": 0.1 * jax.random.normal(ks[6], (Cout,), jnp.float32),
        "ws": 0.2 * jax.random.normal(ks[7], (Cin, Cout), jnp.float32),
        "nin_b": 0.1 * jax.random.normal(ks[8], (Cout,), jnp.float32),
        "input_scale": jnp.float32(1.0),            # nn.Parameter(torch.ones([]))
    }
    x_nchw = jax.random.normal(ks[9], (N, Cin, H, W), jnp.float32)

    x_nhwc = jnp.transpose(x_nchw, (0, 2, 3, 1))
    ref = jnp.transpose(resnet_block_ref(x_nhwc, params), (0, 3, 1, 2))

    # f32 compute path: algorithmic exactness vs the lax.conv reference.
    out_f32 = jax.block_until_ready(
        resnet_block_pallas(x_nchw, params, compute_dtype=jnp.float32))
    assert out_f32.shape == (N, Cout, H, W) and out_f32.dtype == jnp.float32
    err32 = float(jnp.max(jnp.abs(out_f32 - ref)))
    assert err32 < 2e-3, f"f32 max abs error {err32}"

    # default path: bf16 matmul inputs (MXU-native), f32 accumulation/stats/merge.
    out_bf16 = jax.block_until_ready(resnet_block_pallas(x_nchw, params))
    err16 = float(jnp.max(jnp.abs(out_bf16 - ref)))
    assert err16 < 5e-2, f"bf16 max abs error {err16}"

    print("KERNEL_OK")
</pallas_src>

<mosaic_0001>
module attributes {stable_mosaic.version = 11 : i64} {
  func.func @_pass1_kernel(%arg0: i32, %arg1: i32, %arg2: memref<1x8x16x128xf32, #tpu.memory_space<vmem>>, %arg3: memref<1x1x16x128xf32, #tpu.memory_space<vmem>>, %arg4: memref<1x1x16x128xf32, #tpu.memory_space<vmem>>, %arg5: memref<1152x128xf32, #tpu.memory_space<vmem>>, %arg6: memref<1x8x16x128xf32, #tpu.memory_space<vmem>>, %arg7: memref<1x1x1x128xf32, #tpu.memory_space<vmem>>, %arg8: memref<1x1x1x128xf32, #tpu.memory_space<vmem>>, %arg9: memref<10x18x128xf32, #tpu.memory_space<vmem>>) attributes {dimension_semantics = [#tpu.dimension_semantics<parallel>, #tpu.dimension_semantics<parallel>], iteration_bounds = array<i64: 2, 2>, scalar_prefetch = 0 : i64, scratch_operands = 1 : i64, tpu.core_type = #tpu.core_type<tc>, window_params = [{transform_indices = @transform_0, window_bounds = array<i64: 1, 8, 16, 128>}, {transform_indices = @transform_1, window_bounds = array<i64: 1, 1, 16, 128>}, {transform_indices = @transform_2, window_bounds = array<i64: 1, 1, 16, 128>}, {pipeline_mode = #tpu.pipeline_mode<synchronous>, transform_indices = @transform_3, window_bounds = array<i64: 1152, 128>}, {transform_indices = @transform_4, window_bounds = array<i64: 1, 8, 16, 128>}, {transform_indices = @transform_5, window_bounds = array<i64: 1, 1, 1, 128>}, {transform_indices = @transform_6, window_bounds = array<i64: 1, 1, 1, 128>}]} {
    %c0 = arith.constant 0 : index
    %c0_0 = arith.constant 0 : index
    %c0_1 = arith.constant 0 : index
    %c0_2 = arith.constant 0 : index
    %0 = vector.load %arg2[%c0, %c0_0, %c0_1, %c0_2] : memref<1x8x16x128xf32, #tpu.memory_space<vmem>>, vector<1x8x16x128xf32>
    %1 = vector.shape_cast %0 : vector<1x8x16x128xf32> to vector<8x16x128xf32>
    %c0_3 = arith.constant 0 : index
    %c0_4 = arith.constant 0 : index
    %c0_5 = arith.constant 0 : index
    %c0_6 = arith.constant 0 : index
    %2 = vector.load %arg3[%c0_3, %c0_4, %c0_5, %c0_6] : memref<1x1x16x128xf32, #tpu.memory_space<vmem>>, vector<1x1x16x128xf32>
    %3 = vector.shape_cast %2 : vector<1x1x16x128xf32> to vector<16x128xf32>
    %c0_7 = arith.constant 0 : index
    %c0_8 = arith.constant 0 : index
    %c0_9 = arith.constant 0 : index
    %c0_10 = arith.constant 0 : index
    %4 = vector.load %arg4[%c0_7, %c0_8, %c0_9, %c0_10] : memref<1x1x16x128xf32, #tpu.memory_space<vmem>>, vector<1x1x16x128xf32>
    %5 = vector.shape_cast %4 : vector<1x1x16x128xf32> to vector<16x128xf32>
    %cst = arith.constant 0.000000e+00 : f32
    %6 = vector.broadcast %cst : f32 to vector<10x1x128xf32>
    %c0_11 = arith.constant 0 : index
    %c0_12 = arith.constant 0 : index
    %c0_13 = arith.constant 0 : index
    %7 = vector.load %arg9[%c0_11, %c0_12, %c0_13] : memref<10x18x128xf32, #tpu.memory_space<vmem>>, vector<10x1x128xf32>
    tpu.vector_store %arg9[%c0_11, %c0_12, %c0_13], %6 {strides = array<i32>} : memref<10x18x128xf32, #tpu.memory_space<vmem>>, vector<10x1x128xf32>,
    %c0_14 = arith.constant 0 : index
    %c17 = arith.constant 17 : index
    %c0_15 = arith.constant 0 : index
    %8 = vector.load %arg9[%c0_14, %c17, %c0_15] : memref<10x18x128xf32, #tpu.memory_space<vmem>>, vector<10x1x128xf32>
    tpu.vector_store %arg9[%c0_14, %c17, %c0_15], %6 {strides = array<i32>} : memref<10x18x128xf32, #tpu.memory_space<vmem>>, vector<10x1x128xf32>,
    %c1 = arith.constant 1 : index
    %c1_16 = arith.constant 1 : index
    %c0_17 = arith.constant 0 : index
    %9 = vector.load %arg9[%c1, %c1_16, %c0_17] : memref<10x18x128xf32, #tpu.memory_space<vmem>>, vector<8x16x128xf32>
    tpu.vector_store %arg9[%c1, %c1_16, %c0_17], %1 {strides = array<i32>} : memref<10x18x128xf32, #tpu.memory_space<vmem>>, vector<8x16x128xf32>,
    %c0_i32 = arith.constant 0 : i32
    %10 = arith.cmpi eq, %arg1, %c0_i32 : i32
    %cst_18 = arith.constant 0.000000e+00 : f32
    %11 = vector.broadcast %cst_18 : f32 to vector<16x128xf32>
    %12 = arith.select %10, %11, %3 : vector<16x128xf32>
    %13 = vector.shape_cast %12 : vector<16x128xf32> to vector<1x16x128xf32>
    %c0_19 = arith.constant 0 : index
    %c1_20 = arith.constant 1 : index
    %c0_21 = arith.constant 0 : index
    %14 = vector.load %arg9[%c0_19, %c1_20, %c0_21] : memref<10x18x128xf32, #tpu.memory_space<vmem>>, vector<1x16x128xf32>
    tpu.vector_store %arg9[%c0_19, %c1_20, %c0_21], %13 {strides = array<i32>} : memref<10x18x128xf32, #tpu.memory_space<vmem>>, vector<1x16x128xf32>,
    %c1_i32 = arith.constant 1 : i32
    %15 = arith.cmpi eq, %arg1, %c1_i32 : i32
    %cst_22 = arith.constant 0.000000e+00 : f32
    %16 = vector.broadcast %cst_22 : f32 to vector<16x128xf32>
    %17 = arith.select %15, %16, %5 : vector<16x128xf32>
    %18 = vector.shape_cast %17 : vector<16x128xf32> to vector<1x16x128xf32>
    %c9 = arith.constant 9 : index
    %c1_23 = arith.constant 1 : index
    %c0_24 = arith.constant 0 : index
    %19 = vector.load %arg9[%c9, %c1_23, %c0_24] : memref<10x18x128xf32, #tpu.memory_space<vmem>>, vector<1x16x128xf32>
    tpu.vector_store %arg9[%c9, %c1_23, %c0_24], %18 {strides = array<i32>} : memref<10x18x128xf32, #tpu.memory_space<vmem>>, vector<1x16x128xf32>,
    %c0_25 = arith.constant 0 : index
    %c0_26 = arith.constant 0 : index
    %c0_27 = arith.constant 0 : index
    %20 = vector.load %arg9[%c0_25, %c0_26, %c0_27] : memref<10x18x128xf32, #tpu.memory_space<vmem>>, vector<10x18x128xf32>
    %21 = vector.extract_strided_slice %20 {offsets = [0, 0, 0], sizes = [8, 16, 128], strides = [1, 1, 1]} : vector<10x18x128xf32> to vector<8x16x128xf32>
    %22 = vector.extract_strided_slice %20 {offsets = [0, 1, 0], sizes = [8, 16, 128], strides = [1, 1, 1]} : vector<10x18x128xf32> to vector<8x16x128xf32>
    %23 = vector.extract_strided_slice %20 {offsets = [0, 2, 0], sizes = [8, 16, 128], strides = [1, 1, 1]} : vector<10x18x128xf32> to vector<8x16x128xf32>
    %24 = vector.extract_strided_slice %20 {offsets = [1, 0, 0], sizes = [8, 16, 128], strides = [1, 1, 1]} : vector<10x18x128xf32> to vector<8x16x128xf32>
    %25 = vector.extract_strided_slice %20 {offsets = [1, 1, 0], sizes = [8, 16, 128], strides = [1, 1, 1]} : vector<10x18x128xf32> to vector<8x16x128xf32>
    %26 = vector.extract_strided_slice %20 {offsets = [1, 2, 0], sizes = [8, 16, 128], strides = [1, 1, 1]} : vector<10x18x128xf32> to vector<8x16x128xf32>
    %27 = vector.extract_strided_slice %20 {offsets = [2, 0, 0], sizes = [8, 16, 128], strides = [1, 1, 1]} : vector<10x18x128xf32> to vector<8x16x128xf32>
    %28 = vector.extract_strided_slice %20 {offsets = [2, 1, 0], sizes = [8, 16, 128], strides = [1, 1, 1]} : vector<10x18x128xf32> to vector<8x16x128xf32>
    %29 = vector.extract_strided_slice %20 {offsets = [2, 2, 0], sizes = [8, 16, 128], strides = [1, 1, 1]} : vector<10x18x128xf32> to vector<8x16x128xf32>
    %30 = tpu.concatenate %21, %22, %23, %24, %25, %26, %27, %28, %29 in 2 : vector<8x16x128xf32>, vector<8x16x128xf32>, vector<8x16x128xf32>, vector<8x16x128xf32>, vector<8x16x128xf32>, vector<8x16x128xf32>, vector<8x16x128xf32>, vector<8x16x128xf32>, vector<8x16x128xf32> -> vector<8x16x1152xf32>
    %31 = vector.shape_cast %30 : vector<8x16x1152xf32> to vector<128x1152xf32>
    %c0_28 = arith.constant 0 : index
    %c0_29 = arith.constant 0 : index
    %32 = vector.load %arg5[%c0_28, %c0_29] : memref<1152x128xf32, #tpu.memory_space<vmem>>, vector<1152x128xf32>
    %cst_30 = arith.constant dense<0.000000e+00> : vector<128x128xf32>
    %33 = tpu.matmul %31, %32, %cst_30 {dimension_numbers = #tpu.dot_dimension_numbers<[1], [0], [0], [1], [0, 0, 1, 1], [], []>} : vector<128x1152xf32>, vector<1152x128xf32>, vector<128x128xf32> -> vector<128x128xf32>
    %cst_31 = arith.constant dense<0.000000e+00> : vector<128xf32>
    %34 = vector.multi_reduction <add>, %33, %cst_31 [0] : vector<128x128xf32> to vector<128xf32>
    %35 = vector.shape_cast %34 : vector<128xf32> to vector<1x128xf32>
    %c0_32 = arith.constant 0 : index
    %c0_33 = arith.constant 0 : index
    %c0_34 = arith.constant 0 : index
    %c0_35 = arith.constant 0 : index
    %36 = vector.load %arg7[%c0_32, %c0_33, %c0_34, %c0_35] : memref<1x1x1x128xf32, #tpu.memory_space<vmem>>, vector<1x1x1x128xf32>
    %37 = vector.shape_cast %36 : vector<1x1x1x128xf32> to vector<1x128xf32>
    %38 = vector.shape_cast %35 : vector<1x128xf32> to vector<1x1x1x128xf32>
    tpu.vector_store %arg7[%c0_32, %c0_33, %c0_34, %c0_35], %38 {strides = array<i32>} : memref<1x1x1x128xf32, #tpu.memory_space<vmem>>, vector<1x1x1x128xf32>,
    %39 = arith.mulf %33, %33 : vector<128x128xf32>
    %cst_36 = arith.constant dense<0.000000e+00> : vector<128xf32>
    %40 = vector.multi_reduction <add>, %39, %cst_36 [0] : vector<128x128xf32> to vector<128xf32>
    %41 = vector.shape_cast %40 : vector<128xf32> to vector<1x128xf32>
    %c0_37 = arith.constant 0 : index
    %c0_38 = arith.constant 0 : index
    %c0_39 = arith.constant 0 : index
    %c0_40 = arith.constant 0 : index
    %42 = vector.load %arg8[%c0_37, %c0_38, %c0_39, %c0_40] : memref<1x1x1x128xf32, #tpu.memory_space<vmem>>, vector<1x1x1x128xf32>
    %43 = vector.shape_cast %42 : vector<1x1x1x128xf32> to vector<1x128xf32>
    %44 = vector.shape_cast %41 : vector<1x128xf32> to vector<1x1x1x128xf32>
    tpu.vector_store %arg8[%c0_37, %c0_38, %c0_39, %c0_40], %44 {strides = array<i32>} : memref<1x1x1x128xf32, #tpu.memory_space<vmem>>, vector<1x1x1x128xf32>,
    %45 = vector.shape_cast %33 : vector<128x128xf32> to vector<8x16x128xf32>
    %c0_41 = arith.constant 0 : index
    %c0_42 = arith.constant 0 : index
    %c0_43 = arith.constant 0 : index
    %c0_44 = arith.constant 0 : index
    %46 = vector.load %arg6[%c0_41, %c0_42, %c0_43, %c0_44] : memref<1x8x16x128xf32, #tpu.memory_space<vmem>>, vector<1x8x16x128xf32>
    %47 = vector.shape_cast %46 : vector<1x8x16x128xf32> to vector<8x16x128xf32>
    %48 = vector.shape_cast %45 : vector<8x16x128xf32> to vector<1x8x16x128xf32>
    tpu.vector_store %arg6[%c0_41, %c0_42, %c0_43, %c0_44], %48 {strides = array<i32>} : memref<1x8x16x128xf32, #tpu.memory_space<vmem>>, vector<1x8x16x128xf32>,
    return
  }
  func.func @transform_0(%arg0: i32, %arg1: i32) -> (i32, i32, i32, i32) {
    %c0_i32 = arith.constant 0 : i32
    %c0_i32_0 = arith.constant 0 : i32
    %c0_i32_1 = arith.constant 0 : i32
    return %arg0, %arg1, %c0_i32, %c0_i32_0 : i32, i32, i32, i32
  }
  func.func @transform_1(%arg0: i32, %arg1: i32) -> (i32, i32, i32, i32) {
    %c8_i32 = arith.constant 8 : i32
    %0 = arith.muli %arg1, %c8_i32 : i32
    %c1_i32 = arith.constant 1 : i32
    %1 = arith.subi %0, %c1_i32 : i32
    %c0_i32 = arith.constant 0 : i32
    %2 = arith.maxsi %1, %c0_i32 : i32
    %c0_i32_0 = arith.constant 0 : i32
    %c0_i32_1 = arith.constant 0 : i32
    %c0_i32_2 = arith.constant 0 : i32
    return %arg0, %2, %c0_i32_0, %c0_i32_1 : i32, i32, i32, i32
  }
  func.func @transform_2(%arg0: i32, %arg1: i32) -> (i32, i32, i32, i32) {
    %c8_i32 = arith.constant 8 : i32
    %0 = arith.muli %arg1, %c8_i32 : i32
    %c8_i32_0 = arith.constant 8 : i32
    %1 = arith.addi %0, %c8_i32_0 : i32
    %c15_i32 = arith.constant 15 : i32
    %2 = arith.minsi %1, %c15_i32 : i32
    %c0_i32 = arith.constant 0 : i32
    %c0_i32_1 = arith.constant 0 : i32
    %c0_i32_2 = arith.constant 0 : i32
    return %arg0, %2, %c0_i32, %c0_i32_1 : i32, i32, i32, i32
  }
  func.func @transform_3(%arg0: i32, %arg1: i32) -> (i32, i32) {
    %c0_i32 = arith.constant 0 : i32
    %c0_i32_0 = arith.constant 0 : i32
    %c0_i32_1 = arith.constant 0 : i32
    return %c0_i32, %c0_i32_0 : i32, i32
  }
  func.func @transform_4(%arg0: i32, %arg1: i32) -> (i32, i32, i32, i32) {
    %c0_i32 = arith.constant 0 : i32
    %c0_i32_0 = arith.constant 0 : i32
    %c0_i32_1 = arith.constant 0 : i32
    return %arg0, %arg1, %c0_i32, %c0_i32_0 : i32, i32, i32, i32
  }
  func.func @transform_5(%arg0: i32, %arg1: i32) -> (i32, i32, i32, i32) {
    %c0_i32 = arith.constant 0 : i32
    %c0_i32_0 = arith.constant 0 : i32
    %c0_i32_1 = arith.constant 0 : i32
    return %arg0, %arg1, %c0_i32, %c0_i32_0 : i32, i32, i32, i32
  }
  func.func @transform_6(%arg0: i32, %arg1: i32) -> (i32, i32, i32, i32) {
    %c0_i32 = arith.constant 0 : i32
    %c0_i32_0 = arith.constant 0 : i32
    %c0_i32_1 = arith.constant 0 : i32
    return %arg0, %arg1, %c0_i32, %c0_i32_0 : i32, i32, i32, i32
  }
}

module attributes {stable_mosaic.version = 11 : i64} {
  func.func @_pass2_kernel(%arg0: i32, %arg1: i32, %arg2: memref<1x8x16x128xf32, #tpu.memory_space<vmem>>, %arg3: memref<1x1x16x128xf32, #tpu.memory_space<vmem>>, %arg4: memref<1x1x16x128xf32, #tpu.memory_space<vmem>>, %arg5: memref<2x128xf32, #tpu.memory_space<vmem>>, %arg6: memref<1152x128xf32, #tpu.memory_space<vmem>>, %arg7: memref<1x128xf32, #tpu.memory_space<vmem>>, %arg8: memref<1x8x16x128xf32, #tpu.memory_space<vmem>>, %arg9: memref<1x1x1x128xf32, #tpu.memory_space<vmem>>, %arg10: memref<1x1x1x128xf32, #tpu.memory_space<vmem>>, %arg11: memref<10x18x128xf32, #tpu.memory_space<vmem>>) attributes {dimension_semantics = [#tpu.dimension_semantics<parallel>, #tpu.dimension_semantics<parallel>], iteration_bounds = array<i64: 2, 2>, scalar_prefetch = 0 : i64, scratch_operands = 1 : i64, tpu.core_type = #tpu.core_type<tc>, window_params = [{transform_indices = @transform_0, window_bounds = array<i64: 1, 8, 16, 128>}, {transform_indices = @transform_1, window_bounds = array<i64: 1, 1, 16, 128>}, {transform_indices = @transform_2, window_bounds = array<i64: 1, 1, 16, 128>}, {pipeline_mode = #tpu.pipeline_mode<synchronous>, transform_indices = @transform_3, window_bounds = array<i64: 2, 128>}, {pipeline_mode = #tpu.pipeline_mode<synchronous>, transform_indices = @transform_4, window_bounds = array<i64: 1152, 128>}, {pipeline_mode = #tpu.pipeline_mode<synchronous>, transform_indices = @transform_5, window_bounds = array<i64: 1, 128>}, {transform_indices = @transform_6, window_bounds = array<i64: 1, 8, 16, 128>}, {transform_indices = @transform_7, window_bounds = array<i64: 1, 1, 1, 128>}, {transform_indices = @transform_8, window_bounds = array<i64: 1, 1, 1, 128>}]} {
    %c0 = arith.constant 0 : index
    %c0_0 = arith.constant 0 : index
    %0 = vector.load %arg5[%c0, %c0_0] : memref<2x128xf32, #tpu.memory_space<vmem>>, vector<1x128xf32>
    %c1 = arith.constant 1 : index
    %c0_1 = arith.constant 0 : index
    %1 = vector.load %arg5[%c1, %c0_1] : memref<2x128xf32, #tpu.memory_space<vmem>>, vector<1x128xf32>
    %c0_2 = arith.constant 0 : index
    %c0_3 = arith.constant 0 : index
    %c0_4 = arith.constant 0 : index
    %c0_5 = arith.constant 0 : index
    %2 = vector.load %arg2[%c0_2, %c0_3, %c0_4, %c0_5] : memref<1x8x16x128xf32, #tpu.memory_space<vmem>>, vector<1x8x16x128xf32>
    %3 = vector.shape_cast %2 : vector<1x8x16x128xf32> to vector<8x16x128xf32>
    %4 = vector.shape_cast %0 : vector<1x128xf32> to vector<1x1x128xf32>
    %5 = vector.broadcast %4 : vector<1x1x128xf32> to vector<8x16x128xf32>
    %6 = arith.mulf %3, %5 : vector<8x16x128xf32>
    %7 = vector.shape_cast %1 : vector<1x128xf32> to vector<1x1x128xf32>
    %8 = vector.broadcast %7 : vector<1x1x128xf32> to vector<8x16x128xf32>
    %9 = arith.addf %6, %8 : vector<8x16x128xf32>
    %cst = arith.constant 0.000000e+00 : f32
    %10 = vector.broadcast %cst : f32 to vector<8x16x128xf32>
    %11 = arith.maximumf %9, %10 : vector<8x16x128xf32>
    %c0_6 = arith.constant 0 : index
    %c0_7 = arith.constant 0 : index
    %c0_8 = arith.constant 0 : index
    %c0_9 = arith.constant 0 : index
    %12 = vector.load %arg3[%c0_6, %c0_7, %c0_8, %c0_9] : memref<1x1x16x128xf32, #tpu.memory_space<vmem>>, vector<1x1x16x128xf32>
    %13 = vector.shape_cast %12 : vector<1x1x16x128xf32> to vector<16x128xf32>
    %14 = vector.broadcast %0 : vector<1x128xf32> to vector<16x128xf32>
    %15 = arith.mulf %13, %14 : vector<16x128xf32>
    %16 = vector.broadcast %1 : vector<1x128xf32> to vector<16x128xf32>
    %17 = arith.addf %15, %16 : vector<16x128xf32>
    %cst_10 = arith.constant 0.000000e+00 : f32
    %18 = vector.broadcast %cst_10 : f32 to vector<16x128xf32>
    %19 = arith.maximumf %17, %18 : vector<16x128xf32>
    %c0_11 = arith.constant 0 : index
    %c0_12 = arith.constant 0 : index
    %c0_13 = arith.constant 0 : index
    %c0_14 = arith.constant 0 : index
    %20 = vector.load %arg4[%c0_11, %c0_12, %c0_13, %c0_14] : memref<1x1x16x128xf32, #tpu.memory_space<vmem>>, vector<1x1x16x128xf32>
    %21 = vector.shape_cast %20 : vector<1x1x16x128xf32> to vector<16x128xf32>
    %22 = vector.broadcast %0 : vector<1x128xf32> to vector<16x128xf32>
    %23 = arith.mulf %21, %22 : vector<16x128xf32>
    %24 = vector.broadcast %1 : vector<1x128xf32> to vector<16x128xf32>
    %25 = arith.addf %23, %24 : vector<16x128xf32>
    %cst_15 = arith.constant 0.000000e+00 : f32
    %26 = vector.broadcast %cst_15 : f32 to vector<16x128xf32>
    %27 = arith.maximumf %25, %26 : vector<16x128xf32>
    %cst_16 = arith.constant 0.000000e+00 : f32
    %28 = vector.broadcast %cst_16 : f32 to vector<10x1x128xf32>
    %c0_17 = arith.constant 0 : index
    %c0_18 = arith.constant 0 : index
    %c0_19 = arith.constant 0 : index
    %29 = vector.load %arg11[%c0_17, %c0_18, %c0_19] : memref<10x18x128xf32, #tpu.memory_space<vmem>>, vector<10x1x128xf32>
    tpu.vector_store %arg11[%c0_17, %c0_18, %c0_19], %28 {strides = array<i32>} : memref<10x18x128xf32, #tpu.memory_space<vmem>>, vector<10x1x128xf32>,
    %c0_20 = arith.constant 0 : index
    %c17 = arith.constant 17 : index
    %c0_21 = arith.constant 0 : index
    %30 = vector.load %arg11[%c0_20, %c17, %c0_21] : memref<10x18x128xf32, #tpu.memory_space<vmem>>, vector<10x1x128xf32>
    tpu.vector_store %arg11[%c0_20, %c17, %c0_21], %28 {strides = array<i32>} : memref<10x18x128xf32, #tpu.memory_space<vmem>>, vector<10x1x128xf32>,
    %c1_22 = arith.constant 1 : index
    %c1_23 = arith.constant 1 : index
    %c0_24 = arith.constant 0 : index
    %31 = vector.load %arg11[%c1_22, %c1_23, %c0_24] : memref<10x18x128xf32, #tpu.memory_space<vmem>>, vector<8x16x128xf32>
    tpu.vector_store %arg11[%c1_22, %c1_23, %c0_24], %11 {strides = array<i32>} : memref<10x18x128xf32, #tpu.memory_space<vmem>>, vector<8x16x128xf32>,
    %c0_i32 = arith.constant 0 : i32
    %32 = arith.cmpi eq, %arg1, %c0_i32 : i32
    %cst_25 = arith.constant 0.000000e+00 : f32
    %33 = vector.broadcast %cst_25 : f32 to vector<16x128xf32>
    %34 = arith.select %32, %33, %19 : vector<16x128xf32>
    %35 = vector.shape_cast %34 : vector<16x128xf32> to vector<1x16x128xf32>
    %c0_26 = arith.constant 0 : index
    %c1_27 = arith.constant 1 : index
    %c0_28 = arith.constant 0 : index
    %36 = vector.load %arg11[%c0_26, %c1_27, %c0_28] : memref<10x18x128xf32, #tpu.memory_space<vmem>>, vector<1x16x128xf32>
    tpu.vector_store %arg11[%c0_26, %c1_27, %c0_28], %35 {strides = array<i32>} : memref<10x18x128xf32, #tpu.memory_space<vmem>>, vector<1x16x128xf32>,
    %c1_i32 = arith.constant 1 : i32
    %37 = arith.cmpi eq, %arg1, %c1_i32 : i32
    %cst_29 = arith.constant 0.000000e+00 : f32
    %38 = vector.broadcast %cst_29 : f32 to vector<16x128xf32>
    %39 = arith.select %37, %38, %27 : vector<16x128xf32>
    %40 = vector.shape_cast %39 : vector<16x128xf32> to vector<1x16x128xf32>
    %c9 = arith.constant 9 : index
    %c1_30 = arith.constant 1 : index
    %c0_31 = arith.constant 0 : index
    %41 = vector.load %arg11[%c9, %c1_30, %c0_31] : memref<10x18x128xf32, #tpu.memory_space<vmem>>, vector<1x16x128xf32>
    tpu.vector_store %arg11[%c9, %c1_30, %c0_31], %40 {strides = array<i32>} : memref<10x18x128xf32, #tpu.memory_space<vmem>>, vector<1x16x128xf32>,
    %c0_32 = arith.constant 0 : index
    %c0_33 = arith.constant 0 : index
    %c0_34 = arith.constant 0 : index
    %42 = vector.load %arg11[%c0_32, %c0_33, %c0_34] : memref<10x18x128xf32, #tpu.memory_space<vmem>>, vector<10x18x128xf32>
    %43 = vector.extract_strided_slice %42 {offsets = [0, 0, 0], sizes = [8, 16, 128], strides = [1, 1, 1]} : vector<10x18x128xf32> to vector<8x16x128xf32>
    %44 = vector.extract_strided_slice %42 {offsets = [0, 1, 0], sizes = [8, 16, 128], strides = [1, 1, 1]} : vector<10x18x128xf32> to vector<8x16x128xf32>
    %45 = vector.extract_strided_slice %42 {offsets = [0, 2, 0], sizes = [8, 16, 128], strides = [1, 1, 1]} : vector<10x18x128xf32> to vector<8x16x128xf32>
    %46 = vector.extract_strided_slice %42 {offsets = [1, 0, 0], sizes = [8, 16, 128], strides = [1, 1, 1]} : vector<10x18x128xf32> to vector<8x16x128xf32>
    %47 = vector.extract_strided_slice %42 {offsets = [1, 1, 0], sizes = [8, 16, 128], strides = [1, 1, 1]} : vector<10x18x128xf32> to vector<8x16x128xf32>
    %48 = vector.extract_strided_slice %42 {offsets = [1, 2, 0], sizes = [8, 16, 128], strides = [1, 1, 1]} : vector<10x18x128xf32> to vector<8x16x128xf32>
    %49 = vector.extract_strided_slice %42 {offsets = [2, 0, 0], sizes = [8, 16, 128], strides = [1, 1, 1]} : vector<10x18x128xf32> to vector<8x16x128xf32>
    %50 = vector.extract_strided_slice %42 {offsets = [2, 1, 0], sizes = [8, 16, 128], strides = [1, 1, 1]} : vector<10x18x128xf32> to vector<8x16x128xf32>
    %51 = vector.extract_strided_slice %42 {offsets = [2, 2, 0], sizes = [8, 16, 128], strides = [1, 1, 1]} : vector<10x18x128xf32> to vector<8x16x128xf32>
    %52 = tpu.concatenate %43, %44, %45, %46, %47, %48, %49, %50, %51 in 2 : vector<8x16x128xf32>, vector<8x16x128xf32>, vector<8x16x128xf32>, vector<8x16x128xf32>, vector<8x16x128xf32>, vector<8x16x128xf32>, vector<8x16x128xf32>, vector<8x16x128xf32>, vector<8x16x128xf32> -> vector<8x16x1152xf32>
    %53 = vector.shape_cast %52 : vector<8x16x1152xf32> to vector<128x1152xf32>
    %c0_35 = arith.constant 0 : index
    %c0_36 = arith.constant 0 : index
    %54 = vector.load %arg6[%c0_35, %c0_36] : memref<1152x128xf32, #tpu.memory_space<vmem>>, vector<1152x128xf32>
    %cst_37 = arith.constant dense<0.000000e+00> : vector<128x128xf32>
    %55 = tpu.matmul %53, %54, %cst_37 {dimension_numbers = #tpu.dot_dimension_numbers<[1], [0], [0], [1], [0, 0, 1, 1], [], []>} : vector<128x1152xf32>, vector<1152x128xf32>, vector<128x128xf32> -> vector<128x128xf32>
    %c0_38 = arith.constant 0 : index
    %c0_39 = arith.constant 0 : index
    %56 = vector.load %arg7[%c0_38, %c0_39] : memref<1x128xf32, #tpu.memory_space<vmem>>, vector<1x128xf32>
    %57 = vector.broadcast %56 : vector<1x128xf32> to vector<128x128xf32>
    %58 = arith.addf %55, %57 : vector<128x128xf32>
    %cst_40 = arith.constant dense<0.000000e+00> : vector<128xf32>
    %59 = vector.multi_reduction <add>, %58, %cst_40 [0] : vector<128x128xf32> to vector<128xf32>
    %60 = vector.shape_cast %59 : vector<128xf32> to vector<1x128xf32>
    %c0_41 = arith.constant 0 : index
    %c0_42 = arith.constant 0 : index
    %c0_43 = arith.constant 0 : index
    %c0_44 = arith.constant 0 : index
    %61 = vector.load %arg9[%c0_41, %c0_42, %c0_43, %c0_44] : memref<1x1x1x128xf32, #tpu.memory_space<vmem>>, vector<1x1x1x128xf32>
    %62 = vector.shape_cast %61 : vector<1x1x1x128xf32> to vector<1x128xf32>
    %63 = vector.shape_cast %60 : vector<1x128xf32> to vector<1x1x1x128xf32>
    tpu.vector_store %arg9[%c0_41, %c0_42, %c0_43, %c0_44], %63 {strides = array<i32>} : memref<1x1x1x128xf32, #tpu.memory_space<vmem>>, vector<1x1x1x128xf32>,
    %64 = arith.mulf %58, %58 : vector<128x128xf32>
    %cst_45 = arith.constant dense<0.000000e+00> : vector<128xf32>
    %65 = vector.multi_reduction <add>, %64, %cst_45 [0] : vector<128x128xf32> to vector<128xf32>
    %66 = vector.shape_cast %65 : vector<128xf32> to vector<1x128xf32>
    %c0_46 = arith.constant 0 : index
    %c0_47 = arith.constant 0 : index
    %c0_48 = arith.constant 0 : index
    %c0_49 = arith.constant 0 : index
    %67 = vector.load %arg10[%c0_46, %c0_47, %c0_48, %c0_49] : memref<1x1x1x128xf32, #tpu.memory_space<vmem>>, vector<1x1x1x128xf32>
    %68 = vector.shape_cast %67 : vector<1x1x1x128xf32> to vector<1x128xf32>
    %69 = vector.shape_cast %66 : vector<1x128xf32> to vector<1x1x1x128xf32>
    tpu.vector_store %arg10[%c0_46, %c0_47, %c0_48, %c0_49], %69 {strides = array<i32>} : memref<1x1x1x128xf32, #tpu.memory_space<vmem>>, vector<1x1x1x128xf32>,
    %70 = vector.shape_cast %58 : vector<128x128xf32> to vector<8x16x128xf32>
    %c0_50 = arith.constant 0 : index
    %c0_51 = arith.constant 0 : index
    %c0_52 = arith.constant 0 : index
    %c0_53 = arith.constant 0 : index
    %71 = vector.load %arg8[%c0_50, %c0_51, %c0_52, %c0_53] : memref<1x8x16x128xf32, #tpu.memory_space<vmem>>, vector<1x8x16x128xf32>
    %72 = vector.shape_cast %71 : vector<1x8x16x128xf32> to vector<8x16x128xf32>
    %73 = vector.shape_cast %70 : vector<8x16x128xf32> to vector<1x8x16x128xf32>
    tpu.vector_store %arg8[%c0_50, %c0_51, %c0_52, %c0_53], %73 {strides = array<i32>} : memref<1x8x16x128xf32, #tpu.memory_space<vmem>>, vector<1x8x16x128xf32>,
    return
  }
  func.func @transform_0(%arg0: i32, %arg1: i32) -> (i32, i32, i32, i32) {
    %c0_i32 = arith.constant 0 : i32
    %c0_i32_0 = arith.constant 0 : i32
    %c0_i32_1 = arith.constant 0 : i32
    return %arg0, %arg1, %c0_i32, %c0_i32_0 : i32, i32, i32, i32
  }
  func.func @transform_1(%arg0: i32, %arg1: i32) -> (i32, i32, i32, i32) {
    %c8_i32 = arith.constant 8 : i32
    %0 = arith.muli %arg1, %c8_i32 : i32
    %c1_i32 = arith.constant 1 : i32
    %1 = arith.subi %0, %c1_i32 : i32
    %c0_i32 = arith.constant 0 : i32
    %2 = arith.maxsi %1, %c0_i32 : i32
    %c0_i32_0 = arith.constant 0 : i32
    %c0_i32_1 = arith.constant 0 : i32
    %c0_i32_2 = arith.constant 0 : i32
    return %arg0, %2, %c0_i32_0, %c0_i32_1 : i32, i32, i32, i32
  }
  func.func @transform_2(%arg0: i32, %arg1: i32) -> (i32, i32, i32, i32) {
    %c8_i32 = arith.constant 8 : i32
    %0 = arith.muli %arg1, %c8_i32 : i32
    %c8_i32_0 = arith.constant 8 : i32
    %1 = arith.addi %0, %c8_i32_0 : i32
    %c15_i32 = arith.constant 15 : i32
    %2 = arith.minsi %1, %c15_i32 : i32
    %c0_i32 = arith.constant 0 : i32
    %c0_i32_1 = arith.constant 0 : i32
    %c0_i32_2 = arith.constant 0 : i32
    return %arg0, %2, %c0_i32, %c0_i32_1 : i32, i32, i32, i32
  }
  func.func @transform_3(%arg0: i32, %arg1: i32) -> (i32, i32) {
    %c0_i32 = arith.constant 0 : i32
    %c0_i32_0 = arith.constant 0 : i32
    %c0_i32_1 = arith.constant 0 : i32
    return %c0_i32, %c0_i32_0 : i32, i32
  }
  func.func @transform_4(%arg0: i32, %arg1: i32) -> (i32, i32) {
    %c0_i32 = arith.constant 0 : i32
    %c0_i32_0 = arith.constant 0 : i32
    %c0_i32_1 = arith.constant 0 : i32
    return %c0_i32, %c0_i32_0 : i32, i32
  }
  func.func @transform_5(%arg0: i32, %arg1: i32) -> (i32, i32) {
    %c0_i32 = arith.constant 0 : i32
    %c0_i32_0 = arith.constant 0 : i32
    %c0_i32_1 = arith.constant 0 : i32
    return %c0_i32, %c0_i32_0 : i32, i32
  }
  func.func @transform_6(%arg0: i32, %arg1: i32) -> (i32, i32, i32, i32) {
    %c0_i32 = arith.constant 0 : i32
    %c0_i32_0 = arith.constant 0 : i32
    %c0_i32_1 = arith.constant 0 : i32
    return %arg0, %arg1, %c0_i32, %c0_i32_0 : i32, i32, i32, i32
  }
  func.func @transform_7(%arg0: i32, %arg1: i32) -> (i32, i32, i32, i32) {
    %c0_i32 = arith.constant 0 : i32
    %c0_i32_0 = arith.constant 0 : i32
    %c0_i32_1 = arith.constant 0 : i32
    return %arg0, %arg1, %c0_i32, %c0_i32_0 : i32, i32, i32, i32
  }
  func.func @transform_8(%arg0: i32, %arg1: i32) -> (i32, i32, i32, i32) {
    %c0_i32 = arith.constant 0 : i32
    %c0_i32_0 = arith.constant 0 : i32
    %c0_i32_1 = arith.constant 0 : i32
    return %arg0, %arg1, %c0_i32, %c0_i32_0 : i32, i32, i32, i32
  }
}

module attributes {stable_mosaic.version = 11 : i64} {
  func.func @_pass3_kernel(%arg0: i32, %arg1: i32, %arg2: memref<1x8x16x128xf32, #tpu.memory_space<vmem>>, %arg3: memref<1x8x16x128xf32, #tpu.memory_space<vmem>>, %arg4: memref<128x128xf32, #tpu.memory_space<vmem>>, %arg5: memref<3x128xf32, #tpu.memory_space<vmem>>, %arg6: memref<1x8x16x128xf32, #tpu.memory_space<vmem>>) attributes {dimension_semantics = [#tpu.dimension_semantics<parallel>, #tpu.dimension_semantics<parallel>], iteration_bounds = array<i64: 2, 2>, scalar_prefetch = 0 : i64, scratch_operands = 0 : i64, tpu.core_type = #tpu.core_type<tc>, window_params = [{transform_indices = @transform_0, window_bounds = array<i64: 1, 8, 16, 128>}, {transform_indices = @transform_1, window_bounds = array<i64: 1, 8, 16, 128>}, {pipeline_mode = #tpu.pipeline_mode<synchronous>, transform_indices = @transform_2, window_bounds = array<i64: 128, 128>}, {pipeline_mode = #tpu.pipeline_mode<synchronous>, transform_indices = @transform_3, window_bounds = array<i64: 3, 128>}, {transform_indices = @transform_4, window_bounds = array<i64: 1, 8, 16, 128>}]} {
    %c0 = arith.constant 0 : index
    %c0_0 = arith.constant 0 : index
    %0 = vector.load %arg5[%c0, %c0_0] : memref<3x128xf32, #tpu.memory_space<vmem>>, vector<1x128xf32>
    %c1 = arith.constant 1 : index
    %c0_1 = arith.constant 0 : index
    %1 = vector.load %arg5[%c1, %c0_1] : memref<3x128xf32, #tpu.memory_space<vmem>>, vector<1x128xf32>
    %c2 = arith.constant 2 : index
    %c0_2 = arith.constant 0 : index
    %2 = vector.load %arg5[%c2, %c0_2] : memref<3x128xf32, #tpu.memory_space<vmem>>, vector<1x128xf32>
    %c0_3 = arith.constant 0 : index
    %c0_4 = arith.constant 0 : index
    %c0_5 = arith.constant 0 : index
    %c0_6 = arith.constant 0 : index
    %3 = vector.load %arg3[%c0_3, %c0_4, %c0_5, %c0_6] : memref<1x8x16x128xf32, #tpu.memory_space<vmem>>, vector<1x8x16x128xf32>
    %4 = vector.shape_cast %3 : vector<1x8x16x128xf32> to vector<8x16x128xf32>
    %5 = vector.shape_cast %4 : vector<8x16x128xf32> to vector<128x128xf32>
    %c0_7 = arith.constant 0 : index
    %c0_8 = arith.constant 0 : index
    %6 = vector.load %arg4[%c0_7, %c0_8] : memref<128x128xf32, #tpu.memory_space<vmem>>, vector<128x128xf32>
    %cst = arith.constant dense<0.000000e+00> : vector<128x128xf32>
    %7 = tpu.matmul %5, %6, %cst {dimension_numbers = #tpu.dot_dimension_numbers<[1], [0], [0], [1], [0, 0, 1, 1], [], []>} : vector<128x128xf32>, vector<128x128xf32>, vector<128x128xf32> -> vector<128x128xf32>
    %c0_9 = arith.constant 0 : index
    %c0_10 = arith.constant 0 : index
    %c0_11 = arith.constant 0 : index
    %c0_12 = arith.constant 0 : index
    %8 = vector.load %arg2[%c0_9, %c0_10, %c0_11, %c0_12] : memref<1x8x16x128xf32, #tpu.memory_space<vmem>>, vector<1x8x16x128xf32>
    %9 = vector.shape_cast %8 : vector<1x8x16x128xf32> to vector<8x16x128xf32>
    %10 = vector.shape_cast %9 : vector<8x16x128xf32> to vector<128x128xf32>
    %11 = vector.broadcast %0 : vector<1x128xf32> to vector<128x128xf32>
    %12 = arith.mulf %10, %11 : vector<128x128xf32>
    %13 = vector.broadcast %1 : vector<1x128xf32> to vector<128x128xf32>
    %14 = arith.addf %12, %13 : vector<128x128xf32>
    %15 = arith.addf %14, %7 : vector<128x128xf32>
    %16 = vector.broadcast %2 : vector<1x128xf32> to vector<128x128xf32>
    %17 = arith.addf %15, %16 : vector<128x128xf32>
    %cst_13 = arith.constant 0.000000e+00 : f32
    %18 = vector.broadcast %cst_13 : f32 to vector<128x128xf32>
    %19 = arith.maximumf %17, %18 : vector<128x128xf32>
    %20 = vector.shape_cast %19 : vector<128x128xf32> to vector<8x16x128xf32>
    %c0_14 = arith.constant 0 : index
    %c0_15 = arith.constant 0 : index
    %c0_16 = arith.constant 0 : index
    %c0_17 = arith.constant 0 : index
    %21 = vector.load %arg6[%c0_14, %c0_15, %c0_16, %c0_17] : memref<1x8x16x128xf32, #tpu.memory_space<vmem>>, vector<1x8x16x128xf32>
    %22 = vector.shape_cast %21 : vector<1x8x16x128xf32> to vector<8x16x128xf32>
    %23 = vector.shape_cast %20 : vector<8x16x128xf32> to vector<1x8x16x128xf32>
    tpu.vector_store %arg6[%c0_14, %c0_15, %c0_16, %c0_17], %23 {strides = array<i32>} : memref<1x8x16x128xf32, #tpu.memory_space<vmem>>, vector<1x8x16x128xf32>,
    return
  }
  func.func @transform_0(%arg0: i32, %arg1: i32) -> (i32, i32, i32, i32) {
    %c0_i32 = arith.constant 0 : i32
    %c0_i32_0 = arith.constant 0 : i32
    %c0_i32_1 = arith.constant 0 : i32
    return %arg0, %arg1, %c0_i32, %c0_i32_0 : i32, i32, i32, i32
  }
  func.func @transform_1(%arg0: i32, %arg1: i32) -> (i32, i32, i32, i32) {
    %c0_i32 = arith.constant 0 : i32
    %c0_i32_0 = arith.constant 0 : i32
    %c0_i32_1 = arith.constant 0 : i32
    return %arg0, %arg1, %c0_i32, %c0_i32_0 : i32, i32, i32, i32
  }
  func.func @transform_2(%arg0: i32, %arg1: i32) -> (i32, i32) {
    %c0_i32 = arith.constant 0 : i32
    %c0_i32_0 = arith.constant 0 : i32
    %c0_i32_1 = arith.constant 0 : i32
    return %c0_i32, %c0_i32_0 : i32, i32
  }
  func.func @transform_3(%arg0: i32, %arg1: i32) -> (i32, i32) {
    %c0_i32 = arith.constant 0 : i32
    %c0_i32_0 = arith.constant 0 : i32
    %c0_i32_1 = arith.constant 0 : i32
    return %c0_i32, %c0_i32_0 : i32, i32
  }
  func.func @transform_4(%arg0: i32, %arg1: i32) -> (i32, i32, i32, i32) {
    %c0_i32 = arith.constant 0 : i32
    %c0_i32_0 = arith.constant 0 : i32
    %c0_i32_1 = arith.constant 0 : i32
    return %arg0, %arg1, %c0_i32, %c0_i32_0 : i32, i32, i32, i32
  }
}

</mosaic_0001>

<bundles_post_ra>
// kernel: resnet_block_pallas_nhwc.5
= control target key start
LH: loop header
LB: loop body
LE: loop exit
PB: predicated region body
PF: predicated region fallthrough
CT: control target
= control target key end

     0   :  { %s952_s15 = smov 0   ;;  %s954_s16 = smov 0   ;;  %s1183_s0 = inlined_call_operand.vmem [shape: f32[2,16,16,128], index: 0, kind: input, shape index: {}]   ;;  %s1184_s1 = inlined_call_operand.vmem [shape: f32[2,16,16,128], index: 1, kind: input, shape index: {}]   ;;  %s1185_s2 = inlined_call_operand.vmem [shape: f32[128,128], index: 2, kind: input, shape index: {}]   ;;  %s1186_s3 = inlined_call_operand.vmem [shape: f32[3,128], index: 3, kind: input, shape index: {}]   ;;  %s1187_s4 = inlined_call_operand.vmem [shape: f32[2,16,16,128], index: 4, kind: output, shape index: {}]  }
   0x1   :  { %s956_s17 = smov 0   ;;  %s958_s18 = smov 0  }
   0x2   :  { %s960_s19 = smov 0  }
   0x3 LB: > { %s23_s20 = sadd.s32 1, %s917_s17  ;;  %s26_s21 = sadd.s32 1, %s921_s18  ;;  %s925_s19 = sphi %s960_s19, %s14_s19   ;;  %s921_s18 = sphi %s958_s18, %s1191_s18   ;;  %s917_s17 = sphi %s956_s17, %s1190_s17   ;;  %s913_s16 = sphi %s954_s16, %s1189_s16   ;;  %s909_s15 = sphi %s952_s15, %s1188_s15  }
   0x4   : > { %p24_p0 = scmp.ge.s32.totalorder %s23_s20, 2  ;;  %p709_p1 = scmp.ge.s32.totalorder %s925_s19, 1 }
   0x5   : > { %p202_p2 = scmp.lt.s32.totalorder %s925_s19, 5 }
   0x6   : > { %s1193_s20 = smov (%p24_p0, %s23_s20), 0  ;;  %s1195_s21 = smov (!%p24_p0, %s26_s21), %s921_s18 }
   0x7   : > { %p203_p3 = pnand %p709_p1, %p202_p2  ;;  %p28_p4 = scmp.ge.s32.totalorder %s1195_s21, 2 }
   0x8   : > { %s710_s6 = sshll.u32 (!%p203_p3), %s909_s15, 3  ;;  %p249_p5 = scmp.lt.s32.totalorder (!%p203_p3), %s913_s16, 1 }
   0x9   : > { %s1197_s21 = smov (%p28_p4, %s1195_s21), 0  ;;  %206 = sbr.rel (%p203_p3) target bundleno = 262 (0x106), region = 36 }
   0xa   : > { %p251_p6 = scmp.lt.s32.totalorder (!%p203_p3), %s710_s6, 15 }
   0xe   : > { %v315_v0 = vld [vmem:[%s1185_s2 + $0x78] sm:$0xff]  ;;  %v314_v1 = vld [vmem:[%s1185_s2 + $0x70] sm:$0xff]  ;;  %v313_v2 = vld [vmem:[%s1185_s2 + $0x68] sm:$0xff]  ;;  %s1199_s16 = smov (!%p249_p5, %s913_s16), 1  ;;  %s1201_s6 = smov (!%p251_p6, %s710_s6), 15 }
   0xf   : > { %759 = vmatprep.subr.mxu0 %v315_v0  ;;  %815 = vmatprep.subr.mxu1 %v315_v0  ;;  %v312_v3 = vld [vmem:[%s1185_s2 + $0x60] sm:$0xff]  ;;  %v311_v4 = vld [vmem:[%s1185_s2 + $0x58] sm:$0xff]  ;;  %v310_v5 = vld [vmem:[%s1185_s2 + $0x50] sm:$0xff]  ;;  %s711_s25 = sshll.u32 %s1201_s6, 1  ;;  %s712_s26 = sshll.u32 %s1199_s16, 5 }
  0x10   : > { %760 = vmatpush3.msra.mxu0 %v315_v0  ;;  %831 = vmatpush3.msra.mxu1 %v315_v0  ;;  %v309_v6 = vld [vmem:[%s1185_s2 + $0x48] sm:$0xff]  ;;  %v308_v7 = vld [vmem:[%s1185_s2 + $0x40] sm:$0xff]  ;;  %v307_v8 = vld [vmem:[%s1185_s2 + $0x38] sm:$0xff]  ;;  %s255_s29 = sadd.s32 %s712_s26, %s711_s25 }
  0x11   : > { %761 = vmatprep.subr.mxu0 %v314_v1  ;;  %816 = vmatprep.subr.mxu1 %v314_v1  ;;  %v306_v9 = vld [vmem:[%s1185_s2 + $0x30] sm:$0xff]  ;;  %v305_v10 = vld [vmem:[%s1185_s2 + $0x28] sm:$0xff]  ;;  %v304_v11 = vld [vmem:[%s1185_s2 + $0x20] sm:$0xff]  ;;  %s1031_s7 = sshll.u32 %s255_s29, 3 }
  0x12   : > { %762 = vmatpush3.msra.mxu0 %v314_v1  ;;  %832 = vmatpush3.msra.mxu1 %v314_v1  ;;  %v303_v12 = vld [vmem:[%s1185_s2 + $0x18] sm:$0xff]  ;;  %v302_v13 = vld [vmem:[%s1185_s2 + $0x10] sm:$0xff]  ;;  %v301_v14 = vld [vmem:[%s1185_s2 + $0x8] sm:$0xff]  ;;  %s1040_s12 = scalar_lea.vmem %s1184_s1, %s1031_s7  ;;  %s1065_s23 = scalar_lea.vmem %s1183_s0, %s1031_s7 }
  0x13   : > { %763 = vmatprep.subr.mxu0 %v313_v2  ;;  %817 = vmatprep.subr.mxu1 %v313_v2  ;;  %v300_v15 = vld [vmem:[%s1185_s2] sm:$0xff]  ;;  %v285_v18 = vld [vmem:[%s1040_s12 + $0x8] sm:$0xff]  ;;  %v286_v20 = vld [vmem:[%s1040_s12 + $0x10] sm:$0xff]  ;;  %s1126_s16 = scalar_lea.vmem %s1187_s4, %s1031_s7 }
  0x14   : > { %764 = vmatpush3.msra.mxu0 %v313_v2  ;;  %833 = vmatpush3.msra.mxu1 %v313_v2  ;;  %v284_v16 = vld [vmem:[%s1040_s12] sm:$0xff]  ;;  %v293_v19 = vld [vmem:[%s1040_s12 + $0x48] sm:$0xff]  ;;  %v294_v21 = vld [vmem:[%s1040_s12 + $0x50] sm:$0xff] }
  0x15   : > { %765 = vmatprep.subr.mxu0 %v312_v3  ;;  %818 = vmatprep.subr.mxu1 %v312_v3  ;;  %v292_v17 = vld [vmem:[%s1040_s12 + $0x40] sm:$0xff]  ;;  %v287_v22 = vld [vmem:[%s1040_s12 + $0x18] sm:$0xff]  ;;  %v289_v26 = vld [vmem:[%s1040_s12 + $0x28] sm:$0xff] }
  0x16   : > { %766 = vmatpush3.msra.mxu0 %v312_v3  ;;  %834 = vmatpush3.msra.mxu1 %v312_v3  ;;  %v295_v23 = vld [vmem:[%s1040_s12 + $0x58] sm:$0xff]  ;;  %v288_v24 = vld [vmem:[%s1040_s12 + $0x20] sm:$0xff]  ;;  %v297_v27 = vld [vmem:[%s1040_s12 + $0x68] sm:$0xff] }
  0x17   : > { %767 = vmatprep.subr.mxu0 %v311_v4  ;;  %819 = vmatprep.subr.mxu1 %v311_v4  ;;  %v296_v25 = vld [vmem:[%s1040_s12 + $0x60] sm:$0xff]  ;;  %v290_v28 = vld [vmem:[%s1040_s12 + $0x30] sm:$0xff]  ;;  %v291_v30 = vld [vmem:[%s1040_s12 + $0x38] sm:$0xff] }
  0x18   : > { %768 = vmatpush3.msra.mxu0 %v311_v4  ;;  %835 = vmatpush3.msra.mxu1 %v311_v4  ;;  %v298_v29 = vld [vmem:[%s1040_s12 + $0x70] sm:$0xff]  ;;  %v299_v31 = vld [vmem:[%s1040_s12 + $0x78] sm:$0xff]  ;;  %v1070_v32 = vld [vmem:[%s1186_s3] ss:$0 sm:$0xff] }
  0x19   : > { %769 = vmatprep.subr.mxu0 %v310_v5  ;;  %820 = vmatprep.subr.mxu1 %v310_v5  ;;  %v462_v33 = vld [vmem:[%s1065_s23 + $0x8] sm:$0xff]  ;;  %v461_v35 = vld [vmem:[%s1065_s23] sm:$0xff]  ;;  %v464_v40 = vld [vmem:[%s1065_s23 + $0x18] sm:$0xff] }
  0x1a   : > { %770 = vmatpush3.msra.mxu0 %v310_v5  ;;  %836 = vmatpush3.msra.mxu1 %v310_v5  ;;  %v470_v34 = vld [vmem:[%s1065_s23 + $0x48] sm:$0xff]  ;;  %v469_v36 = vld [vmem:[%s1065_s23 + $0x40] sm:$0xff]  ;;  %v482_v38 = vmul.f32 %v1070_v32, %v462_v33  ;;  %v472_v41 = vld [vmem:[%s1065_s23 + $0x58] sm:$0xff]  ;;  %v481_v43 = vmul.f32 %v1070_v32, %v461_v35  ;;  %v484_v50 = vmul.f32 %v1070_v32, %v464_v40 }
  0x1b   : > { %771 = vmatprep.subr.mxu0 %v309_v6  ;;  %821 = vmatprep.subr.mxu1 %v309_v6  ;;  %v1079_v37 = vld [vmem:[%s1186_s3 + $0x1] ss:$0 sm:$0xff]  ;;  %v490_v39 = vmul.f32 %v1070_v32, %v470_v34  ;;  %v463_v42 = vld [vmem:[%s1065_s23 + $0x10] sm:$0xff]  ;;  %v489_v44 = vmul.f32 %v1070_v32, %v469_v36  ;;  %v466_v46 = vld [vmem:[%s1065_s23 + $0x28] sm:$0xff]  ;;  %v492_v51 = vmul.f32 %v1070_v32, %v472_v41 }
  0x1c   : > { %772 = vmatpush3.msra.mxu0 %v309_v6  ;;  %837 = vmatpush3.msra.mxu1 %v309_v6  ;;  %v471_v45 = vld [vmem:[%s1065_s23 + $0x50] sm:$0xff]  ;;  %v474_v47 = vld [vmem:[%s1065_s23 + $0x68] sm:$0xff]  ;;  %v502_v48 = vadd.f32 %v1079_v37, %v482_v38  ;;  %v465_v52 = vld [vmem:[%s1065_s23 + $0x20] sm:$0xff]  ;;  %v483_v54 = vmul.f32 %v1070_v32, %v463_v42  ;;  %v486_v56 = vmul.f32 %v1070_v32, %v466_v46 }
  0x1d   : > { %773 = vmatprep.subr.mxu0 %v308_v7  ;;  %822 = vmatprep.subr.mxu1 %v308_v7  ;;  %v510_v49 = vadd.f32 %v1079_v37, %v490_v39  ;;  %v473_v53 = vld [vmem:[%s1065_s23 + $0x60] sm:$0xff]  ;;  %v491_v55 = vmul.f32 %v1070_v32, %v471_v45  ;;  %v494_v57 = vmul.f32 %v1070_v32, %v474_v47  ;;  %v468_v5 = vld [vmem:[%s1065_s23 + $0x38] sm:$0xff] }
  0x1e   : > { %774 = vmatpush3.msra.mxu0 %v308_v7  ;;  %838 = vmatpush3.msra.mxu1 %v308_v7  ;;  %v501_v58 = vadd.f32 %v1079_v37, %v481_v43  ;;  %v509_v59 = vadd.f32 %v1079_v37, %v489_v44  ;;  %v1106_v60 = vld [vmem:[%s1186_s3 + $0x2] ss:$0 sm:$0xff]  ;;  %v485_v63 = vmul.f32 %v1070_v32, %v465_v52  ;;  %v476_v6 = vld [vmem:[%s1065_s23 + $0x78] sm:$0xff] }
  0x1f   : > { %775 = vmatprep.subr.mxu0 %v307_v8  ;;  %823 = vmatprep.subr.mxu1 %v307_v8  ;;  %v493_v0 = vmul.f32 %v1070_v32, %v473_v53  ;;  %v504_v3 = vadd.f32 %v1079_v37, %v484_v50  ;;  %v512_v4 = vadd.f32 %v1079_v37, %v492_v51 }
  0x20   : > { %776 = vmatpush3.msra.mxu0 %v307_v8  ;;  %839 = vmatpush3.msra.mxu1 %v307_v8 }
  0x21   : > { %777 = vmatprep.subr.mxu0 %v306_v9  ;;  %824 = vmatprep.subr.mxu1 %v306_v9 }
  0x22   : > { %778 = vmatpush3.msra.mxu0 %v306_v9  ;;  %840 = vmatpush3.msra.mxu1 %v306_v9  ;;  %v503_v9 = vadd.f32 %v1079_v37, %v483_v54 }
  0x23   : > { %779 = vmatprep.subr.mxu0 %v305_v10  ;;  %825 = vmatprep.subr.mxu1 %v305_v10 }
  0x24   : > { %780 = vmatpush3.msra.mxu0 %v305_v10  ;;  %841 = vmatpush3.msra.mxu1 %v305_v10  ;;  %v511_v10 = vadd.f32 %v1079_v37, %v491_v55 }
  0x25   : > { %781 = vmatprep.subr.mxu0 %v304_v11  ;;  %826 = vmatprep.subr.mxu1 %v304_v11 }
  0x26   : > { %782 = vmatpush3.msra.mxu0 %v304_v11  ;;  %842 = vmatpush3.msra.mxu1 %v304_v11  ;;  %v506_v11 = vadd.f32 %v1079_v37, %v486_v56 }
  0x27   : > { %783 = vmatprep.subr.mxu0 %v303_v12  ;;  %827 = vmatprep.subr.mxu1 %v303_v12 }
  0x28   : > { %784 = vmatpush3.msra.mxu0 %v303_v12  ;;  %843 = vmatpush3.msra.mxu1 %v303_v12  ;;  %v514_v12 = vadd.f32 %v1079_v37, %v494_v57 }
  0x29   : > { %785 = vmatprep.subr.mxu0 %v302_v13  ;;  %828 = vmatprep.subr.mxu1 %v302_v13 }
  0x2a   : > { %786 = vmatpush3.msra.mxu0 %v302_v13  ;;  %844 = vmatpush3.msra.mxu1 %v302_v13 }
  0x2b   : > { %787 = vmatprep.subr.mxu0 %v301_v14  ;;  %829 = vmatprep.subr.mxu1 %v301_v14 }
  0x2c   : > { %788 = vmatpush3.msra.mxu0 %v301_v14  ;;  %845 = vmatpush3.msra.mxu1 %v301_v14 }
  0x2d   : > { %789 = vmatprep.subr.mxu0 %v300_v15  ;;  %830 = vmatprep.subr.mxu1 %v300_v15 }
  0x2e   : > { %790 = vmatpush3.msra.mxu0 %v300_v15  ;;  %846 = vmatpush3.msra.mxu1 %v300_v15 }
  0x2f   : > { %791 = vmatprep.mubr.f32.mxu0 %v284_v16  ;;  %803 = vmatprep.mubr.f32.mxu1 %v292_v17  ;;  %v467_v17 = vld [vmem:[%s1065_s23 + $0x30] sm:$0xff] }
  0x30   : > { %792 = vmatmul.mubr.f32.vlgmr.msra.gmra.mxu0 %v285_v18  ;;  %804 = vmatmul.mubr.f32.vlgmr.msra.gmra.mxu1 %v293_v19  ;;  %v475_v18 = vld [vmem:[%s1065_s23 + $0x70] sm:$0xff]  ;;  %v487_v34 = vmul.f32 %v1070_v32, %v467_v17 }
  0x31   : > { %794 = vmatprep.mubr.f32.mxu0 %v286_v20  ;;  %806 = vmatprep.mubr.f32.mxu1 %v294_v21  ;;  %v505_v21 = vadd.f32 %v1079_v37, %v485_v63  ;;  %v495_v35 = vmul.f32 %v1070_v32, %v475_v18 }
  0x32   : > { %v507_v54 = vadd.f32 %v1079_v37, %v487_v34 }
  0x33   : > { %v515_v55 = vadd.f32 %v1079_v37, %v495_v35 }
  0x34   : > { %795 = vmatmul.mubr.f32.gmra.mxu0 %v287_v22  ;;  %807 = vmatmul.mubr.f32.gmra.mxu1 %v295_v23  ;;  %v513_v22 = vadd.f32 %v1079_v37, %v493_v0  ;;  %v488_v23 = vmul.f32 %v1070_v32, %v468_v5 }
  0x35   : > { %797 = vmatprep.mubr.f32.mxu0 %v288_v24  ;;  %809 = vmatprep.mubr.f32.mxu1 %v296_v25  ;;  %v496_v24 = vmul.f32 %v1070_v32, %v476_v6 }
  0x36   : > { %v508_v45 = vadd.f32 %v1079_v37, %v488_v23 }
  0x37   : > { %v516_v46 = vadd.f32 %v1079_v37, %v496_v24 }
  0x38   : > { %798 = vmatmul.mubr.f32.gmra.mxu0 %v289_v26  ;;  %810 = vmatmul.mubr.f32.gmra.mxu1 %v297_v27 }
  0x39   : > { %800 = vmatprep.mubr.f32.mxu0 %v290_v28  ;;  %812 = vmatprep.mubr.f32.mxu1 %v298_v29 }
  0x3c   : > { %801 = vmatmul.mubr.f32.gmra.mxu0 %v291_v30  ;;  %813 = vmatmul.mubr.f32.gmra.mxu1 %v299_v31 }
  0xf0   : > { %v793_v61 = vpop.f32.mrf.mxu0  ;;  %v805_v62 = vpop.f32.mrf.mxu1 }
  0xf1   : > { %v518_v1 = vadd.f32 %v793_v61, %v502_v48  ;;  %v526_v2 = vadd.f32 %v805_v62, %v510_v49 }
  0xf2   : > { %v382_v7 = vpop.f32.mrf.mxu0  ;;  %v422_v8 = vpop.f32.mrf.mxu1 }
  0xf3   : > { %v538_v13 = vadd.f32 %v1106_v60, %v518_v1  ;;  %v546_v14 = vadd.f32 %v1106_v60, %v526_v2  ;;  %v517_v15 = vadd.f32 %v501_v58, %v382_v7  ;;  %v525_v16 = vadd.f32 %v509_v59, %v422_v8 }
  0xf4   : > { %v796_v19 = vpop.f32.mrf.mxu0  ;;  %v808_v20 = vpop.f32.mrf.mxu1 }
  0xf5   : > { %v554_v25 = vmax.f32 %v538_v13, 0.0  ;;  %v562_v26 = vmax.f32 %v546_v14, 0.0  ;;  %v537_v27 = vadd.f32 %v1106_v60, %v517_v15  ;;  %v545_v28 = vadd.f32 %v1106_v60, %v525_v16 }
  0xf6   : > { %v520_v29 = vadd.f32 %v796_v19, %v504_v3  ;;  %v528_v30 = vadd.f32 %v808_v20, %v512_v4  ;;  %v392_v31 = vpop.f32.mrf.mxu0  ;;  %v432_v33 = vpop.f32.mrf.mxu1 }
  0xf7   : > { %570 = vst [vmem:[%s1126_s16 + $0x8] sm:$0xff] %v554_v25  ;;  %578 = vst [vmem:[%s1126_s16 + $0x48] sm:$0xff] %v562_v26  ;;  %v553_v36 = vmax.f32 %v537_v27, 0.0  ;;  %v561_v38 = vmax.f32 %v545_v28, 0.0  ;;  %v519_v39 = vadd.f32 %v503_v9, %v392_v31  ;;  %v527_v40 = vadd.f32 %v511_v10, %v432_v33 }
  0xf8   : > { %v540_v41 = vadd.f32 %v1106_v60, %v520_v29  ;;  %v548_v42 = vadd.f32 %v1106_v60, %v528_v30  ;;  %v799_v43 = vpop.f32.mrf.mxu0  ;;  %v811_v44 = vpop.f32.mrf.mxu1 }
  0xf9   : > { %569 = vst [vmem:[%s1126_s16] sm:$0xff] %v553_v36  ;;  %577 = vst [vmem:[%s1126_s16 + $0x40] sm:$0xff] %v561_v38  ;;  %v539_v32 = vadd.f32 %v1106_v60, %v519_v39  ;;  %v547_v47 = vadd.f32 %v1106_v60, %v527_v40  ;;  %v522_v48 = vadd.f32 %v799_v43, %v506_v11 }
  0xfa   : > { %v530_v49 = vadd.f32 %v811_v44, %v514_v12  ;;  %v556_v50 = vmax.f32 %v540_v41, 0.0  ;;  %v564_v51 = vmax.f32 %v548_v42, 0.0  ;;  %v402_v52 = vpop.f32.mrf.mxu0  ;;  %v442_v53 = vpop.f32.mrf.mxu1 }
  0xfb   : > { %v555_v56 = vmax.f32 %v539_v32, 0.0  ;;  %v563_v57 = vmax.f32 %v547_v47, 0.0  ;;  %v542_v58 = vadd.f32 %v1106_v60, %v522_v48  ;;  %v521_v61 = vadd.f32 %v505_v21, %v402_v52 }
  0xfc   : > { %v550_v59 = vadd.f32 %v1106_v60, %v530_v49  ;;  %572 = vst [vmem:[%s1126_s16 + $0x18] sm:$0xff] %v556_v50  ;;  %580 = vst [vmem:[%s1126_s16 + $0x58] sm:$0xff] %v564_v51  ;;  %v529_v62 = vadd.f32 %v513_v22, %v442_v53  ;;  %v802_v63 = vpop.f32.mrf.mxu0  ;;  %v814_v0 = vpop.f32.mrf.mxu1 }
  0xfd   : > { %571 = vst [vmem:[%s1126_s16 + $0x10] sm:$0xff] %v555_v56  ;;  %579 = vst [vmem:[%s1126_s16 + $0x50] sm:$0xff] %v563_v57  ;;  %v558_v1 = vmax.f32 %v542_v58, 0.0  ;;  %v524_v3 = vadd.f32 %v802_v63, %v508_v45  ;;  %v532_v37 = vadd.f32 %v814_v0, %v516_v46  ;;  %v541_v4 = vadd.f32 %v1106_v60, %v521_v61 }
  0xfe   : > { %v566_v2 = vmax.f32 %v550_v59, 0.0  ;;  %v549_v5 = vadd.f32 %v1106_v60, %v529_v62  ;;  %v412_v6 = vpop.f32.mrf.mxu0  ;;  %v452_v7 = vpop.f32.mrf.mxu1 }
  0xff   : > { %574 = vst [vmem:[%s1126_s16 + $0x28] sm:$0xff] %v558_v1  ;;  %v544_v8 = vadd.f32 %v1106_v60, %v524_v3  ;;  %v552_v9 = vadd.f32 %v1106_v60, %v532_v37  ;;  %v523_v10 = vadd.f32 %v507_v54, %v412_v6  ;;  %v531_v11 = vadd.f32 %v515_v55, %v452_v7 }
 0x100   : > { %582 = vst [vmem:[%s1126_s16 + $0x68] sm:$0xff] %v566_v2  ;;  %v557_v12 = vmax.f32 %v541_v4, 0.0  ;;  %v565_v13 = vmax.f32 %v549_v5, 0.0 }
 0x101   : > { %v560_v14 = vmax.f32 %v544_v8, 0.0  ;;  %v568_v15 = vmax.f32 %v552_v9, 0.0  ;;  %v543_v16 = vadd.f32 %v1106_v60, %v523_v10  ;;  %v551_v17 = vadd.f32 %v1106_v60, %v531_v11 }
 0x102   : > { %573 = vst [vmem:[%s1126_s16 + $0x20] sm:$0xff] %v557_v12  ;;  %581 = vst [vmem:[%s1126_s16 + $0x60] sm:$0xff] %v565_v13 }
 0x103   : > { %576 = vst [vmem:[%s1126_s16 + $0x38] sm:$0xff] %v560_v14  ;;  %584 = vst [vmem:[%s1126_s16 + $0x78] sm:$0xff] %v568_v15  ;;  %v559_v18 = vmax.f32 %v543_v16, 0.0  ;;  %v567_v19 = vmax.f32 %v551_v17, 0.0 }
 0x105   : > { %575 = vst [vmem:[%s1126_s16 + $0x30] sm:$0xff] %v559_v18  ;;  %583 = vst [vmem:[%s1126_s16 + $0x70] sm:$0xff] %v567_v19 }
 0x106 PF: > { %s14_s19 = sadd.s32 1, %s925_s19   ;;  %s1188_s15 = smov %s917_s17 }
 0x107   : > { %p11_p7 = scmp.ge.s32.totalorder %s14_s19, 6   ;;  %s1189_s16 = smov %s921_s18 }
 0x108   : > { %s1190_s17 = smov %s1193_s20  ;;  %s1191_s18 = smov %s1197_s21 }
 0x109   :  { %13 = sbr.rel (!%p11_p7) target bundleno = 3 (0x3), region = 69 }

// kernel: resnet_block_pallas_nhwc.3
= control target key start
LH: loop header
LB: loop body
LE: loop exit
PB: predicated region body
PF: predicated region fallthrough
CT: control target
= control target key end

     0   :  { %s2512_s21 = smov 0   ;;  %s2514_s22 = smov 0   ;;  %s3540_s0 = inlined_call_operand.vmem [shape: f32[2,16,16,128], index: 0, kind: input, shape index: {}, may-alias: {0,1,2}]   ;;  %s3541_s1 = inlined_call_operand.vmem [shape: f32[2,16,16,128], index: 1, kind: input, shape index: {}, may-alias: {0,1,2}]   ;;  %s3542_s2 = inlined_call_operand.vmem [shape: f32[2,16,16,128], index: 2, kind: input, shape index: {}, may-alias: {0,1,2}]   ;;  %s3543_s3 = inlined_call_operand.vmem [shape: f32[1152,128], index: 3, kind: input, shape index: {}]   ;;  %s3544_s4 = inlined_call_operand.vmem [shape: f32[2,16,16,128], index: 4, kind: output, shape index: {0}]   ;;  %s3545_s5 = inlined_call_operand.vmem [shape: f32[2,2,1,128], index: 5, kind: output, shape index: {1}]   ;;  %s3546_s6 = inlined_call_operand.vmem [shape: f32[2,2,1,128], index: 6, kind: output, shape index: {2}]  }
   0x1   :  { %s2516_s23 = smov 0   ;;  %s2518_s24 = smov 0  }
   0x2   :  { %s2520_s25 = smov 0  }
   0x3 LB: > { %s26_s26 = sadd.s32 1, %s2466_s23  ;;  %s29_s27 = sadd.s32 1, %s2470_s24  ;;  %s2474_s25 = sphi %s2520_s25, %s17_s25   ;;  %s2470_s24 = sphi %s2518_s24, %s3593_s24   ;;  %s2466_s23 = sphi %s2516_s23, %s3592_s23   ;;  %s2462_s22 = sphi %s2514_s22, %s3591_s22   ;;  %s2458_s21 = sphi %s2512_s21, %s3590_s21  }
   0x4   : > { %p27_p0 = scmp.ge.s32.totalorder %s26_s26, 2  ;;  %p1911_p1 = scmp.ge.s32.totalorder %s2474_s25, 1 }
   0x5   : > { %p307_p2 = scmp.lt.s32.totalorder %s2474_s25, 5 }
   0x6   : > { %s3595_s26 = smov (%p27_p0, %s26_s26), 0  ;;  %s3597_s27 = smov (!%p27_p0, %s29_s27), %s2470_s24 }
   0x7   : > { %p308_p3 = pnand %p1911_p1, %p307_p2  ;;  %p31_p4 = scmp.ge.s32.totalorder %s3597_s27, 2 }
   0x9   : > { %s3599_s27 = smov (%p31_p4, %s3597_s27), 0  ;;  %311 = sbr.rel (%p308_p3) target bundleno = 423 (0x1a7), region = 36 }
   0xe   : > { %v764_v0 = vld [vmem:[%s3543_s3 + $0xf8] sm:$0xff]  ;;  %s2556_s10 = sshll.u32 %s2458_s21, 3  ;;  %p388_p5 = scmp.lt.s32.totalorder %s2462_s22, 1  ;;  %v763_v4 = vld [vmem:[%s3543_s3 + $0xf0] sm:$0xff]  ;;  %v2476_v6 = vmov 0.0   ;;  %v762_v9 = vld [vmem:[%s3543_s3 + $0xe8] sm:$0xff] }
   0xf   : > { %v796_v1 = vld [vmem:[%s3543_s3 + $0x1f8] sm:$0xff]  ;;  %1943 = vmatprep.subr.mxu0 %v764_v0  ;;  %v795_v5 = vld [vmem:[%s3543_s3 + $0x1f0] sm:$0xff]  ;;  %p390_p6 = scmp.lt.s32.totalorder %s2556_s10, 15  ;;  %477 = vst [vmem:[#allocation2] sm:$0x1] %v2476_v6  ;;  %s2579_s30 = sadd.s32 4294967295, %s2556_s10 }
  0x10   : > { %v748_v2 = vld [vmem:[%s3543_s3 + $0x78] sm:$0xff]  ;;  %2023 = vmatprep.subr.mxu1 %v796_v1  ;;  %478 = vst [vmem:[#allocation2 + $0x18] sm:$0x1] %v2476_v6  ;;  %479 = vst [vmem:[#allocation2 + $0x30] sm:$0x1] %v2476_v6  ;;  %v747_v7 = vld [vmem:[%s3543_s3 + $0x70] sm:$0xff] }
  0x11   : > { %v780_v3 = vld [vmem:[%s3543_s3 + $0x178] sm:$0xff]  ;;  %480 = vst [vmem:[#allocation2 + $0x48] sm:$0x1] %v2476_v6  ;;  %481 = vst [vmem:[#allocation2 + $0x60] sm:$0x1] %v2476_v6  ;;  %1944 = vmatpush3.msra.mxu0 %v748_v2  ;;  %v779_v8 = vld [vmem:[%s3543_s3 + $0x170] sm:$0xff] }
  0x12   : > { %482 = vst [vmem:[#allocation2 + $0x78] sm:$0x1] %v2476_v6  ;;  %483 = vst [vmem:[#allocation2 + $0x90] sm:$0x1] %v2476_v6  ;;  %2024 = vmatpush3.msra.mxu1 %v780_v3  ;;  %1945 = vmatprep.subr.mxu0 %v763_v4  ;;  %v794_v10 = vld [vmem:[%s3543_s3 + $0x1e8] sm:$0xff]  ;;  %s3601_s22 = smov (!%p388_p5, %s2462_s22), 1 }
  0x13   : > { %484 = vst [vmem:[#allocation2 + $0xa8] sm:$0x1] %v2476_v6  ;;  %485 = vst [vmem:[#allocation2 + $0xc0] sm:$0x1] %v2476_v6  ;;  %2025 = vmatprep.subr.mxu1 %v795_v5  ;;  %v746_v11 = vld [vmem:[%s3543_s3 + $0x68] sm:$0xff]  ;;  %1946 = vmatpush3.msra.mxu0 %v747_v7  ;;  %v761_v13 = vld [vmem:[%s3543_s3 + $0xe0] sm:$0xff] }
  0x14   : > { %486 = vst [vmem:[#allocation2 + $0xd8] sm:$0x1] %v2476_v6  ;;  %487 = vst [vmem:[#allocation2 + $0x11] sm:$0x1] %v2476_v6  ;;  %v778_v12 = vld [vmem:[%s3543_s3 + $0x168] sm:$0xff]  ;;  %2026 = vmatpush3.msra.mxu1 %v779_v8  ;;  %v793_v14 = vld [vmem:[%s3543_s3 + $0x1e0] sm:$0xff]  ;;  %1947 = vmatprep.subr.mxu0 %v762_v9 }
  0x15   : > { %488 = vst [vmem:[#allocation2 + $0x29] sm:$0x1] %v2476_v6  ;;  %489 = vst [vmem:[#allocation2 + $0x41] sm:$0x1] %v2476_v6  ;;  %s2604_s18 = scalar_select %p390_p6, %s2556_s10, 15  ;;  %2027 = vmatprep.subr.mxu1 %v794_v10  ;;  %v745_v15 = vld [vmem:[%s3543_s3 + $0x60] sm:$0xff]  ;;  %1948 = vmatpush3.msra.mxu0 %v746_v11 }
  0x16   : > { %490 = vst [vmem:[#allocation2 + $0x59] sm:$0x1] %v2476_v6  ;;  %491 = vst [vmem:[#allocation2 + $0x71] sm:$0x1] %v2476_v6  ;;  %v777_v16 = vld [vmem:[%s3543_s3 + $0x160] sm:$0xff]  ;;  %p400_p7 = scmp.gt.s32.totalorder %s2579_s30, 0  ;;  %2028 = vmatpush3.msra.mxu1 %v778_v12  ;;  %1949 = vmatprep.subr.mxu0 %v761_v13 }
  0x17   : > { %492 = vst [vmem:[#allocation2 + $0x89] sm:$0x1] %v2476_v6  ;;  %493 = vst [vmem:[#allocation2 + $0xa1] sm:$0x1] %v2476_v6  ;;  %v760_v17 = vld [vmem:[%s3543_s3 + $0xd8] sm:$0xff]  ;;  %p514_p8 = scmp.eq.s32.totalorder %s2458_s21, 0  ;;  %2029 = vmatprep.subr.mxu1 %v793_v14  ;;  %1950 = vmatpush3.msra.mxu0 %v745_v15 }
  0x18   : > { %494 = vst [vmem:[#allocation2 + $0xb9] sm:$0x1] %v2476_v6  ;;  %495 = vst [vmem:[#allocation2 + $0xd1] sm:$0x1] %v2476_v6  ;;  %v792_v18 = vld [vmem:[%s3543_s3 + $0x1d8] sm:$0xff]  ;;  %p1918_p9 = scmp.lt.s32.totalorder %s2579_s30, 15  ;;  %2030 = vmatpush3.msra.mxu1 %v777_v16  ;;  %1951 = vmatprep.subr.mxu0 %v760_v17 }
  0x19   : > { %496 = vst [vmem:[#allocation2 + $0xe9] sm:$0x1] %v2476_v6  ;;  %v744_v19 = vld [vmem:[%s3543_s3 + $0x58] sm:$0xff]  ;;  %v759_v21 = vld [vmem:[%s3543_s3 + $0xd0] sm:$0xff]  ;;  %s1913_s28 = sshll.u32 %s2604_s18, 1  ;;  %s2635_s29 = sshll.u32 %s3601_s22, 5  ;;  %2031 = vmatprep.subr.mxu1 %v792_v18 }
  0x1a   : > { %v776_v20 = vld [vmem:[%s3543_s3 + $0x158] sm:$0xff]  ;;  %v791_v22 = vld [vmem:[%s3543_s3 + $0x1d0] sm:$0xff]  ;;  %s401_s12 = scalar_select %p400_p7, %s2579_s30, 0  ;;  %1952 = vmatpush3.msra.mxu0 %v744_v19  ;;  %v758_v25 = vld [vmem:[%s3543_s3 + $0xc8] sm:$0xff]  ;;  %vm585_vm0 = vcmask 1046528   ;;  %vm642_vm1 = vcmask 1045504  }
  0x1b   : > { %v743_v23 = vld [vmem:[%s3543_s3 + $0x50] sm:$0xff]  ;;  %2032 = vmatpush3.msra.mxu1 %v776_v20  ;;  %v790_v26 = vld [vmem:[%s3543_s3 + $0x1c8] sm:$0xff]  ;;  %1953 = vmatprep.subr.mxu0 %v759_v21  ;;  %v757_v29 = vld [vmem:[%s3543_s3 + $0xc0] sm:$0xff]  ;;  %s2667_s13 = sadd.s32 %s2635_s29, %s1913_s28  ;;  %p522_p10 = scmp.eq.s32.totalorder %s2458_s21, 1 }
  0x1c   : > { %v775_v24 = vld [vmem:[%s3543_s3 + $0x150] sm:$0xff]  ;;  %2033 = vmatprep.subr.mxu1 %v791_v22  ;;  %v742_v27 = vld [vmem:[%s3543_s3 + $0x48] sm:$0xff]  ;;  %s3603_s12 = smov (!%p1918_p9, %s401_s12), 15  ;;  %1954 = vmatpush3.msra.mxu0 %v743_v23  ;;  %v789_v30 = vld [vmem:[%s3543_s3 + $0x1c0] sm:$0xff]  ;;  %s1915_s14 = sshll.u32 %s2667_s13, 3 }
  0x1d   : > { %v774_v28 = vld [vmem:[%s3543_s3 + $0x148] sm:$0xff]  ;;  %2034 = vmatpush3.msra.mxu1 %v775_v24  ;;  %1955 = vmatprep.subr.mxu0 %v758_v25  ;;  %v741_v31 = vld [vmem:[%s3543_s3 + $0x40] sm:$0xff]  ;;  %s1923_s16 = sshll.u32 %s3603_s12, 1  ;;  %v756_v33 = vld [vmem:[%s3543_s3 + $0xb8] sm:$0xff]  ;;  %p445_p12 = scmp.lt.s32.totalorder %s2458_s21, 1 }
  0x1e   : > { %2035 = vmatprep.subr.mxu1 %v790_v26  ;;  %v773_v32 = vld [vmem:[%s3543_s3 + $0x140] sm:$0xff]  ;;  %1956 = vmatpush3.msra.mxu0 %v742_v27  ;;  %v788_v34 = vld [vmem:[%s3543_s3 + $0x1b8] sm:$0xff]  ;;  %s408_s7 = sadd.s32 %s1923_s16, %s2635_s29  ;;  %v755_v37 = vld [vmem:[%s3543_s3 + $0xb0] sm:$0xff]  ;;  %s2730_s16 = scalar_lea.vmem %s3540_s0, %s1915_s14 }
  0x1f   : > { %2036 = vmatpush3.msra.mxu1 %v774_v28  ;;  %1957 = vmatprep.subr.mxu0 %v757_v29  ;;  %v740_v35 = vld [vmem:[%s3543_s3 + $0x38] sm:$0xff]  ;;  %s1925_s18 = sshll.u32 %s408_s7, 3  ;;  %v787_v38 = vld [vmem:[%s3543_s3 + $0x1b0] sm:$0xff]  ;;  %v754_v41 = vld [vmem:[%s3543_s3 + $0xa8] sm:$0xff]  ;;  %s416_s7 = sadd.s32 8, %s2556_s10 }
  0x20   : > { %2037 = vmatprep.subr.mxu1 %v789_v30  ;;  %v772_v36 = vld [vmem:[%s3543_s3 + $0x138] sm:$0xff]  ;;  %1958 = vmatpush3.msra.mxu0 %v741_v31  ;;  %s410_s20 = scalar_lea.vmem %s3541_s1, %s1925_s18  ;;  %v739_v39 = vld [vmem:[%s3543_s3 + $0x30] sm:$0xff]  ;;  %v786_v42 = vld [vmem:[%s3543_s3 + $0x1a8] sm:$0xff]  ;;  %p2861_p11 = scmp.lt.s32.totalorder %s416_s7, 15 }
  0x21   : > { %2038 = vmatpush3.msra.mxu1 %v773_v32  ;;  %1959 = vmatprep.subr.mxu0 %v756_v33  ;;  %v771_v40 = vld [vmem:[%s3543_s3 + $0x130] sm:$0xff]  ;;  %s2425_s11 = scalar_select %p514_p8, 0, 255  ;;  %v738_v43 = vld [vmem:[%s3543_s3 + $0x28] sm:$0xff]  ;;  %v753_v45 = vld [vmem:[%s3543_s3 + $0xa0] sm:$0xff] }
  0x22   : > { %2039 = vmatprep.subr.mxu1 %v788_v34  ;;  %1960 = vmatpush3.msra.mxu0 %v740_v35  ;;  %v770_v44 = vld [vmem:[%s3543_s3 + $0x128] sm:$0xff]  ;;  %v785_v46 = vld [vmem:[%s3543_s3 + $0x1a0] sm:$0xff]  ;;  %v752_v49 = vld [vmem:[%s3543_s3 + $0x98] sm:$0xff]  ;;  %s3605_s7 = smov (!%p2861_p11, %s416_s7), 15  ;;  %s3609_s21 = smov (!%p445_p12, %s2458_s21), 1 }
  0x23   : > { %2040 = vmatpush3.msra.mxu1 %v772_v36  ;;  %1961 = vmatprep.subr.mxu0 %v755_v37  ;;  %v737_v47 = vld [vmem:[%s3543_s3 + $0x20] sm:$0xff]  ;;  %v2429_v51 = vld [vmem:[%s410_s20 + $0x8] sm:%s2425_s11]  ;;  %v784_v52 = vld [vmem:[%s3543_s3 + $0x198] sm:$0xff]  ;;  %s3607_s7 = smov (!%p2861_p11, %s3605_s7), 15  ;;  %s1937_s13 = sshll.u32 %s3601_s22, 1 }
  0x24   : > { %2041 = vmatprep.subr.mxu1 %v787_v38  ;;  %1962 = vmatpush3.msra.mxu0 %v739_v39  ;;  %v769_v48 = vld [vmem:[%s3543_s3 + $0x120] sm:$0xff]  ;;  %v736_v53 = vld [vmem:[%s3543_s3 + $0x18] sm:$0xff]  ;;  %521 = vst [vmem:[#allocation2 + $0x9] sm:$0xff] %v2429_v51  ;;  %v751_v56 = vld [vmem:[%s3543_s3 + $0x90] sm:$0xff]  ;;  %s2958_s10 = sshll.u32 %s3607_s7, 1 }
  0x25   : > { %2042 = vmatpush3.msra.mxu1 %v771_v40  ;;  %1963 = vmatprep.subr.mxu0 %v754_v41  ;;  %v2426_v50 = vld [vmem:[%s410_s20] sm:%s2425_s11]  ;;  %v768_v55 = vld [vmem:[%s3543_s3 + $0x118] sm:$0xff]  ;;  %v458_v57 = vld [vmem:[%s2730_s16 + $0x8] sm:$0xff]  ;;  %s425_s7 = sadd.s32 %s2958_s10, %s2635_s29 }
  0x26   : > { %2043 = vmatprep.subr.mxu1 %v786_v42  ;;  %1964 = vmatpush3.msra.mxu0 %v738_v43  ;;  %520 = vst [vmem:[#allocation2 + $0x1] sm:$0xff] %v2426_v50  ;;  %v457_v54 = vld [vmem:[%s2730_s16] sm:$0xff]  ;;  %v783_v58 = vld [vmem:[%s3543_s3 + $0x190] sm:$0xff]  ;;  %499 = vst [vmem:[#allocation2 + $0x21] sm:$0xff] %v458_v57  ;;  %s1932_s19 = sshll.u32 %s425_s7, 3 }
  0x27   : > { %2044 = vmatpush3.msra.mxu1 %v770_v44  ;;  %1965 = vmatprep.subr.mxu0 %v753_v45  ;;  %498 = vst [vmem:[#allocation2 + $0x19] sm:$0xff] %v457_v54  ;;  %v735_v59 = vld [vmem:[%s3543_s3 + $0x10] sm:$0xff]  ;;  %v750_v62 = vld [vmem:[%s3543_s3 + $0x88] sm:$0xff]  ;;  %v460_v63 = vld [vmem:[%s2730_s16 + $0x18] sm:$0xff]  ;;  %s2431_s10 = scalar_select %p522_p10, 0, 255 }
  0x28   : > { %2045 = vmatprep.subr.mxu1 %v785_v46  ;;  %1966 = vmatpush3.msra.mxu0 %v737_v47  ;;  %v459_v60 = vld [vmem:[%s2730_s16 + $0x10] sm:$0xff]  ;;  %v782_v0 = vld [vmem:[%s3543_s3 + $0x188] sm:$0xff]  ;;  %501 = vst [vmem:[#allocation2 + $0x39] sm:$0xff] %v460_v63  ;;  %v461_v2 = vld [vmem:[%s2730_s16 + $0x20] sm:$0xff]  ;;  %s427_s15 = scalar_lea.vmem %s3542_s2, %s1932_s19 }
  0x29   : > { %2046 = vmatpush3.msra.mxu1 %v769_v48  ;;  %1967 = vmatprep.subr.mxu0 %v752_v49  ;;  %v767_v61 = vld [vmem:[%s3543_s3 + $0x110] sm:$0xff]  ;;  %500 = vst [vmem:[#allocation2 + $0x31] sm:$0xff] %v459_v60  ;;  %v734_v1 = vld [vmem:[%s3543_s3 + $0x8] sm:$0xff]  ;;  %v749_v4 = vld [vmem:[%s3543_s3 + $0x80] sm:$0xff] }
  0x2a   : > { %2047 = vmatprep.subr.mxu1 %v784_v52  ;;  %1968 = vmatpush3.msra.mxu0 %v736_v53  ;;  %v766_v3 = vld [vmem:[%s3543_s3 + $0x108] sm:$0xff]  ;;  %v781_v5 = vld [vmem:[%s3543_s3 + $0x180] sm:$0xff]  ;;  %502 = vst [vmem:[#allocation2 + $0x49] sm:$0xff] %v461_v2  ;;  %v828_v22 = vld [vmem:[%s3543_s3 + $0x2f8] sm:$0xff] }
  0x2b   : > { %2048 = vmatpush3.msra.mxu1 %v768_v55  ;;  %1969 = vmatprep.subr.mxu0 %v751_v56  ;;  %v733_v6 = vld [vmem:[%s3543_s3] sm:$0xff]  ;;  %v462_v8 = vld [vmem:[%s2730_s16 + $0x28] sm:$0xff]  ;;  %v533_v11 = vld [vmem:[#allocation2 + $0x10] sm:$0x3] }
  0x2c   : > { %2049 = vmatprep.subr.mxu1 %v783_v58  ;;  %1970 = vmatpush3.msra.mxu0 %v735_v59  ;;  %v765_v7 = vld [vmem:[%s3543_s3 + $0x100] sm:$0xff]  ;;  %503 = vst [vmem:[#allocation2 + $0x51] sm:$0xff] %v462_v8  ;;  %v589_v17 = vrot.slane %v533_v11, 1  ;;  %v646_v19 = vrot.slane %v533_v11, 2  ;;  %v463_v25 = vld [vmem:[%s2730_s16 + $0x30] sm:$0xff]  ;;  %v812_v26 = vld [vmem:[%s3543_s3 + $0x278] sm:$0xff] }
  0x2d   : > { %2050 = vmatpush3.msra.mxu1 %v767_v61  ;;  %1971 = vmatprep.subr.mxu0 %v750_v62  ;;  %v531_v9 = vld [vmem:[#allocation2] sm:$0xff]  ;;  %v532_v10 = vld [vmem:[#allocation2 + $0x8] sm:$0xff]  ;;  %504 = vst [vmem:[#allocation2 + $0x61] sm:$0xff] %v463_v25  ;;  %v827_v29 = vld [vmem:[%s3543_s3 + $0x2f0] sm:$0xff] }
  0x2e   : > { %2051 = vmatprep.subr.mxu1 %v782_v0  ;;  %1972 = vmatpush3.msra.mxu0 %v734_v1  ;;  %v586_v12 = vrot.slane %v531_v9, 1  ;;  %v587_v13 = vrot.slane %v532_v10, 1  ;;  %v2792_v14 = vld [vmem:[#allocation2 + $0x18] sm:$0xff]  ;;  %v643_v15 = vrot.slane %v531_v9, 2  ;;  %v644_v16 = vrot.slane %v532_v10, 2  ;;  %v2794_v18 = vld [vmem:[#allocation2 + $0x20] sm:$0xff] }
  0x2f   : > { %2052 = vmatpush3.msra.mxu1 %v766_v3  ;;  %1973 = vmatprep.subr.mxu0 %v749_v4  ;;  %v591_v23 = vrot.slane %v2792_v14, 1  ;;  %v592_v24 = vrot.slane %v2794_v18, 1  ;;  %v536_v28 = vld [vmem:[#allocation2 + $0x28] sm:$0x3]  ;;  %v860_v30 = vld [vmem:[%s3543_s3 + $0x3f8] sm:$0xff]  ;;  %v648_v32 = vrot.slane %v2792_v14, 2 }
  0x30   : > { %2053 = vmatprep.subr.mxu1 %v781_v5  ;;  %1974 = vmatpush3.msra.mxu0 %v733_v6  ;;  %v588_v20 = vsel %vm585_vm0, %v586_v12, %v587_v13  ;;  %v645_v21 = vsel %vm642_vm1, %v643_v15, %v644_v16  ;;  %v590_v27 = vsel %vm585_vm0, %v587_v13, %v589_v17  ;;  %v649_v33 = vrot.slane %v2794_v18, 2  ;;  %v464_v34 = vld [vmem:[%s2730_s16 + $0x38] sm:$0xff]  ;;  %v811_v35 = vld [vmem:[%s3543_s3 + $0x270] sm:$0xff]  ;;  %v826_v39 = vld [vmem:[%s3543_s3 + $0x2e8] sm:$0xff] }
  0x31   : > { %2054 = vmatpush3.msra.mxu1 %v765_v7  ;;  %941 = vmatprep.mubr.f32.mxu0 %v588_v20  ;;  %v647_v31 = vsel %vm642_vm1, %v644_v16, %v646_v19  ;;  %v2824_v36 = vsel %vm585_vm0, %v591_v23, %v592_v24  ;;  %v594_v37 = vrot.slane %v536_v28, 1  ;;  %505 = vst [vmem:[#allocation2 + $0x69] sm:$0xff] %v464_v34  ;;  %v2826_v38 = vld [vmem:[#allocation2 + $0x30] sm:$0xff]  ;;  %v2831_v40 = vld [vmem:[#allocation2 + $0x38] sm:$0xff]  ;;  %v810_v41 = vld [vmem:[%s3543_s3 + $0x268] sm:$0xff]  ;;  %v651_v45 = vrot.slane %v536_v28, 2 }
  0x32   : > { %1086 = vmatprep.mubr.f32.mxu1 %v2792_v14  ;;  %942 = vmatmul.mubr.f32.vlgmr.msra.gmra.mxu0 %v531_v9  ;;  %v844_v42 = vld [vmem:[%s3543_s3 + $0x378] sm:$0xff]  ;;  %v465_v43 = vld [vmem:[%s2730_s16 + $0x40] sm:$0xff]  ;;  %v2843_v44 = vsel %vm642_vm1, %v648_v32, %v649_v33  ;;  %v466_v46 = vld [vmem:[%s2730_s16 + $0x48] sm:$0xff]  ;;  %v596_v49 = vrot.slane %v2826_v38, 1  ;;  %v597_v50 = vrot.slane %v2831_v40, 1  ;;  %v653_v57 = vrot.slane %v2826_v38, 2 }
  0x33   : > { %1087 = vmatmul.mubr.f32.vlgmr.msra.gmra.mxu1 %v645_v21  ;;  %2103 = vmatprep.subr.mxu0 %v828_v22  ;;  %506 = vst [vmem:[#allocation2 + $0x79] sm:$0xff] %v465_v43  ;;  %v2848_v47 = vsel %vm585_vm0, %v592_v24, %v594_v37  ;;  %v825_v48 = vld [vmem:[%s3543_s3 + $0x2e0] sm:$0xff]  ;;  %507 = vst [vmem:[#allocation2 + $0x81] sm:$0xff] %v466_v46  ;;  %v859_v52 = vld [vmem:[%s3543_s3 + $0x3f0] sm:$0xff]  ;;  %v2876_v56 = vsel %vm642_vm1, %v649_v33, %v651_v45  ;;  %v654_v58 = vrot.slane %v2831_v40, 2 }
  0x34   : > { %946 = vmatprep.mubr.f32.mxu0 %v590_v27  ;;  %2104 = vmatpush3.msra.mxu0 %v812_v26  ;;  %v539_v51 = vld [vmem:[#allocation2 + $0x40] sm:$0x3]  ;;  %v467_v53 = vld [vmem:[%s2730_s16 + $0x50] sm:$0xff]  ;;  %v2881_v59 = vsel %vm585_vm0, %v596_v49, %v597_v50  ;;  %v2883_v60 = vld [vmem:[#allocation2 + $0x48] sm:$0xff] }
  0x35   : > { %1091 = vmatprep.mubr.f32.mxu1 %v2794_v18  ;;  %2105 = vmatprep.subr.mxu0 %v827_v29  ;;  %v809_v54 = vld [vmem:[%s3543_s3 + $0x260] sm:$0xff]  ;;  %v843_v55 = vld [vmem:[%s3543_s3 + $0x370] sm:$0xff]  ;;  %508 = vst [vmem:[#allocation2 + $0x91] sm:$0xff] %v467_v53  ;;  %v599_v61 = vrot.slane %v539_v51, 1  ;;  %v468_v62 = vld [vmem:[%s2730_s16 + $0x58] sm:$0xff]  ;;  %v2912_v5 = vsel %vm642_vm1, %v653_v57, %v654_v58  ;;  %v656_v6 = vrot.slane %v539_v51, 2 }
  0x36   : > { %2183 = vmatprep.subr.mxu1 %v860_v30  ;;  %947 = vmatmul.mubr.f32.gmra.mxu0 %v532_v10  ;;  %v824_v63 = vld [vmem:[%s3543_s3 + $0x2d8] sm:$0xff]  ;;  %v2889_v0 = vld [vmem:[#allocation2 + $0x50] sm:$0xff]  ;;  %v858_v1 = vld [vmem:[%s3543_s3 + $0x3e8] sm:$0xff]  ;;  %509 = vst [vmem:[#allocation2 + $0x99] sm:$0xff] %v468_v62  ;;  %v601_v9 = vrot.slane %v2883_v60, 1  ;;  %v658_v17 = vrot.slane %v2883_v60, 2 }
  0x37   : > { %1092 = vmatmul.mubr.f32.gmra.mxu1 %v647_v31  ;;  %2106 = vmatpush3.msra.mxu0 %v811_v35  ;;  %v808_v2 = vld [vmem:[%s3543_s3 + $0x258] sm:$0xff]  ;;  %v842_v3 = vld [vmem:[%s3543_s3 + $0x368] sm:$0xff]  ;;  %v469_v4 = vld [vmem:[%s2730_s16 + $0x60] sm:$0xff]  ;;  %v2915_v7 = vsel %vm585_vm0, %v597_v50, %v599_v61  ;;  %v602_v10 = vrot.slane %v2889_v0, 1  ;;  %v2940_v16 = vsel %vm642_vm1, %v654_v58, %v656_v6 }
  0x38   : > { %951 = vmatprep.mubr.f32.mxu0 %v2824_v36  ;;  %1096 = vmatprep.mubr.f32.mxu1 %v2826_v38  ;;  %510 = vst [vmem:[#allocation2 + $0xa9] sm:$0xff] %v469_v4  ;;  %v823_v8 = vld [vmem:[%s3543_s3 + $0x2d0] sm:$0xff]  ;;  %v542_v11 = vld [vmem:[#allocation2 + $0x58] sm:$0x3]  ;;  %v857_v12 = vld [vmem:[%s3543_s3 + $0x3e0] sm:$0xff] }
  0x39   : > { %2107 = vmatprep.subr.mxu0 %v826_v39  ;;  %2184 = vmatpush3.msra.mxu1 %v844_v42  ;;  %v470_v13 = vld [vmem:[%s2730_s16 + $0x68] sm:$0xff]  ;;  %v841_v15 = vld [vmem:[%s3543_s3 + $0x360] sm:$0xff]  ;;  %v2945_v19 = vsel %vm585_vm0, %v601_v9, %v602_v10  ;;  %v604_v21 = vrot.slane %v542_v11, 1  ;;  %v471_v22 = vld [vmem:[%s2730_s16 + $0x70] sm:$0xff]  ;;  %v661_v29 = vrot.slane %v542_v11, 2 }
  0x3a   : > { %2108 = vmatpush3.msra.mxu0 %v810_v41  ;;  %2185 = vmatprep.subr.mxu1 %v859_v52  ;;  %511 = vst [vmem:[#allocation2 + $0xb1] sm:$0xff] %v470_v13  ;;  %v2947_v20 = vld [vmem:[#allocation2 + $0x60] sm:$0xff]  ;;  %v822_v23 = vld [vmem:[%s3543_s3 + $0x2c8] sm:$0xff]  ;;  %v856_v25 = vld [vmem:[%s3543_s3 + $0x3d8] sm:$0xff] }
  0x3b   : > { %952 = vmatmul.mubr.f32.gmra.mxu0 %v2792_v14  ;;  %1097 = vmatmul.mubr.f32.gmra.mxu1 %v2843_v44  ;;  %v807_v14 = vld [vmem:[%s3543_s3 + $0x250] sm:$0xff]  ;;  %v2953_v24 = vld [vmem:[#allocation2 + $0x68] sm:$0xff]  ;;  %512 = vst [vmem:[#allocation2 + $0xc1] sm:$0xff] %v471_v22  ;;  %v840_v27 = vld [vmem:[%s3543_s3 + $0x358] sm:$0xff]  ;;  %v2975_v31 = vsel %vm585_vm0, %v602_v10, %v604_v21  ;;  %v606_v32 = vrot.slane %v2947_v20, 1  ;;  %v663_v43 = vrot.slane %v2947_v20, 2 }
  0x3c   : > { %956 = vmatprep.mubr.f32.mxu0 %v2848_v47  ;;  %1101 = vmatprep.mubr.f32.mxu1 %v2831_v40  ;;  %v806_v26 = vld [vmem:[%s3543_s3 + $0x248] sm:$0xff]  ;;  %v472_v30 = vld [vmem:[%s2730_s16 + $0x78] sm:$0xff]  ;;  %v607_v33 = vrot.slane %v2953_v24, 1  ;;  %v821_v34 = vld [vmem:[%s3543_s3 + $0x2c0] sm:$0xff]  ;;  %v664_v45 = vrot.slane %v2953_v24, 2 }
  0x3d   : > { %2109 = vmatprep.subr.mxu0 %v825_v48  ;;  %2186 = vmatpush3.msra.mxu1 %v843_v55  ;;  %513 = vst [vmem:[#allocation2 + $0xc9] sm:$0xff] %v472_v30  ;;  %v545_v35 = vld [vmem:[#allocation2 + $0x70] sm:$0x3]  ;;  %v805_v39 = vld [vmem:[%s3543_s3 + $0x240] sm:$0xff]  ;;  %v3005_v48 = vld [vmem:[#allocation2 + $0x78] sm:$0xff] }
  0x3e   : > { %2110 = vmatpush3.msra.mxu0 %v809_v54  ;;  %2187 = vmatprep.subr.mxu1 %v858_v1  ;;  %v855_v37 = vld [vmem:[%s3543_s3 + $0x3d0] sm:$0xff]  ;;  %v3003_v46 = vsel %vm585_vm0, %v606_v32, %v607_v33  ;;  %v609_v49 = vrot.slane %v545_v35, 1  ;;  %v820_v50 = vld [vmem:[%s3543_s3 + $0x2b8] sm:$0xff]  ;;  %v3012_v51 = vld [vmem:[#allocation2 + $0x80] sm:$0xff]  ;;  %v3031_v55 = vsel %vm642_vm1, %v663_v43, %v664_v45  ;;  %v666_v57 = vrot.slane %v545_v35, 2 }
  0x3f   : > { %957 = vmatmul.mubr.f32.gmra.mxu0 %v2794_v18  ;;  %1102 = vmatmul.mubr.f32.gmra.mxu1 %v2876_v56  ;;  %v659_v18 = vrot.slane %v2889_v0, 2  ;;  %v839_v41 = vld [vmem:[%s3543_s3 + $0x350] sm:$0xff]  ;;  %v854_v52 = vld [vmem:[%s3543_s3 + $0x3c8] sm:$0xff]  ;;  %v804_v53 = vld [vmem:[%s3543_s3 + $0x238] sm:$0xff]  ;;  %v611_v62 = vrot.slane %v3005_v48, 1  ;;  %v668_v10 = vrot.slane %v3005_v48, 2 }
  0x40   : > { %961 = vmatprep.mubr.f32.mxu0 %v2881_v59  ;;  %1106 = vmatprep.mubr.f32.mxu1 %v2883_v60  ;;  %v838_v54 = vld [vmem:[%s3543_s3 + $0x348] sm:$0xff]  ;;  %v3034_v58 = vsel %vm585_vm0, %v607_v33, %v609_v49  ;;  %v819_v61 = vld [vmem:[%s3543_s3 + $0x2b0] sm:$0xff]  ;;  %v853_v1 = vld [vmem:[%s3543_s3 + $0x3c0] sm:$0xff]  ;;  %v3055_v9 = vsel %vm642_vm1, %v664_v45, %v666_v57  ;;  %v669_v11 = vrot.slane %v3012_v51, 2 }
  0x41   : > { %2111 = vmatprep.subr.mxu0 %v824_v63  ;;  %2188 = vmatpush3.msra.mxu1 %v842_v3  ;;  %v2971_v28 = vsel %vm642_vm1, %v658_v17, %v659_v18  ;;  %v2998_v42 = vsel %vm642_vm1, %v659_v18, %v661_v29  ;;  %v612_v63 = vrot.slane %v3012_v51, 1  ;;  %v2432_v3 = vld [vmem:[%s427_s15] sm:%s2431_s10]  ;;  %v2435_v4 = vld [vmem:[%s427_s15 + $0x8] sm:%s2431_s10]  ;;  %v3062_v13 = vld [vmem:[#allocation2 + $0x90] sm:$0xff]  ;;  %s3449_s10 = scalar_lea.vmem %s3544_s4, %s1915_s14  ;;  %s448_s14 = sadd.s32 %s1937_s13, %s3609_s21 }
  0x42   : > { %2112 = vmatpush3.msra.mxu0 %v808_v2  ;;  %2189 = vmatprep.subr.mxu1 %v857_v12  ;;  %v548_v2 = vld [vmem:[#allocation2 + $0x88] sm:$0x3]  ;;  %v803_v6 = vld [vmem:[%s3543_s3 + $0x230] sm:$0xff]  ;;  %529 = vst [vmem:[#allocation2 + $0xd9] sm:$0xff] %v2432_v3  ;;  %530 = vst [vmem:[#allocation2 + $0xe1] sm:$0xff] %v2435_v4  ;;  %s449_s30 = scalar_lea.vmem %s3545_s5, %s448_s14  ;;  %s456_s15 = scalar_lea.vmem %s3546_s6, %s448_s14 }
  0x43   : > { %962 = vmatmul.mubr.f32.gmra.mxu0 %v2826_v38  ;;  %1107 = vmatmul.mubr.f32.gmra.mxu1 %v2912_v5  ;;  %v3060_v12 = vsel %vm585_vm0, %v611_v62, %v612_v63  ;;  %v3067_v17 = vld [vmem:[#allocation2 + $0x98] sm:$0xff]  ;;  %v802_v21 = vld [vmem:[%s3543_s3 + $0x228] sm:$0xff]  ;;  %v817_v30 = vld [vmem:[%s3543_s3 + $0x2a0] sm:$0xff] }
  0x44   : > { %966 = vmatprep.mubr.f32.mxu0 %v2915_v7  ;;  %1111 = vmatprep.mubr.f32.mxu1 %v2889_v0  ;;  %v852_v18 = vld [vmem:[%s3543_s3 + $0x3b8] sm:$0xff]  ;;  %v617_v29 = vrot.slane %v3067_v17, 1  ;;  %v851_v32 = vld [vmem:[%s3543_s3 + $0x3b0] sm:$0xff]  ;;  %v551_v33 = vld [vmem:[#allocation2 + $0xa0] sm:$0x3] }
  0x45   : > { %2113 = vmatprep.subr.mxu0 %v823_v8  ;;  %2190 = vmatpush3.msra.mxu1 %v841_v15  ;;  %v837_v8 = vld [vmem:[%s3543_s3 + $0x340] sm:$0xff]  ;;  %v818_v15 = vld [vmem:[%s3543_s3 + $0x2a8] sm:$0xff]  ;;  %v836_v22 = vld [vmem:[%s3543_s3 + $0x338] sm:$0xff]  ;;  %v619_v49 = vrot.slane %v551_v33, 1  ;;  %v676_v62 = vrot.slane %v551_v33, 2 }
  0x46   : > { %2114 = vmatpush3.msra.mxu0 %v807_v14  ;;  %2191 = vmatprep.subr.mxu1 %v856_v25  ;;  %v614_v14 = vrot.slane %v548_v2, 1  ;;  %v671_v25 = vrot.slane %v548_v2, 2  ;;  %v835_v35 = vld [vmem:[%s3543_s3 + $0x330] sm:$0xff]  ;;  %v3114_v45 = vld [vmem:[#allocation2 + $0xa8] sm:$0xff]  ;;  %v849_v4 = vld [vmem:[%s3543_s3 + $0x3a0] sm:$0xff] }
  0x47   : > { %967 = vmatmul.mubr.f32.gmra.mxu0 %v2831_v40  ;;  %1112 = vmatmul.mubr.f32.gmra.mxu1 %v2940_v16  ;;  %v834_v57 = vld [vmem:[%s3543_s3 + $0x328] sm:$0xff]  ;;  %v815_v3 = vld [vmem:[%s3543_s3 + $0x290] sm:$0xff] }
  0x48   : > { %971 = vmatprep.mubr.f32.mxu0 %v2945_v19  ;;  %1116 = vmatprep.mubr.f32.mxu1 %v2947_v20 }
  0x49   : > { %2115 = vmatprep.subr.mxu0 %v822_v23  ;;  %2192 = vmatpush3.msra.mxu1 %v840_v27  ;;  %v3083_v23 = vsel %vm642_vm1, %v668_v10, %v669_v11  ;;  %v616_v27 = vrot.slane %v3062_v13, 1  ;;  %v833_v10 = vld [vmem:[%s3543_s3 + $0x320] sm:$0xff] }
  0x4a   : > { %2116 = vmatpush3.msra.mxu0 %v806_v26  ;;  %2193 = vmatprep.subr.mxu1 %v855_v37  ;;  %v3086_v26 = vsel %vm585_vm0, %v612_v63, %v614_v14  ;;  %v3107_v37 = vsel %vm642_vm1, %v669_v11, %v671_v25  ;;  %v3138_v63 = vsel %vm585_vm0, %v617_v29, %v619_v49  ;;  %v678_v14 = vrot.slane %v3114_v45, 2  ;;  %v814_v25 = vld [vmem:[%s3543_s3 + $0x288] sm:$0xff]  ;;  %v813_v49 = vld [vmem:[%s3543_s3 + $0x280] sm:$0xff] }
  0x4b   : > { %972 = vmatmul.mubr.f32.gmra.mxu0 %v2883_v60  ;;  %1117 = vmatmul.mubr.f32.gmra.mxu1 %v2971_v28  ;;  %v3112_v43 = vsel %vm585_vm0, %v616_v27, %v617_v29  ;;  %v848_v27 = vld [vmem:[%s3543_s3 + $0x398] sm:$0xff]  ;;  %v798_v29 = vld [vmem:[%s3543_s3 + $0x208] sm:$0xff] }
  0x4c   : > { %976 = vmatprep.mubr.f32.mxu0 %v2975_v31  ;;  %1121 = vmatprep.mubr.f32.mxu1 %v2953_v24 }
  0x4d   : > { %2117 = vmatprep.subr.mxu0 %v821_v34  ;;  %2194 = vmatpush3.msra.mxu1 %v839_v41  ;;  %v801_v34 = vld [vmem:[%s3543_s3 + $0x220] sm:$0xff]  ;;  %v674_v41 = vrot.slane %v3067_v17, 2 }
  0x4e   : > { %2118 = vmatpush3.msra.mxu0 %v805_v39  ;;  %2195 = vmatprep.subr.mxu1 %v854_v52  ;;  %v673_v39 = vrot.slane %v3062_v13, 2  ;;  %v3119_v52 = vld [vmem:[#allocation2 + $0xb0] sm:$0xff] }
  0x4f   : > { %977 = vmatmul.mubr.f32.gmra.mxu0 %v2889_v0  ;;  %1122 = vmatmul.mubr.f32.gmra.mxu1 %v2998_v42  ;;  %v622_v2 = vrot.slane %v3119_v52, 1  ;;  %v3159_v11 = vsel %vm642_vm1, %v674_v41, %v676_v62  ;;  %v845_v62 = vld [vmem:[%s3543_s3 + $0x380] sm:$0xff] }
  0x50   : > { %981 = vmatprep.mubr.f32.mxu0 %v3003_v46  ;;  %1126 = vmatprep.mubr.f32.mxu1 %v3005_v48 }
  0x51   : > { %2119 = vmatprep.subr.mxu0 %v820_v50  ;;  %2196 = vmatpush3.msra.mxu1 %v838_v54  ;;  %v816_v50 = vld [vmem:[%s3543_s3 + $0x298] sm:$0xff] }
  0x52   : > { %2120 = vmatpush3.msra.mxu0 %v804_v53  ;;  %2197 = vmatprep.subr.mxu1 %v853_v1  ;;  %v850_v53 = vld [vmem:[%s3543_s3 + $0x3a8] sm:$0xff]  ;;  %v800_v54 = vld [vmem:[%s3543_s3 + $0x218] sm:$0xff]  ;;  %v621_v1 = vrot.slane %v3114_v45, 1 }
  0x53   : > { %982 = vmatmul.mubr.f32.gmra.mxu0 %v2947_v20  ;;  %1127 = vmatmul.mubr.f32.gmra.mxu1 %v3031_v55 }
  0x54   : > { %986 = vmatprep.mubr.f32.mxu0 %v3034_v58  ;;  %1131 = vmatprep.mubr.f32.mxu1 %v3012_v51 }
  0x55   : > { %2121 = vmatprep.subr.mxu0 %v819_v61  ;;  %2198 = vmatpush3.msra.mxu1 %v837_v8  ;;  %v3135_v61 = vsel %vm642_vm1, %v673_v39, %v674_v41  ;;  %v799_v8 = vld [vmem:[%s3543_s3 + $0x210] sm:$0xff]  ;;  %v3193_v39 = vld [vmem:[#allocation2 + $0xc8] sm:$0xff] }
  0x56   : > { %2122 = vmatpush3.msra.mxu0 %v803_v6  ;;  %2199 = vmatprep.subr.mxu1 %v852_v18  ;;  %v554_v6 = vld [vmem:[#allocation2 + $0xb8] sm:$0x3]  ;;  %v3164_v18 = vsel %vm585_vm0, %v621_v1, %v622_v2  ;;  %v831_v41 = vld [vmem:[%s3543_s3 + $0x310] sm:$0xff]  ;;  %v829_v1 = vld [vmem:[%s3543_s3 + $0x300] sm:$0xff] }
  0x57   : > { %987 = vmatmul.mubr.f32.gmra.mxu0 %v2953_v24  ;;  %1132 = vmatmul.mubr.f32.gmra.mxu1 %v3055_v9  ;;  %v681_v33 = vrot.slane %v554_v6, 2 }
  0x58   : > { %991 = vmatprep.mubr.f32.mxu0 %v3060_v12  ;;  %1136 = vmatprep.mubr.f32.mxu1 %v3062_v13 }
  0x59   : > { %2123 = vmatprep.subr.mxu0 %v818_v15  ;;  %2200 = vmatpush3.msra.mxu1 %v836_v22  ;;  %v679_v15 = vrot.slane %v3119_v52, 2  ;;  %v624_v22 = vrot.slane %v554_v6, 1 }
  0x5a   : > { %2124 = vmatpush3.msra.mxu0 %v802_v21  ;;  %2201 = vmatprep.subr.mxu1 %v851_v32  ;;  %v3166_v21 = vld [vmem:[#allocation2 + $0xc0] sm:$0xff] }
  0x5b   : > { %992 = vmatmul.mubr.f32.gmra.mxu0 %v3005_v48  ;;  %1137 = vmatmul.mubr.f32.gmra.mxu1 %v3083_v23  ;;  %v3185_v32 = vsel %vm642_vm1, %v678_v14, %v679_v15 }
  0x5c   : > { %996 = vmatprep.mubr.f32.mxu0 %v3086_v26  ;;  %1141 = vmatprep.mubr.f32.mxu1 %v3067_v17 }
  0x5d   : > { %2125 = vmatprep.subr.mxu0 %v817_v30  ;;  %2202 = vmatpush3.msra.mxu1 %v835_v35  ;;  %v832_v30 = vld [vmem:[%s3543_s3 + $0x318] sm:$0xff]  ;;  %v3191_v35 = vsel %vm585_vm0, %v622_v2, %v624_v22 }
  0x5e   : > { %2126 = vmatpush3.msra.mxu0 %v801_v34  ;;  %2203 = vmatprep.subr.mxu1 %v850_v53  ;;  %v847_v34 = vld [vmem:[%s3543_s3 + $0x390] sm:$0xff]  ;;  %v3208_v53 = vsel %vm642_vm1, %v679_v15, %v681_v33  ;;  %v876_v2 = vld [vmem:[%s3543_s3 + $0x478] sm:$0xff] }
  0x5f   : > { %997 = vmatmul.mubr.f32.gmra.mxu0 %v3012_v51  ;;  %1142 = vmatmul.mubr.f32.gmra.mxu1 %v3107_v37 }
  0x60   : > { %1001 = vmatprep.mubr.f32.mxu0 %v3112_v43  ;;  %1146 = vmatprep.mubr.f32.mxu1 %v3114_v45 }
  0x61   : > { %2127 = vmatprep.subr.mxu0 %v816_v50  ;;  %2204 = vmatpush3.msra.mxu1 %v834_v57  ;;  %v846_v50 = vld [vmem:[%s3543_s3 + $0x388] sm:$0xff] }
  0x62   : > { %2128 = vmatpush3.msra.mxu0 %v800_v54  ;;  %2205 = vmatprep.subr.mxu1 %v849_v4  ;;  %v797_v54 = vld [vmem:[%s3543_s3 + $0x200] sm:$0xff]  ;;  %v830_v57 = vld [vmem:[%s3543_s3 + $0x308] sm:$0xff] }
  0x63   : > { %1002 = vmatmul.mubr.f32.gmra.mxu0 %v3062_v13  ;;  %1147 = vmatmul.mubr.f32.gmra.mxu1 %v3135_v61 }
  0x64   : > { %1006 = vmatprep.mubr.f32.mxu0 %v3138_v63  ;;  %1151 = vmatprep.mubr.f32.mxu1 %v3119_v52 }
  0x65   : > { %2129 = vmatprep.subr.mxu0 %v815_v3  ;;  %2206 = vmatpush3.msra.mxu1 %v833_v10  ;;  %v875_v3 = vld [vmem:[%s3543_s3 + $0x470] sm:$0xff] }
  0x66   : > { %2130 = vmatpush3.msra.mxu0 %v799_v8  ;;  %2207 = vmatprep.subr.mxu1 %v848_v27  ;;  %v862_v8 = vld [vmem:[%s3543_s3 + $0x408] sm:$0xff] }
  0x67   : > { %1007 = vmatmul.mubr.f32.gmra.mxu0 %v3067_v17  ;;  %1152 = vmatmul.mubr.f32.gmra.mxu1 %v3159_v11 }
  0x68   : > { %1011 = vmatprep.mubr.f32.mxu0 %v3164_v18  ;;  %1156 = vmatprep.mubr.f32.mxu1 %v3166_v21 }
  0x69   : > { %2131 = vmatprep.subr.mxu0 %v814_v25  ;;  %2208 = vmatpush3.msra.mxu1 %v832_v30 }
  0x6a   : > { %2132 = vmatpush3.msra.mxu0 %v798_v29  ;;  %2209 = vmatprep.subr.mxu1 %v847_v34 }
  0x6b   : > { %1012 = vmatmul.mubr.f32.gmra.mxu0 %v3114_v45  ;;  %1157 = vmatmul.mubr.f32.gmra.mxu1 %v3185_v32 }
  0x6c   : > { %1016 = vmatprep.mubr.f32.mxu0 %v3191_v35  ;;  %1161 = vmatprep.mubr.f32.mxu1 %v3193_v39 }
  0x6d   : > { %2210 = vmatpush3.msra.mxu1 %v831_v41  ;;  %2133 = vmatprep.subr.mxu0 %v813_v49 }
  0x6e   : > { %2211 = vmatprep.subr.mxu1 %v846_v50  ;;  %2134 = vmatpush3.msra.mxu0 %v797_v54 }
  0x6f   : > { %1017 = vmatmul.mubr.f32.gmra.mxu0 %v3119_v52  ;;  %1162 = vmatmul.mubr.f32.gmra.mxu1 %v3208_v53 }
  0x70   : > { %2212 = vmatpush3.msra.mxu1 %v830_v57  ;;  %1231 = vmatprep.mubr.f32.mxu0 %v2843_v44  ;;  %v874_v44 = vld [vmem:[%s3543_s3 + $0x468] sm:$0xff] }
  0x71   : > { %2213 = vmatprep.subr.mxu1 %v845_v62  ;;  %1376 = vmatprep.mubr.f32.mxu1 %v2881_v59 }
  0x72   : > { %2214 = vmatpush3.msra.mxu1 %v829_v1  ;;  %2295 = vmatprep.subr.mxu0 %v876_v2 }
  0x73   : > { %1232 = vmatmul.mubr.f32.vlgmr.msra.gmra.mxu0 %v2824_v36  ;;  %1377 = vmatmul.mubr.f32.vlgmr.msra.gmra.mxu1 %v2826_v38  ;;  %v873_v36 = vld [vmem:[%s3543_s3 + $0x460] sm:$0xff]  ;;  %v872_v38 = vld [vmem:[%s3543_s3 + $0x458] sm:$0xff] }
  0x74   : > { %1236 = vmatprep.mubr.f32.mxu0 %v2876_v56  ;;  %2296 = vmatpush3.msra.mxu0 %v876_v2  ;;  %v869_v56 = vld [vmem:[%s3543_s3 + $0x440] sm:$0xff] }
  0x75   : > { %1381 = vmatprep.mubr.f32.mxu1 %v2915_v7  ;;  %2297 = vmatprep.subr.mxu0 %v875_v3 }
  0x76   : > { %2351 = vmatprep.subr.mxu1 %v876_v2  ;;  %2298 = vmatpush3.msra.mxu0 %v875_v3 }
  0x77   : > { %1237 = vmatmul.mubr.f32.gmra.mxu0 %v2848_v47  ;;  %1382 = vmatmul.mubr.f32.gmra.mxu1 %v2831_v40  ;;  %v871_v40 = vld [vmem:[%s3543_s3 + $0x450] sm:$0xff]  ;;  %v870_v47 = vld [vmem:[%s3543_s3 + $0x448] sm:$0xff] }
  0x78   : > { %1241 = vmatprep.mubr.f32.mxu0 %v2912_v5  ;;  %1386 = vmatprep.mubr.f32.mxu1 %v2945_v19 }
  0x79   : > { %2299 = vmatprep.subr.mxu0 %v874_v44  ;;  %2367 = vmatpush3.msra.mxu1 %v876_v2 }
  0x7a   : > { %2300 = vmatpush3.msra.mxu0 %v874_v44  ;;  %2352 = vmatprep.subr.mxu1 %v875_v3 }
  0x7b   : > { %1242 = vmatmul.mubr.f32.gmra.mxu0 %v2881_v59  ;;  %1387 = vmatmul.mubr.f32.gmra.mxu1 %v2883_v60  ;;  %v868_v59 = vld [vmem:[%s3543_s3 + $0x438] sm:$0xff]  ;;  %v867_v60 = vld [vmem:[%s3543_s3 + $0x430] sm:$0xff] }
  0x7c   : > { %1246 = vmatprep.mubr.f32.mxu0 %v2940_v16  ;;  %1391 = vmatprep.mubr.f32.mxu1 %v2975_v31 }
  0x7d   : > { %2301 = vmatprep.subr.mxu0 %v873_v36  ;;  %2368 = vmatpush3.msra.mxu1 %v875_v3 }
  0x7e   : > { %2302 = vmatpush3.msra.mxu0 %v873_v36  ;;  %2353 = vmatprep.subr.mxu1 %v874_v44 }
  0x7f   : > { %1247 = vmatmul.mubr.f32.gmra.mxu0 %v2915_v7  ;;  %1392 = vmatmul.mubr.f32.gmra.mxu1 %v2889_v0  ;;  %v866_v0 = vld [vmem:[%s3543_s3 + $0x428] sm:$0xff]  ;;  %v702_v7 = vrot.slane %v3166_v21, 1 }
  0x80   : > { %1251 = vmatprep.mubr.f32.mxu0 %v2971_v28  ;;  %1396 = vmatprep.mubr.f32.mxu1 %v3003_v46 }
  0x81   : > { %2303 = vmatprep.subr.mxu0 %v872_v38  ;;  %2369 = vmatpush3.msra.mxu1 %v874_v44 }
  0x82   : > { %2304 = vmatpush3.msra.mxu0 %v872_v38  ;;  %2354 = vmatprep.subr.mxu1 %v873_v36 }
  0x83   : > { %1252 = vmatmul.mubr.f32.gmra.mxu0 %v2945_v19  ;;  %1397 = vmatmul.mubr.f32.gmra.mxu1 %v2947_v20  ;;  %v703_v19 = vrot.slane %v3193_v39, 1  ;;  %v865_v20 = vld [vmem:[%s3543_s3 + $0x420] sm:$0xff] }
  0x84   : > { %1256 = vmatprep.mubr.f32.mxu0 %v2998_v42  ;;  %1401 = vmatprep.mubr.f32.mxu1 %v3034_v58 }
  0x85   : > { %2305 = vmatprep.subr.mxu0 %v871_v40  ;;  %2370 = vmatpush3.msra.mxu1 %v873_v36 }
  0x86   : > { %2306 = vmatpush3.msra.mxu0 %v871_v40  ;;  %2355 = vmatprep.subr.mxu1 %v872_v38 }
  0x87   : > { %1257 = vmatmul.mubr.f32.gmra.mxu0 %v2975_v31  ;;  %1402 = vmatmul.mubr.f32.gmra.mxu1 %v2953_v24  ;;  %v557_v24 = vld [vmem:[#allocation2 + $0xd0] sm:$0x3]  ;;  %v704_v31 = vsel %vm585_vm0, %v702_v7, %v703_v19 }
  0x88   : > { %1261 = vmatprep.mubr.f32.mxu0 %v3031_v55  ;;  %1406 = vmatprep.mubr.f32.mxu1 %v3060_v12  ;;  %v712_v6 = vrot.slane %v557_v24, 2 }
  0x89   : > { %2307 = vmatprep.subr.mxu0 %v870_v47  ;;  %2371 = vmatpush3.msra.mxu1 %v872_v38 }
  0x8a   : > { %2308 = vmatpush3.msra.mxu0 %v870_v47  ;;  %2356 = vmatprep.subr.mxu1 %v871_v40 }
  0x8b   : > { %1262 = vmatmul.mubr.f32.gmra.mxu0 %v3003_v46  ;;  %1407 = vmatmul.mubr.f32.gmra.mxu1 %v3005_v48  ;;  %v705_v46 = vrot.slane %v557_v24, 1  ;;  %v864_v48 = vld [vmem:[%s3543_s3 + $0x418] sm:$0xff] }
  0x8c   : > { %1266 = vmatprep.mubr.f32.mxu0 %v3055_v9  ;;  %1411 = vmatprep.mubr.f32.mxu1 %v3086_v26 }
  0x8d   : > { %2309 = vmatprep.subr.mxu0 %v869_v56  ;;  %2372 = vmatpush3.msra.mxu1 %v871_v40 }
  0x8e   : > { %2310 = vmatpush3.msra.mxu0 %v869_v56  ;;  %2357 = vmatprep.subr.mxu1 %v870_v47 }
  0x8f   : > { %1267 = vmatmul.mubr.f32.gmra.mxu0 %v3034_v58  ;;  %1412 = vmatmul.mubr.f32.gmra.mxu1 %v3012_v51  ;;  %v3313_v51 = vld [vmem:[#allocation2 + $0xd8] sm:$0xff]  ;;  %v3315_v58 = vld [vmem:[#allocation2 + $0xe0] sm:$0xff] }
  0x90   : > { %1271 = vmatprep.mubr.f32.mxu0 %v3083_v23  ;;  %1416 = vmatprep.mubr.f32.mxu1 %v3112_v43  ;;  %v727_v22 = vrot.slane %v3315_v58, 2 }
  0x91   : > { %2311 = vmatprep.subr.mxu0 %v868_v59  ;;  %2373 = vmatpush3.msra.mxu1 %v870_v47 }
  0x92   : > { %2312 = vmatpush3.msra.mxu0 %v868_v59  ;;  %2358 = vmatprep.subr.mxu1 %v869_v56 }
  0x93   : > { %1272 = vmatmul.mubr.f32.gmra.mxu0 %v3060_v12  ;;  %1417 = vmatmul.mubr.f32.gmra.mxu1 %v3062_v13  ;;  %v709_v12 = vrot.slane %v3166_v21, 2  ;;  %v706_v13 = vsel %vm585_vm0, %v703_v19, %v705_v46 }
  0x94   : > { %1276 = vmatprep.mubr.f32.mxu0 %v3107_v37  ;;  %1421 = vmatprep.mubr.f32.mxu1 %v3138_v63 }
  0x95   : > { %2313 = vmatprep.subr.mxu0 %v867_v60  ;;  %2374 = vmatpush3.msra.mxu1 %v869_v56 }
  0x96   : > { %2314 = vmatpush3.msra.mxu0 %v867_v60  ;;  %2359 = vmatprep.subr.mxu1 %v868_v59 }
  0x97   : > { %1277 = vmatmul.mubr.f32.gmra.mxu0 %v3086_v26  ;;  %1422 = vmatmul.mubr.f32.gmra.mxu1 %v3067_v17  ;;  %v710_v17 = vrot.slane %v3193_v39, 2  ;;  %v719_v26 = vrot.slane %v3313_v51, 1 }
  0x98   : > { %1281 = vmatprep.mubr.f32.mxu0 %v3135_v61  ;;  %1426 = vmatprep.mubr.f32.mxu1 %v3164_v18 }
  0x99   : > { %2315 = vmatprep.subr.mxu0 %v866_v0  ;;  %2375 = vmatpush3.msra.mxu1 %v868_v59  ;;  %v713_v14 = vsel %vm642_vm1, %v710_v17, %v712_v6 }
  0x9a   : > { %2316 = vmatpush3.msra.mxu0 %v866_v0  ;;  %2360 = vmatprep.subr.mxu1 %v867_v60 }
  0x9b   : > { %1282 = vmatmul.mubr.f32.gmra.mxu0 %v3112_v43  ;;  %1427 = vmatmul.mubr.f32.gmra.mxu1 %v3114_v45  ;;  %v720_v43 = vrot.slane %v3315_v58, 1  ;;  %v863_v45 = vld [vmem:[%s3543_s3 + $0x410] sm:$0xff] }
  0x9c   : > { %1286 = vmatprep.mubr.f32.mxu0 %v3159_v11  ;;  %1431 = vmatprep.mubr.f32.mxu1 %v3191_v35 }
  0x9d   : > { %2317 = vmatprep.subr.mxu0 %v865_v20  ;;  %2376 = vmatpush3.msra.mxu1 %v867_v60  ;;  %v721_v4 = vsel %vm585_vm0, %v719_v26, %v720_v43 }
  0x9e   : > { %2318 = vmatpush3.msra.mxu0 %v865_v20  ;;  %2361 = vmatprep.subr.mxu1 %v866_v0 }
  0x9f   : > { %1287 = vmatmul.mubr.f32.gmra.mxu0 %v3138_v63  ;;  %1432 = vmatmul.mubr.f32.gmra.mxu1 %v3119_v52  ;;  %v560_v52 = vld [vmem:[#allocation2 + $0xe8] sm:$0x3]  ;;  %v711_v63 = vsel %vm642_vm1, %v709_v12, %v710_v17 }
  0xa0   : > { %1291 = vmatprep.mubr.f32.mxu0 %v3185_v32  ;;  %1436 = vmatprep.mubr.f32.mxu1 %v704_v31  ;;  %v722_v10 = vrot.slane %v560_v52, 1 }
  0xa1   : > { %2319 = vmatprep.subr.mxu0 %v864_v48  ;;  %2377 = vmatpush3.msra.mxu1 %v866_v0 }
  0xa2   : > { %2320 = vmatpush3.msra.mxu0 %v864_v48  ;;  %2362 = vmatprep.subr.mxu1 %v865_v20  ;;  %v723_v15 = vsel %vm585_vm0, %v720_v43, %v722_v10 }
  0xa3   : > { %1292 = vmatmul.mubr.f32.gmra.mxu0 %v3164_v18  ;;  %1437 = vmatmul.mubr.f32.gmra.mxu1 %v3166_v21  ;;  %v861_v18 = vld [vmem:[%s3543_s3 + $0x400] sm:$0xff]  ;;  %v726_v21 = vrot.slane %v3313_v51, 2 }
  0xa4   : > { %1296 = vmatprep.mubr.f32.mxu0 %v3208_v53  ;;  %1441 = vmatprep.mubr.f32.mxu1 %v706_v13 }
  0xa5   : > { %2321 = vmatprep.subr.mxu0 %v863_v45  ;;  %2378 = vmatpush3.msra.mxu1 %v865_v20 }
  0xa6   : > { %2322 = vmatpush3.msra.mxu0 %v863_v45  ;;  %2363 = vmatprep.subr.mxu1 %v864_v48 }
  0xa7   : > { %1297 = vmatmul.mubr.f32.gmra.mxu0 %v3191_v35  ;;  %1442 = vmatmul.mubr.f32.gmra.mxu1 %v3193_v39 }
  0xa8   : > { %1301 = vmatprep.mubr.f32.mxu0 %v711_v63  ;;  %1446 = vmatprep.mubr.f32.mxu1 %v721_v4 }
  0xa9   : > { %2323 = vmatprep.subr.mxu0 %v862_v8  ;;  %2379 = vmatpush3.msra.mxu1 %v864_v48 }
  0xaa   : > { %2324 = vmatpush3.msra.mxu0 %v862_v8  ;;  %2364 = vmatprep.subr.mxu1 %v863_v45 }
  0xab   : > { %1302 = vmatmul.mubr.f32.gmra.mxu0 %v704_v31  ;;  %1447 = vmatmul.mubr.f32.gmra.mxu1 %v3313_v51 }
  0xac   : > { %1306 = vmatprep.mubr.f32.mxu0 %v713_v14  ;;  %1451 = vmatprep.mubr.f32.mxu1 %v723_v15 }
  0xad   : > { %2380 = vmatpush3.msra.mxu1 %v863_v45  ;;  %2325 = vmatprep.subr.mxu0 %v861_v18 }
  0xae   : > { %2365 = vmatprep.subr.mxu1 %v862_v8  ;;  %2326 = vmatpush3.msra.mxu0 %v861_v18 }
  0xaf   : > { %1307 = vmatmul.mubr.f32.gmra.mxu0 %v706_v13  ;;  %1452 = vmatmul.mubr.f32.gmra.mxu1 %v3315_v58 }
  0xb0   : > { %2381 = vmatpush3.msra.mxu1 %v862_v8  ;;  %2327 = vmatprep.mubr.f32.mxu0 %v2912_v5  ;;  %v729_v5 = vrot.slane %v560_v52, 2 }
  0xb1   : > { %2366 = vmatprep.subr.mxu1 %v861_v18  ;;  %2339 = vmatprep.mubr.f32.mxu1 %v3135_v61 }
  0xb2   : > { %2382 = vmatpush3.msra.mxu1 %v861_v18 }
  0xb3   : > { %2328 = vmatmul.mubr.f32.vlgmr.msra.gmra.mxu0 %v2940_v16  ;;  %2340 = vmatmul.mubr.f32.vlgmr.msra.gmra.mxu1 %v3159_v11  ;;  %v728_v16 = vsel %vm642_vm1, %v726_v21, %v727_v22 }
  0xb4   : > { %2330 = vmatprep.mubr.f32.mxu0 %v2971_v28  ;;  %2342 = vmatprep.mubr.f32.mxu1 %v3185_v32  ;;  %v730_v28 = vsel %vm642_vm1, %v727_v22, %v729_v5 }
  0xb7   : > { %2331 = vmatmul.mubr.f32.gmra.mxu0 %v2998_v42  ;;  %2343 = vmatmul.mubr.f32.gmra.mxu1 %v3208_v53 }
  0xb8   : > { %2333 = vmatprep.mubr.f32.mxu0 %v3031_v55  ;;  %2345 = vmatprep.mubr.f32.mxu1 %v711_v63 }
  0xbb   : > { %2334 = vmatmul.mubr.f32.gmra.mxu0 %v3055_v9  ;;  %2346 = vmatmul.mubr.f32.gmra.mxu1 %v713_v14 }
  0xbc   : > { %2336 = vmatprep.mubr.f32.mxu0 %v3083_v23  ;;  %2348 = vmatprep.mubr.f32.mxu1 %v728_v16 }
  0xbf   : > { %2337 = vmatmul.mubr.f32.gmra.mxu0 %v3107_v37  ;;  %2349 = vmatmul.mubr.f32.gmra.mxu1 %v730_v28 }
  0xf2   : > { %v1975_v42 = vpop.f32.mrf.mxu0 }
  0xf3   : > { %v2055_v61 = vpop.f32.mrf.mxu1 }
  0xf4   : > { %v1976_v11 = vpop.f32.mrf.mxu0 }
  0xf5   : > { %v2056_v25 = vpop.f32.mrf.mxu1  ;;  %v1977_v55 = vadd.f32 %v1976_v11, %v1975_v42 }
  0xf6   : > { %v2057_v27 = vadd.f32 %v2056_v25, %v2055_v61  ;;  %v1978_v29 = vpop.f32.mrf.mxu0 }
  0xf7   : > { %v2058_v30 = vpop.f32.mrf.mxu1 }
  0xf8   : > { %v3361_v32 = vadd.f32 %v2057_v27, %v1977_v55  ;;  %v1979_v9 = vpop.f32.mrf.mxu0 }
  0xf9   : > { %v2059_v33 = vpop.f32.mrf.mxu1  ;;  %v1980_v34 = vadd.f32 %v1979_v9, %v1978_v29 }
  0xfa   : > { %v2060_v23 = vadd.f32 %v2059_v33, %v2058_v30 }
  0xfb   : > { %v1981_v35 = vpop.f32.mrf.mxu0  ;;  %v2061_v39 = vpop.f32.mrf.mxu1 }
  0xfc   : > { %v3363_v41 = vadd.f32 %v2060_v23, %v1980_v34 }
  0xfd   : > { %v1982_v37 = vpop.f32.mrf.mxu0  ;;  %v2062_v49 = vpop.f32.mrf.mxu1 }
  0xfe   : > { %v1983_v50 = vadd.f32 %v1982_v37, %v1981_v35  ;;  %v2063_v53 = vadd.f32 %v2062_v49, %v2061_v39 }
  0xff   : > { %v1984_v54 = vpop.f32.mrf.mxu0  ;;  %v2064_v57 = vpop.f32.mrf.mxu1 }
 0x100   : > { %v3365_v62 = vadd.f32 %v2063_v53, %v1983_v50 }
 0x101   : > { %v1985_v1 = vpop.f32.mrf.mxu0  ;;  %v2065_v2 = vpop.f32.mrf.mxu1 }
 0x102   : > { %v1986_v3 = vadd.f32 %v1985_v1, %v1984_v54  ;;  %v2066_v44 = vadd.f32 %v2065_v2, %v2064_v57 }
 0x103   : > { %v1987_v36 = vpop.f32.mrf.mxu0  ;;  %v2067_v38 = vpop.f32.mrf.mxu1 }
 0x104   : > { %v3367_v40 = vadd.f32 %v2066_v44, %v1986_v3 }
 0x105   : > { %v1988_v47 = vpop.f32.mrf.mxu0  ;;  %v2068_v56 = vpop.f32.mrf.mxu1 }
 0x106   : > { %v1989_v59 = vadd.f32 %v1988_v47, %v1987_v36  ;;  %v2069_v60 = vadd.f32 %v2068_v56, %v2067_v38 }
 0x107   : > { %v1990_v0 = vpop.f32.mrf.mxu0  ;;  %v2070_v7 = vpop.f32.mrf.mxu1 }
 0x108   : > { %v3369_v19 = vadd.f32 %v2069_v60, %v1989_v59 }
 0x109   : > { %v1991_v20 = vpop.f32.mrf.mxu0  ;;  %v2071_v24 = vpop.f32.mrf.mxu1 }
 0x10a   : > { %v1992_v31 = vadd.f32 %v1991_v20, %v1990_v0  ;;  %v2072_v46 = vadd.f32 %v2071_v24, %v2070_v7 }
 0x10b   : > { %v1993_v48 = vpop.f32.mrf.mxu0  ;;  %v2073_v51 = vpop.f32.mrf.mxu1 }
 0x10c   : > { %v3371_v58 = vadd.f32 %v2072_v46, %v1992_v31 }
 0x10d   : > { %v1994_v12 = vpop.f32.mrf.mxu0  ;;  %v2074_v13 = vpop.f32.mrf.mxu1 }
 0x10e   : > { %3548 = vst [vmem:[#allocation3_spill] sm:$0xff] %v3371_v58  ;;  %v1995_v17 = vadd.f32 %v1994_v12, %v1993_v48  ;;  %v2075_v26 = vadd.f32 %v2074_v13, %v2073_v51 }
 0x10f   : > { %v1996_v43 = vpop.f32.mrf.mxu0  ;;  %v2076_v45 = vpop.f32.mrf.mxu1 }
 0x110   : > { %v3373_v52 = vadd.f32 %v2075_v26, %v1995_v17 }
 0x111   : > { %v1997_v63 = vpop.f32.mrf.mxu0  ;;  %v2077_v4 = vpop.f32.mrf.mxu1 }
 0x112   : > { %3549 = vst [vmem:[#allocation4_spill] sm:$0xff] %v3373_v52  ;;  %v1998_v6 = vadd.f32 %v1997_v63, %v1996_v43  ;;  %v2078_v8 = vadd.f32 %v2077_v4, %v2076_v45 }
 0x113   : > { %v1999_v10 = vpop.f32.mrf.mxu0  ;;  %v2079_v14 = vpop.f32.mrf.mxu1 }
 0x114   : > { %v3375_v15 = vadd.f32 %v2078_v8, %v1998_v6 }
 0x115   : > { %v2000_v18 = vpop.f32.mrf.mxu0  ;;  %v2080_v21 = vpop.f32.mrf.mxu1 }
 0x116   : > { %3550 = vst [vmem:[#allocation5_spill] sm:$0xff] %v3375_v15  ;;  %v2001_v22 = vadd.f32 %v2000_v18, %v1999_v10  ;;  %v2081_v5 = vadd.f32 %v2080_v21, %v2079_v14 }
 0x117   : > { %v2002_v16 = vpop.f32.mrf.mxu0  ;;  %v2082_v28 = vpop.f32.mrf.mxu1 }
 0x118   : > { %v3377_v42 = vadd.f32 %v2081_v5, %v2001_v22 }
 0x119   : > { %v2003_v61 = vpop.f32.mrf.mxu0  ;;  %v2083_v11 = vpop.f32.mrf.mxu1 }
 0x11a   : > { %v2004_v25 = vadd.f32 %v2003_v61, %v2002_v16  ;;  %v2084_v55 = vadd.f32 %v2083_v11, %v2082_v28 }
 0x11b   : > { %v2005_v27 = vpop.f32.mrf.mxu0  ;;  %v2085_v29 = vpop.f32.mrf.mxu1 }
 0x11c   : > { %v3379_v30 = vadd.f32 %v2084_v55, %v2004_v25 }
 0x11d   : > { %v2006_v9 = vpop.f32.mrf.mxu0  ;;  %v2086_v33 = vpop.f32.mrf.mxu1 }
 0x11e   : > { %v2007_v34 = vadd.f32 %v2006_v9, %v2005_v27  ;;  %v2087_v23 = vadd.f32 %v2086_v33, %v2085_v29 }
 0x11f   : > { %v2008_v35 = vpop.f32.mrf.mxu0  ;;  %v2088_v39 = vpop.f32.mrf.mxu1 }
 0x120   : > { %v3381_v37 = vadd.f32 %v2087_v23, %v2007_v34 }
 0x121   : > { %v2009_v49 = vpop.f32.mrf.mxu0  ;;  %v2089_v50 = vpop.f32.mrf.mxu1 }
 0x122   : > { %3551 = vst [vmem:[#allocation6_spill] sm:$0xff] %v3381_v37  ;;  %v2010_v53 = vadd.f32 %v2009_v49, %v2008_v35  ;;  %v2090_v54 = vadd.f32 %v2089_v50, %v2088_v39 }
 0x123   : > { %v2011_v57 = vpop.f32.mrf.mxu0  ;;  %v2091_v1 = vpop.f32.mrf.mxu1 }
 0x124   : > { %v3383_v2 = vadd.f32 %v2090_v54, %v2010_v53 }
 0x125   : > { %v2012_v3 = vpop.f32.mrf.mxu0  ;;  %v2092_v44 = vpop.f32.mrf.mxu1 }
 0x126   : > { %3552 = vst [vmem:[#allocation7_spill] sm:$0xff] %v3383_v2  ;;  %v2013_v36 = vadd.f32 %v2012_v3, %v2011_v57  ;;  %v2093_v38 = vadd.f32 %v2092_v44, %v2091_v1 }
 0x127   : > { %v2014_v47 = vpop.f32.mrf.mxu0  ;;  %v2094_v56 = vpop.f32.mrf.mxu1 }
 0x128   : > { %v3385_v59 = vadd.f32 %v2093_v38, %v2013_v36 }
 0x129   : > { %v2015_v60 = vpop.f32.mrf.mxu0  ;;  %v2095_v0 = vpop.f32.mrf.mxu1 }
 0x12a   : > { %3553 = vst [vmem:[#allocation8_spill] sm:$0xff] %v3385_v59  ;;  %v2016_v7 = vadd.f32 %v2015_v60, %v2014_v47  ;;  %v2096_v20 = vadd.f32 %v2095_v0, %v2094_v56 }
 0x12b   : > { %v2017_v24 = vpop.f32.mrf.mxu0  ;;  %v2097_v31 = vpop.f32.mrf.mxu1 }
 0x12c   : > { %v3387_v46 = vadd.f32 %v2096_v20, %v2016_v7 }
 0x12d   : > { %v2018_v48 = vpop.f32.mrf.mxu0  ;;  %v2098_v51 = vpop.f32.mrf.mxu1 }
 0x12e   : > { %3554 = vst [vmem:[#allocation9_spill] sm:$0xff] %v3387_v46  ;;  %v2019_v12 = vadd.f32 %v2018_v48, %v2017_v24  ;;  %v2099_v13 = vadd.f32 %v2098_v51, %v2097_v31 }
 0x12f   : > { %v2020_v17 = vpop.f32.mrf.mxu0  ;;  %v2100_v26 = vpop.f32.mrf.mxu1 }
 0x130   : > { %v3389_v43 = vadd.f32 %v2099_v13, %v2019_v12 }
 0x131   : > { %v2021_v45 = vpop.f32.mrf.mxu0  ;;  %v2101_v63 = vpop.f32.mrf.mxu1 }
 0x132   : > { %3555 = vst [vmem:[#allocation10_spill] sm:$0xff] %v3389_v43  ;;  %v2022_v4 = vadd.f32 %v2021_v45, %v2020_v17  ;;  %v2102_v6 = vadd.f32 %v2101_v63, %v2100_v26 }
 0x133   : > { %v2135_v8 = vpop.f32.mrf.mxu0  ;;  %v2215_v10 = vpop.f32.mrf.mxu1 }
 0x134   : > { %v3391_v14 = vadd.f32 %v2102_v6, %v2022_v4 }
 0x135   : > { %v2136_v18 = vpop.f32.mrf.mxu0  ;;  %v2216_v21 = vpop.f32.mrf.mxu1 }
 0x136   : > { %3556 = vst [vmem:[#allocation11_spill] sm:$0xff] %v3391_v14  ;;  %v2217_v2 = vadd.f32 %v2216_v21, %v2215_v10 }
 0x137   : > { %v2138_v22 = vpop.f32.mrf.mxu0  ;;  %v2218_v5 = vpop.f32.mrf.mxu1 }
 0x139   : > { %v2139_v16 = vpop.f32.mrf.mxu0  ;;  %v2219_v28 = vpop.f32.mrf.mxu1 }
 0x13b   : > { %v2141_v61 = vpop.f32.mrf.mxu0  ;;  %v2221_v11 = vpop.f32.mrf.mxu1 }
 0x13d   : > { %v2142_v25 = vpop.f32.mrf.mxu0  ;;  %v2222_v55 = vpop.f32.mrf.mxu1 }
 0x13f   : > { %v2144_v27 = vpop.f32.mrf.mxu0  ;;  %v2224_v29 = vpop.f32.mrf.mxu1 }
 0x141   : > { %v2145_v9 = vpop.f32.mrf.mxu0  ;;  %v2225_v33 = vpop.f32.mrf.mxu1 }
 0x143   : > { %v2147_v34 = vpop.f32.mrf.mxu0  ;;  %v2227_v23 = vpop.f32.mrf.mxu1 }
 0x145   : > { %v2148_v35 = vpop.f32.mrf.mxu0  ;;  %v2228_v39 = vpop.f32.mrf.mxu1 }
 0x146   : > { %v2149_v37 = vadd.f32 %v2148_v35, %v2147_v34 }
 0x147   : > { %v3393_v49 = vpop.f32.mrf.mxu0  ;;  %v3395_v50 = vpop.f32.mrf.mxu1 }
 0x149   : > { %v2151_v53 = vpop.f32.mrf.mxu0  ;;  %v3397_v54 = vpop.f32.mrf.mxu1 }
 0x14a   : > { %3557 = vst [vmem:[#allocation12_spill] sm:$0xff] %v3397_v54 }
 0x14b   : > { %v3399_v57 = vpop.f32.mrf.mxu0  ;;  %v3401_v1 = vpop.f32.mrf.mxu1 }
 0x14c   : > { %3558 = vst [vmem:[#allocation13_spill] sm:$0xff] %v3399_v57  ;;  %3559 = vst [vmem:[#allocation14_spill] sm:$0xff] %v3401_v1  ;;  %v2146_v1 = vadd.f32 %v2145_v9, %v2144_v27  ;;  %v1254_v9 = vadd.f32 %v2149_v37, %v3369_v19 }
 0x14d   : > { %v3403_v3 = vpop.f32.mrf.mxu0  ;;  %v3405_v44 = vpop.f32.mrf.mxu1 }
 0x14e   : > { %3560 = vst [vmem:[#allocation15_spill] sm:$0xff] %v3403_v3  ;;  %3561 = vst [vmem:[#allocation16_spill] sm:$0xff] %v3405_v44  ;;  %v2143_v44 = vadd.f32 %v2142_v25, %v2141_v61 }
 0x14f   : > { %v3407_v36 = vpop.f32.mrf.mxu0  ;;  %v3409_v38 = vpop.f32.mrf.mxu1 }
 0x150   : > { %3562 = vst [vmem:[#allocation17_spill] sm:$0xff] %v3407_v36  ;;  %3563 = vst [vmem:[#allocation18_spill] sm:$0xff] %v3409_v38  ;;  %v2140_v38 = vadd.f32 %v2139_v16, %v2138_v22  ;;  %v2220_v36 = vadd.f32 %v2219_v28, %v2218_v5  ;;  %v1249_v22 = vadd.f32 %v2146_v1, %v3367_v40  ;;  %v3572_v1 = vld [vmem:[#allocation6_spill] sm:$0xff] }
 0x151   : > { %v3411_v47 = vpop.f32.mrf.mxu0  ;;  %v3413_v56 = vpop.f32.mrf.mxu1  ;;  %v2226_v16 = vadd.f32 %v2225_v33, %v2224_v29 }
 0x152   : > { %3564 = vst [vmem:[#allocation19_spill] sm:$0xff] %v3411_v47  ;;  %3565 = vst [vmem:[#allocation20_spill] sm:$0xff] %v3413_v56  ;;  %v2137_v56 = vadd.f32 %v2136_v18, %v2135_v8  ;;  %v1244_v8 = vadd.f32 %v2143_v44, %v3365_v62  ;;  %v2223_v18 = vadd.f32 %v2222_v55, %v2221_v11  ;;  %v3569_v55 = vld [vmem:[#allocation12_spill] sm:$0xff] }
 0x153   : > { %v2159_v60 = vpop.f32.mrf.mxu0  ;;  %v2239_v0 = vpop.f32.mrf.mxu1  ;;  %v2152_v62 = vadd.f32 %v2151_v53, %v3393_v49  ;;  %v2232_v29 = vadd.f32 %v3569_v55, %v3395_v50  ;;  %v1394_v35 = vadd.f32 %v2226_v16, %v1249_v22  ;;  %v3583_v16 = vld [vmem:[#allocation9_spill] sm:$0xff] }
 0x154   : > { %v1389_v19 = vadd.f32 %v2223_v18, %v1244_v8 }
 0x155   : > { %v2160_v7 = vpop.f32.mrf.mxu0  ;;  %v2240_v20 = vpop.f32.mrf.mxu1 }
 0x156   : > { %v2161_v54 = vadd.f32 %v2160_v7, %v2159_v60  ;;  %v2241_v28 = vadd.f32 %v2240_v20, %v2239_v0  ;;  %v3575_v20 = vld [vmem:[#allocation13_spill] sm:$0xff] }
 0x157   : > { %v2162_v24 = vpop.f32.mrf.mxu0  ;;  %v2242_v31 = vpop.f32.mrf.mxu1  ;;  %v3570_v37 = vld [vmem:[#allocation17_spill] sm:$0xff] }
 0x158   : > { %v1274_v40 = vadd.f32 %v2161_v54, %v3377_v42  ;;  %v3573_v42 = vld [vmem:[#allocation7_spill] sm:$0xff] }
 0x159   : > { %v2163_v48 = vpop.f32.mrf.mxu0  ;;  %v2243_v51 = vpop.f32.mrf.mxu1  ;;  %v3574_v54 = vld [vmem:[#allocation3_spill] sm:$0xff] }
 0x15a   : > { %v2164_v58 = vadd.f32 %v2163_v48, %v2162_v24  ;;  %v2244_v21 = vadd.f32 %v2243_v51, %v2242_v31  ;;  %v1419_v7 = vadd.f32 %v2241_v28, %v1274_v40  ;;  %v3576_v24 = vld [vmem:[#allocation15_spill] sm:$0xff]  ;;  %v3577_v48 = vld [vmem:[#allocation14_spill] sm:$0xff]  ;;  %v3578_v51 = vld [vmem:[#allocation16_spill] sm:$0xff] }
 0x15b   : > { %v2165_v12 = vpop.f32.mrf.mxu0  ;;  %v2245_v13 = vpop.f32.mrf.mxu1  ;;  %v2155_v31 = vadd.f32 %v3576_v24, %v3575_v20 }
 0x15c   : > { %v1279_v10 = vadd.f32 %v2164_v58, %v3379_v30 }
 0x15d   : > { %v2166_v17 = vpop.f32.mrf.mxu0  ;;  %v2246_v26 = vpop.f32.mrf.mxu1 }
 0x15e   : > { %v2167_v27 = vadd.f32 %v2166_v17, %v2165_v12  ;;  %v3459_v12 = vadd.f32 %v3578_v51, %v3577_v48  ;;  %v3580_v17 = vld [vmem:[#allocation20_spill] sm:$0xff] }
 0x15f   : > { %v2168_v45 = vpop.f32.mrf.mxu0  ;;  %v2248_v63 = vpop.f32.mrf.mxu1 }
 0x160   : > { %v1284_v44 = vadd.f32 %v2167_v27, %v3572_v1 }
 0x161   : > { %v2169_v4 = vpop.f32.mrf.mxu0  ;;  %v2249_v6 = vpop.f32.mrf.mxu1 }
 0x162   : > { %v2170_v34 = vadd.f32 %v2169_v4, %v2168_v45  ;;  %v3582_v4 = vld [vmem:[#allocation5_spill] sm:$0xff] }
 0x163   : > { %v3415_v43 = vpop.f32.mrf.mxu0  ;;  %v3417_v14 = vpop.f32.mrf.mxu1 }
 0x164   : > { %3566 = vst [vmem:[#allocation21_spill] sm:$0xff] %v3415_v43  ;;  %3567 = vst [vmem:[#allocation22_spill] sm:$0xff] %v3417_v14  ;;  %v1234_v14 = vadd.f32 %v2137_v56, %v3361_v32  ;;  %v2229_v32 = vadd.f32 %v2228_v39, %v2227_v23  ;;  %v3571_v23 = vld [vmem:[#allocation19_spill] sm:$0xff]  ;;  %v1424_v56 = vadd.f32 %v2244_v21, %v1279_v10 }
 0x165   : > { %v2172_v52 = vpop.f32.mrf.mxu0  ;;  %v3419_v59 = vpop.f32.mrf.mxu1  ;;  %v2158_v39 = vadd.f32 %v3571_v23, %v3570_v37 }
 0x166   : > { %3568 = vst [vmem:[#allocation23_spill] sm:$0xff] %v3419_v59  ;;  %v1239_v59 = vadd.f32 %v2140_v38, %v3363_v41  ;;  %v1379_v11 = vadd.f32 %v2217_v2, %v1234_v14  ;;  %v2247_v38 = vadd.f32 %v2246_v26, %v2245_v13  ;;  %v1289_v2 = vadd.f32 %v2170_v34, %v3573_v42  ;;  %v3579_v13 = vld [vmem:[#allocation18_spill] sm:$0xff]  ;;  %v3588_v42 = vld [vmem:[#allocation11_spill] sm:$0xff] }
 0x167   : > { %v2174_v46 = vpop.f32.mrf.mxu0  ;;  %v3421_v15 = vpop.f32.mrf.mxu1  ;;  %v2250_v14 = vadd.f32 %v2249_v6, %v2248_v63  ;;  %v1399_v53 = vadd.f32 %v2229_v32, %v1254_v9  ;;  %v1269_v6 = vadd.f32 %v2158_v39, %v3582_v4 }
 0x168   : > { %v1384_v33 = vadd.f32 %v2220_v36, %v1239_v59  ;;  %v1259_v36 = vadd.f32 %v2152_v62, %v3574_v54  ;;  %v1429_v22 = vadd.f32 %v2247_v38, %v1284_v44  ;;  %v3589_v54 = vld [vmem:[#allocation10_spill] sm:$0xff] }
 0x169   : > { %v2175_v3 = vpop.f32.mrf.mxu0  ;;  %v2255_v57 = vpop.f32.mrf.mxu1 }
 0x16a   : > { %v2176_v59 = vadd.f32 %v2175_v3, %v2174_v46  ;;  %v2238_v46 = vadd.f32 %v3580_v17, %v3579_v13  ;;  %v2256_v21 = vadd.f32 %v2255_v57, %v3421_v15  ;;  %v1404_v38 = vadd.f32 %v2232_v29, %v1259_v36 }
 0x16b   : > { %v3423_v47 = vpop.f32.mrf.mxu0  ;;  %v3425_v43 = vpop.f32.mrf.mxu1  ;;  %v3581_v3 = vld [vmem:[#allocation21_spill] sm:$0xff] }
 0x16c   : > { %v2173_v26 = vadd.f32 %v2172_v52, %v3581_v3  ;;  %v1299_v10 = vadd.f32 %v2176_v59, %v3583_v16  ;;  %v1434_v52 = vadd.f32 %v2250_v14, %v1289_v2  ;;  %v1414_v29 = vadd.f32 %v2238_v46, %v1269_v6 }
 0x16d   : > { %v2178_v61 = vpop.f32.mrf.mxu0  ;;  %v3431_v25 = vpop.f32.mrf.mxu1  ;;  %v3586_v37 = vld [vmem:[#allocation23_spill] sm:$0xff] }
 0x16e   : > { %v2179_v15 = vadd.f32 %v2178_v61, %v3423_v47  ;;  %v1444_v61 = vadd.f32 %v2256_v21, %v1299_v10 }
 0x16f   : > { %v2180_v41 = vpop.f32.mrf.mxu0  ;;  %v3435_v5 = vpop.f32.mrf.mxu1 }
 0x170   : > { %v1304_v36 = vadd.f32 %v2179_v15, %v3589_v54 }
 0x171   : > { %v2181_v58 = vpop.f32.mrf.mxu0  ;;  %v2261_v30 = vpop.f32.mrf.mxu1 }
 0x172   : > { %v2182_v27 = vadd.f32 %v2181_v58, %v2180_v41  ;;  %v2262_v14 = vadd.f32 %v2261_v30, %v3435_v5 }
 0x173   : > { %v2329_v49 = vpop.f32.mrf.mxu0  ;;  %v2341_v50 = vpop.f32.mrf.mxu1 }
 0x174   : > { %v1529_v60 = vadd.f32 %v2329_v49, %v1384_v33  ;;  %v3453_v0 = vadd.f32 %v2341_v50, %v1424_v56  ;;  %v3585_v33 = vld [vmem:[#allocation22_spill] sm:$0xff]  ;;  %v1309_v2 = vadd.f32 %v2182_v27, %v3588_v42 }
 0x175   : > { %v1523_v45 = vpop.f32.mrf.mxu0  ;;  %v1563_v63 = vpop.f32.mrf.mxu1  ;;  %v2253_v23 = vadd.f32 %v3586_v37, %v3585_v33 }
 0x176   : > { %1663 = vst [vmem:[%s3449_s10 + $0x8] sm:$0xff] %v1529_v60  ;;  %1671 = vst [vmem:[%s3449_s10 + $0x48] sm:$0xff] %v3453_v0  ;;  %v1524_v8 = vadd.f32 %v1523_v45, %v1379_v11  ;;  %v3468_v18 = vadd.f32 %v1563_v63, %v1419_v7  ;;  %v1625_v34 = vmul.f32 %v1529_v60, %v1529_v60  ;;  %v3584_v11 = vld [vmem:[#allocation8_spill] sm:$0xff] }
 0x177   : > { %v2332_v9 = vpop.f32.mrf.mxu0  ;;  %v2344_v32 = vpop.f32.mrf.mxu1  ;;  %v1294_v55 = vadd.f32 %v2173_v26, %v3584_v11  ;;  %v1454_v46 = vadd.f32 %v2262_v14, %v1309_v2 }
 0x178   : > { %v1602_v62 = vadd.f32 %v1529_v60, %v1524_v8  ;;  %v1624_v40 = vmul.f32 %v1524_v8, %v1524_v8  ;;  %1662 = vst [vmem:[%s3449_s10] sm:$0xff] %v1524_v8  ;;  %1670 = vst [vmem:[%s3449_s10 + $0x40] sm:$0xff] %v3468_v18  ;;  %v1539_v28 = vadd.f32 %v2332_v9, %v1394_v35  ;;  %v3587_v35 = vld [vmem:[#allocation4_spill] sm:$0xff] }
 0x179   : > { %v3479_v57 = vadd.f32 %v2344_v32, %v1434_v52  ;;  %v1533_v41 = vpop.f32.mrf.mxu0  ;;  %v1573_v58 = vpop.f32.mrf.mxu1  ;;  %v1264_v56 = vadd.f32 %v2155_v31, %v3587_v35  ;;  %v2259_v60 = vadd.f32 %v3431_v25, %v3425_v43  ;;  %v1439_v7 = vadd.f32 %v2253_v23, %v1294_v55 }
 0x17a   : > { %v1640_v39 = vadd.f32 %v1625_v34, %v1624_v40  ;;  %1665 = vst [vmem:[%s3449_s10 + $0x18] sm:$0xff] %v1539_v28  ;;  %v1534_v1 = vadd.f32 %v1533_v41, %v1389_v19  ;;  %v3482_v44 = vadd.f32 %v1573_v58, %v1429_v22  ;;  %v1627_v24 = vmul.f32 %v1539_v28, %v1539_v28 }
 0x17b   : > { %1673 = vst [vmem:[%s3449_s10 + $0x58] sm:$0xff] %v3479_v57  ;;  %v2335_v47 = vpop.f32.mrf.mxu0  ;;  %v2347_v59 = vpop.f32.mrf.mxu1  ;;  %v1409_v26 = vadd.f32 %v3459_v12, %v1264_v56  ;;  %v1449_v6 = vadd.f32 %v2259_v60, %v1304_v36  ;;  %v1632_v40 = vmul.f32 %v3468_v18, %v3468_v18  ;;  %v1633_v55 = vmul.f32 %v3453_v0, %v3453_v0 }
 0x17c   : > { %v1603_v49 = vadd.f32 %v1602_v62, %v1534_v1  ;;  %v1626_v50 = vmul.f32 %v1534_v1, %v1534_v1  ;;  %1664 = vst [vmem:[%s3449_s10 + $0x10] sm:$0xff] %v1534_v1  ;;  %1672 = vst [vmem:[%s3449_s10 + $0x50] sm:$0xff] %v3482_v44  ;;  %v1549_v19 = vadd.f32 %v2335_v47, %v1404_v38 }
 0x17d   : > { %v1589_v5 = vadd.f32 %v2347_v59, %v1444_v61  ;;  %v1543_v30 = vpop.f32.mrf.mxu0  ;;  %v1583_v20 = vpop.f32.mrf.mxu1  ;;  %v1634_v23 = vmul.f32 %v3482_v44, %v3482_v44  ;;  %v1635_v58 = vmul.f32 %v3479_v57, %v3479_v57 }
 0x17e   : > { %v1641_v31 = vadd.f32 %v1640_v39, %v1626_v50  ;;  %1667 = vst [vmem:[%s3449_s10 + $0x28] sm:$0xff] %v1549_v19  ;;  %v1544_v48 = vadd.f32 %v1543_v30, %v1399_v53  ;;  %v1604_v51 = vadd.f32 %v1603_v49, %v1539_v28  ;;  %v1584_v13 = vadd.f32 %v1583_v20, %v1439_v7 }
 0x17f   : > { %1675 = vst [vmem:[%s3449_s10 + $0x68] sm:$0xff] %v1589_v5  ;;  %v2338_v17 = vpop.f32.mrf.mxu0  ;;  %v2350_v3 = vpop.f32.mrf.mxu1  ;;  %v1629_v22 = vmul.f32 %v1549_v19, %v1549_v19 }
 0x180   : > { %v1605_v43 = vadd.f32 %v1604_v51, %v1544_v48  ;;  %v1628_v25 = vmul.f32 %v1544_v48, %v1544_v48  ;;  %v1642_v45 = vadd.f32 %v1641_v31, %v1627_v24  ;;  %1666 = vst [vmem:[%s3449_s10 + $0x20] sm:$0xff] %v1544_v48  ;;  %v1559_v63 = vadd.f32 %v2338_v17, %v1414_v29 }
 0x181   : > { %1674 = vst [vmem:[%s3449_s10 + $0x60] sm:$0xff] %v1584_v13  ;;  %v1599_v4 = vadd.f32 %v2350_v3, %v1454_v46  ;;  %v1553_v53 = vpop.f32.mrf.mxu0  ;;  %v1593_v8 = vpop.f32.mrf.mxu1  ;;  %v1636_v1 = vmul.f32 %v1584_v13, %v1584_v13 }
 0x182   : > { %v1643_v16 = vadd.f32 %v1642_v45, %v1628_v25  ;;  %1669 = vst [vmem:[%s3449_s10 + $0x38] sm:$0xff] %v1559_v63  ;;  %v1554_v10 = vadd.f32 %v1553_v53, %v1409_v26  ;;  %v1606_v21 = vadd.f32 %v1605_v43, %v1549_v19  ;;  %v1594_v12 = vadd.f32 %v1593_v8, %v1449_v6 }
 0x183   : > { %1677 = vst [vmem:[%s3449_s10 + $0x78] sm:$0xff] %v1599_v4  ;;  %v1631_v32 = vmul.f32 %v1559_v63, %v1559_v63  ;;  %v1639_v61 = vmul.f32 %v1599_v4, %v1599_v4 }
 0x184   : > { %v1607_v27 = vadd.f32 %v1606_v21, %v1554_v10  ;;  %v1630_v9 = vmul.f32 %v1554_v10, %v1554_v10  ;;  %v1644_v52 = vadd.f32 %v1643_v16, %v1629_v22  ;;  %1668 = vst [vmem:[%s3449_s10 + $0x30] sm:$0xff] %v1554_v10  ;;  %1676 = vst [vmem:[%s3449_s10 + $0x70] sm:$0xff] %v1594_v12 }
 0x185   : > { %v1638_v14 = vmul.f32 %v1594_v12, %v1594_v12 }
 0x186   : > { %v1608_v34 = vadd.f32 %v1607_v27, %v1559_v63  ;;  %v1645_v62 = vadd.f32 %v1644_v52, %v1630_v9 }
 0x188   : > { %v1609_v28 = vadd.f32 %v1608_v34, %v3468_v18  ;;  %v1646_v11 = vadd.f32 %v1645_v62, %v1631_v32 }
 0x18a   : > { %v1610_v33 = vadd.f32 %v1609_v28, %v3453_v0  ;;  %v1647_v37 = vadd.f32 %v1646_v11, %v1632_v40  ;;  %v1637_v0 = vmul.f32 %v1589_v5, %v1589_v5 }
 0x18c   : > { %v1648_v15 = vadd.f32 %v1647_v37, %v1633_v55  ;;  %v1611_v41 = vadd.f32 %v1610_v33, %v3482_v44 }
 0x18e   : > { %v1612_v39 = vadd.f32 %v1611_v41, %v3479_v57  ;;  %v1649_v18 = vadd.f32 %v1648_v15, %v1634_v23 }
 0x190   : > { %v1613_v38 = vadd.f32 %v1612_v39, %v1584_v13  ;;  %v1650_v35 = vadd.f32 %v1649_v18, %v1635_v58 }
 0x192   : > { %v1614_v56 = vadd.f32 %v1613_v38, %v1589_v5  ;;  %v1651_v42 = vadd.f32 %v1650_v35, %v1636_v1 }
 0x194   : > { %v1615_v2 = vadd.f32 %v1614_v56, %v1594_v12  ;;  %v1652_v47 = vadd.f32 %v1651_v42, %v1637_v0 }
 0x196   : > { %v1616_v44 = vadd.f32 %v1615_v2, %v1599_v4  ;;  %v1653_v59 = vadd.f32 %v1652_v47, %v1638_v14 }
 0x198   : > { %v1617_v49 = vrot.slane %v1616_v44, 4  ;;  %v1654_v50 = vadd.f32 %v1653_v59, %v1639_v61 }
 0x19a   : > { %v1618_v57 = vadd.f32 %v1617_v49, %v1616_v44  ;;  %v1655_v19 = vrot.slane %v1654_v50, 4 }
 0x19c   : > { %v1619_v29 = vrot.slane %v1618_v57, 2  ;;  %v1656_v54 = vadd.f32 %v1655_v19, %v1654_v50 }
 0x19e   : > { %v1620_v36 = vadd.f32 %v1619_v29, %v1618_v57  ;;  %v1657_v60 = vrot.slane %v1656_v54, 2 }
 0x1a0   : > { %v1621_v5 = vrot.slane %v1620_v36, 1  ;;  %v1658_v30 = vadd.f32 %v1657_v60, %v1656_v54 }
 0x1a2   : > { %v1622_v7 = vadd.f32 %v1621_v5, %v1620_v36  ;;  %v1659_v20 = vrot.slane %v1658_v30, 1 }
 0x1a4   : > { %1623 = vst [vmem:[%s449_s30] sm:$0x1] %v1622_v7  ;;  %v1660_v24 = vadd.f32 %v1659_v20, %v1658_v30 }
 0x1a6   : > { %1661 = vst [vmem:[%s456_s15] sm:$0x1] %v1660_v24 }
 0x1a7 PF: > { %s17_s25 = sadd.s32 1, %s2474_s25   ;;  %s3590_s21 = smov %s2466_s23 }
 0x1a8   : > { %p14_p13 = scmp.ge.s32.totalorder %s17_s25, 6   ;;  %s3591_s22 = smov %s2470_s24 }
 0x1a9   : > { %s3592_s23 = smov %s3595_s26  ;;  %s3593_s24 = smov %s3599_s27 }
 0x1aa   :  { %16 = sbr.rel (!%p14_p13) target bundleno = 3 (0x3), region = 98 }

// kernel: resnet_block_pallas_nhwc.4
= control target key start
LH: loop header
LB: loop body
LE: loop exit
PB: predicated region body
PF: predicated region fallthrough
CT: control target
= control target key end

     0   :  { %s2644_s27 = smov 0   ;;  %s2646_s28 = smov 0   ;;  %s3781_s0 = inlined_call_operand.vmem [shape: f32[2,16,16,128], index: 0, kind: input, shape index: {}, may-alias: {0,1,2}]   ;;  %s3782_s1 = inlined_call_operand.vmem [shape: f32[2,16,16,128], index: 1, kind: input, shape index: {}, may-alias: {0,1,2}]   ;;  %s3783_s2 = inlined_call_operand.vmem [shape: f32[2,16,16,128], index: 2, kind: input, shape index: {}, may-alias: {0,1,2}]   ;;  %s3784_s3 = inlined_call_operand.vmem [shape: f32[2,128], index: 3, kind: input, shape index: {}]   ;;  %s3785_s4 = inlined_call_operand.vmem [shape: f32[1152,128], index: 4, kind: input, shape index: {}]   ;;  %s3786_s5 = inlined_call_operand.vmem [shape: f32[1,128], index: 5, kind: input, shape index: {}]   ;;  %s3787_s6 = inlined_call_operand.vmem [shape: f32[2,16,16,128], index: 6, kind: output, shape index: {0}]   ;;  %s3788_s7 = inlined_call_operand.vmem [shape: f32[2,2,1,128], index: 7, kind: output, shape index: {1}]   ;;  %s3789_s8 = inlined_call_operand.vmem [shape: f32[2,2,1,128], index: 8, kind: output, shape index: {2}]  }
   0x1   :  { %s2648_s29 = smov 0   ;;  %s2650_s30 = smov 0  }
   0x2   :  { %s2652_s9 = smov 0  }
   0x3 LB: > { %s28_s10 = sadd.s32 1, %s2588_s29  ;;  %s31_s11 = sadd.s32 1, %s2592_s30  ;;  %s2596_s9 = sphi %s2652_s9, %s19_s9   ;;  %s2592_s30 = sphi %s2650_s30, %s3844_s30   ;;  %s2588_s29 = sphi %s2648_s29, %s3843_s29   ;;  %s2584_s28 = sphi %s2646_s28, %s3842_s28   ;;  %s2580_s27 = sphi %s2644_s27, %s3841_s27  }
   0x4   : > { %p29_p0 = scmp.ge.s32.totalorder %s28_s10, 2  ;;  %p2042_p1 = scmp.ge.s32.totalorder %s2596_s9, 1 }
   0x5   : > { %p357_p2 = scmp.lt.s32.totalorder %s2596_s9, 5 }
   0x6   : > { %s3846_s10 = smov (%p29_p0, %s28_s10), 0  ;;  %s3848_s11 = smov (!%p29_p0, %s31_s11), %s2592_s30 }
   0x7   : > { %3790 = sst [smem:[#allocation3_spill]] %s3846_s10  ;;  %p358_p3 = pnand %p2042_p1, %p357_p2 }
   0x8   : > { %p33_p4 = scmp.ge.s32.totalorder %s3848_s11, 2 }
   0x9   : > { %361 = sbr.rel (%p358_p3) target bundleno = 430 (0x1ae), region = 44 }
   0xa   : > { %s3850_s11 = smov (%p33_p4, %s3848_s11), 0 }
   0xb   : > { %3791 = sst [smem:[#allocation4_spill]] %s3850_s11 }
   0xe   : > { %v888_v0 = vld [vmem:[%s3785_s4 + $0xf8] sm:$0xff]  ;;  %s2688_s18 = sshll.u32 %s2580_s27, 3  ;;  %v887_v4 = vld [vmem:[%s3785_s4 + $0xf0] sm:$0xff]  ;;  %v2598_v6 = vmov 0.0   ;;  %v886_v9 = vld [vmem:[%s3785_s4 + $0xe8] sm:$0xff]  ;;  %p442_p6 = scmp.lt.s32.totalorder %s2584_s28, 1 }
   0xf   : > { %v920_v1 = vld [vmem:[%s3785_s4 + $0x1f8] sm:$0xff]  ;;  %2077 = vmatprep.subr.mxu0 %v888_v0  ;;  %v919_v5 = vld [vmem:[%s3785_s4 + $0x1f0] sm:$0xff]  ;;  %p444_p5 = scmp.lt.s32.totalorder %s2688_s18, 15  ;;  %601 = vst [vmem:[#allocation2] sm:$0x1] %v2598_v6  ;;  %s2711_s16 = sadd.s32 4294967295, %s2688_s18 }
  0x10   : > { %v872_v2 = vld [vmem:[%s3785_s4 + $0x78] sm:$0xff]  ;;  %2157 = vmatprep.subr.mxu1 %v920_v1  ;;  %602 = vst [vmem:[#allocation2 + $0x18] sm:$0x1] %v2598_v6  ;;  %603 = vst [vmem:[#allocation2 + $0x30] sm:$0x1] %v2598_v6  ;;  %v871_v7 = vld [vmem:[%s3785_s4 + $0x70] sm:$0xff] }
  0x11   : > { %v904_v3 = vld [vmem:[%s3785_s4 + $0x178] sm:$0xff]  ;;  %604 = vst [vmem:[#allocation2 + $0x48] sm:$0x1] %v2598_v6  ;;  %605 = vst [vmem:[#allocation2 + $0x60] sm:$0x1] %v2598_v6  ;;  %2078 = vmatpush3.msra.mxu0 %v872_v2  ;;  %v903_v8 = vld [vmem:[%s3785_s4 + $0x170] sm:$0xff] }
  0x12   : > { %606 = vst [vmem:[#allocation2 + $0x78] sm:$0x1] %v2598_v6  ;;  %607 = vst [vmem:[#allocation2 + $0x90] sm:$0x1] %v2598_v6  ;;  %2158 = vmatpush3.msra.mxu1 %v904_v3  ;;  %2079 = vmatprep.subr.mxu0 %v887_v4  ;;  %v918_v10 = vld [vmem:[%s3785_s4 + $0x1e8] sm:$0xff]  ;;  %v885_v13 = vld [vmem:[%s3785_s4 + $0xe0] sm:$0xff] }
  0x13   : > { %608 = vst [vmem:[#allocation2 + $0xa8] sm:$0x1] %v2598_v6  ;;  %609 = vst [vmem:[#allocation2 + $0xc0] sm:$0x1] %v2598_v6  ;;  %2159 = vmatprep.subr.mxu1 %v919_v5  ;;  %v870_v11 = vld [vmem:[%s3785_s4 + $0x68] sm:$0xff]  ;;  %2080 = vmatpush3.msra.mxu0 %v871_v7  ;;  %v917_v14 = vld [vmem:[%s3785_s4 + $0x1e0] sm:$0xff] }
  0x14   : > { %610 = vst [vmem:[#allocation2 + $0xd8] sm:$0x1] %v2598_v6  ;;  %611 = vst [vmem:[#allocation2 + $0x11] sm:$0x1] %v2598_v6  ;;  %v902_v12 = vld [vmem:[%s3785_s4 + $0x168] sm:$0xff]  ;;  %2160 = vmatpush3.msra.mxu1 %v903_v8  ;;  %s2731_s13 = scalar_select %p444_p5, %s2688_s18, 15  ;;  %2081 = vmatprep.subr.mxu0 %v886_v9 }
  0x15   : > { %612 = vst [vmem:[#allocation2 + $0x29] sm:$0x1] %v2598_v6  ;;  %613 = vst [vmem:[#allocation2 + $0x41] sm:$0x1] %v2598_v6  ;;  %2161 = vmatprep.subr.mxu1 %v918_v10  ;;  %v869_v15 = vld [vmem:[%s3785_s4 + $0x60] sm:$0xff]  ;;  %p454_p7 = scmp.gt.s32.totalorder %s2711_s16, 0  ;;  %2082 = vmatpush3.msra.mxu0 %v870_v11 }
  0x16   : > { %614 = vst [vmem:[#allocation2 + $0x59] sm:$0x1] %v2598_v6  ;;  %615 = vst [vmem:[#allocation2 + $0x71] sm:$0x1] %v2598_v6  ;;  %v901_v16 = vld [vmem:[%s3785_s4 + $0x160] sm:$0xff]  ;;  %2162 = vmatpush3.msra.mxu1 %v902_v12  ;;  %v884_v17 = vld [vmem:[%s3785_s4 + $0xd8] sm:$0xff]  ;;  %2083 = vmatprep.subr.mxu0 %v885_v13 }
  0x17   : > { %616 = vst [vmem:[#allocation2 + $0x89] sm:$0x1] %v2598_v6  ;;  %617 = vst [vmem:[#allocation2 + $0xa1] sm:$0x1] %v2598_v6  ;;  %v916_v18 = vld [vmem:[%s3785_s4 + $0x1d8] sm:$0xff]  ;;  %s3852_s28 = smov (!%p442_p6, %s2584_s28), 1  ;;  %2163 = vmatprep.subr.mxu1 %v917_v14  ;;  %2084 = vmatpush3.msra.mxu0 %v869_v15 }
  0x18   : > { %618 = vst [vmem:[#allocation2 + $0xb9] sm:$0x1] %v2598_v6  ;;  %619 = vst [vmem:[#allocation2 + $0xd1] sm:$0x1] %v2598_v6  ;;  %v868_v19 = vld [vmem:[%s3785_s4 + $0x58] sm:$0xff]  ;;  %p2049_p8 = scmp.lt.s32.totalorder %s2711_s16, 15  ;;  %2164 = vmatpush3.msra.mxu1 %v901_v16  ;;  %2085 = vmatprep.subr.mxu0 %v884_v17 }
  0x19   : > { %620 = vst [vmem:[#allocation2 + $0xe9] sm:$0x1] %v2598_v6  ;;  %v900_v20 = vld [vmem:[%s3785_s4 + $0x158] sm:$0xff]  ;;  %v883_v21 = vld [vmem:[%s3785_s4 + $0xd0] sm:$0xff]  ;;  %s2044_s20 = sshll.u32 %s2731_s13, 1  ;;  %2165 = vmatprep.subr.mxu1 %v916_v18  ;;  %2086 = vmatpush3.msra.mxu0 %v868_v19  ;;  %v882_v25 = vld [vmem:[%s3785_s4 + $0xc8] sm:$0xff] }
  0x1a   : > { %v915_v22 = vld [vmem:[%s3785_s4 + $0x1d0] sm:$0xff]  ;;  %s455_s25 = scalar_select %p454_p7, %s2711_s16, 0  ;;  %2166 = vmatpush3.msra.mxu1 %v900_v20  ;;  %v914_v26 = vld [vmem:[%s3785_s4 + $0x1c8] sm:$0xff]  ;;  %2087 = vmatprep.subr.mxu0 %v883_v21  ;;  %v881_v29 = vld [vmem:[%s3785_s4 + $0xc0] sm:$0xff]  ;;  %vm709_vm1 = vcmask 1046528   ;;  %vm766_vm2 = vcmask 1045504  }
  0x1b   : > { %v867_v23 = vld [vmem:[%s3785_s4 + $0x50] sm:$0xff]  ;;  %s2781_s15 = sshll.u32 %s3852_s28, 5  ;;  %2167 = vmatprep.subr.mxu1 %v915_v22  ;;  %v866_v27 = vld [vmem:[%s3785_s4 + $0x48] sm:$0xff]  ;;  %v913_v30 = vld [vmem:[%s3785_s4 + $0x1c0] sm:$0xff]  ;;  %p638_p9 = scmp.eq.s32.totalorder %s2580_s27, 0 }
  0x1c   : > { %v899_v24 = vld [vmem:[%s3785_s4 + $0x150] sm:$0xff]  ;;  %v898_v28 = vld [vmem:[%s3785_s4 + $0x148] sm:$0xff]  ;;  %s3854_s25 = smov (!%p2049_p8, %s455_s25), 15  ;;  %2088 = vmatpush3.msra.mxu0 %v867_v23  ;;  %s2798_s14 = sadd.s32 %s2781_s15, %s2044_s20  ;;  %v865_v31 = vld [vmem:[%s3785_s4 + $0x40] sm:$0xff] }
  0x1d   : > { %2168 = vmatpush3.msra.mxu1 %v899_v24  ;;  %2089 = vmatprep.subr.mxu0 %v882_v25  ;;  %v897_v32 = vld [vmem:[%s3785_s4 + $0x140] sm:$0xff]  ;;  %s2054_s21 = sshll.u32 %s3854_s25, 1  ;;  %v880_v33 = vld [vmem:[%s3785_s4 + $0xb8] sm:$0xff]  ;;  %v879_v37 = vld [vmem:[%s3785_s4 + $0xb0] sm:$0xff]  ;;  %s3792_s20 = sshll.u32 %s2798_s14, 3 }
  0x1e   : > { %2169 = vmatprep.subr.mxu1 %v914_v26  ;;  %2090 = vmatpush3.msra.mxu0 %v866_v27  ;;  %v912_v34 = vld [vmem:[%s3785_s4 + $0x1b8] sm:$0xff]  ;;  %s462_s26 = sadd.s32 %s2054_s21, %s2781_s15  ;;  %v911_v38 = vld [vmem:[%s3785_s4 + $0x1b0] sm:$0xff]  ;;  %v878_v41 = vld [vmem:[%s3785_s4 + $0xa8] sm:$0xff]  ;;  %s2863_s12 = scalar_lea.vmem %s3781_s0, %s3792_s20 }
  0x1f   : > { %2170 = vmatpush3.msra.mxu1 %v898_v28  ;;  %2091 = vmatprep.subr.mxu0 %v881_v29  ;;  %v864_v35 = vld [vmem:[%s3785_s4 + $0x38] sm:$0xff]  ;;  %s2056_s16 = sshll.u32 %s462_s26, 3  ;;  %v863_v39 = vld [vmem:[%s3785_s4 + $0x30] sm:$0xff]  ;;  %v910_v42 = vld [vmem:[%s3785_s4 + $0x1a8] sm:$0xff]  ;;  %s470_s19 = sadd.s32 8, %s2688_s18 }
  0x20   : > { %2171 = vmatprep.subr.mxu1 %v913_v30  ;;  %v896_v36 = vld [vmem:[%s3785_s4 + $0x138] sm:$0xff]  ;;  %2092 = vmatpush3.msra.mxu0 %v865_v31  ;;  %v895_v40 = vld [vmem:[%s3785_s4 + $0x130] sm:$0xff]  ;;  %s2835_s25 = scalar_select %p638_p9, 1, 0  ;;  %v862_v43 = vld [vmem:[%s3785_s4 + $0x28] sm:$0xff] }
  0x21   : > { %2172 = vmatpush3.msra.mxu1 %v897_v32  ;;  %2093 = vmatprep.subr.mxu0 %v880_v33  ;;  %s464_s26 = scalar_lea.vmem %s3782_s1, %s2056_s16  ;;  %v894_v44 = vld [vmem:[%s3785_s4 + $0x128] sm:$0xff]  ;;  %v877_v45 = vld [vmem:[%s3785_s4 + $0xa0] sm:$0xff]  ;;  %v876_v49 = vld [vmem:[%s3785_s4 + $0x98] sm:$0xff]  ;;  %p2983_p10 = scmp.lt.s32.totalorder %s470_s19, 15 }
  0x22   : > { %2173 = vmatprep.subr.mxu1 %v912_v34  ;;  %2094 = vmatpush3.msra.mxu0 %v864_v35  ;;  %v909_v46 = vld [vmem:[%s3785_s4 + $0x1a0] sm:$0xff]  ;;  %v908_v53 = vld [vmem:[%s3785_s4 + $0x198] sm:$0xff]  ;;  %v586_v54 = vld [vmem:[%s464_s26 + $0x8] sm:$0xff]  ;;  %v640_v56 = vstv %s2835_s25  ;;  %p646_p11 = scmp.eq.s32.totalorder %s2580_s27, 1  ;;  %s3818_s17 = sshll.u32 %s2798_s14, 3 }
  0x23   : > { %2174 = vmatpush3.msra.mxu1 %v896_v36  ;;  %2095 = vmatprep.subr.mxu0 %v879_v37  ;;  %v861_v47 = vld [vmem:[%s3785_s4 + $0x20] sm:$0xff]  ;;  %v860_v58 = vld [vmem:[%s3785_s4 + $0x18] sm:$0xff]  ;;  %v514_v62 = vld [vmem:[%s2863_s12 + $0x8] sm:$0xff]  ;;  %vm2915_vm0 = vcmp.eq.s32.totalorder %v640_v56, 1  ;;  %s3856_s19 = smov (!%p2983_p10, %s470_s19), 15  ;;  %p499_p12 = scmp.lt.s32.totalorder %s2580_s27, 1 }
  0x24   : > { %2175 = vmatprep.subr.mxu1 %v911_v38  ;;  %2096 = vmatpush3.msra.mxu0 %v863_v39  ;;  %v893_v48 = vld [vmem:[%s3785_s4 + $0x120] sm:$0xff]  ;;  %v892_v59 = vld [vmem:[%s3785_s4 + $0x118] sm:$0xff]  ;;  %v875_v63 = vld [vmem:[%s3785_s4 + $0x90] sm:$0xff]  ;;  %s3858_s19 = smov (!%p2983_p10, %s3856_s19), 15  ;;  %s2068_s14 = sshll.u32 %s3852_s28, 1 }
  0x25   : > { %2176 = vmatpush3.msra.mxu1 %v895_v40  ;;  %2097 = vmatprep.subr.mxu0 %v878_v41  ;;  %v2877_v50 = vld [vmem:[%s3784_s3] ss:$0 sm:$0xff]  ;;  %v2882_v51 = vld [vmem:[%s3784_s3 + $0x1] ss:$0 sm:$0xff]  ;;  %v907_v0 = vld [vmem:[%s3785_s4 + $0x190] sm:$0xff]  ;;  %s3860_s27 = smov (!%p499_p12, %s2580_s27), 1 }
  0x26   : > { %2177 = vmatprep.subr.mxu1 %v910_v42  ;;  %v585_v52 = vld [vmem:[%s464_s26] sm:$0xff]  ;;  %2098 = vmatpush3.msra.mxu0 %v862_v43  ;;  %v588_v60 = vmul.f32 %v2877_v50, %v586_v54  ;;  %v534_v2 = vmul.f32 %v2877_v50, %v514_v62  ;;  %v515_v3 = vld [vmem:[%s2863_s12 + $0x10] sm:$0xff]  ;;  %v516_v10 = vld [vmem:[%s2863_s12 + $0x18] sm:$0xff]  ;;  %s3088_s26 = sshll.u32 %s3858_s19, 1  ;;  %s502_s22 = sadd.s32 %s2068_s14, %s3860_s27 }
  0x27   : > { %2178 = vmatpush3.msra.mxu1 %v894_v44  ;;  %v587_v55 = vmul.f32 %v2877_v50, %v585_v52  ;;  %v513_v57 = vld [vmem:[%s2863_s12] sm:$0xff]  ;;  %2099 = vmatprep.subr.mxu0 %v877_v45  ;;  %v859_v4 = vld [vmem:[%s3785_s4 + $0x10] sm:$0xff]  ;;  %v535_v9 = vmul.f32 %v2877_v50, %v515_v3  ;;  %v874_v11 = vld [vmem:[%s3785_s4 + $0x88] sm:$0xff]  ;;  %v536_v15 = vmul.f32 %v2877_v50, %v516_v10  ;;  %s479_s13 = sadd.s32 %s3088_s26, %s2781_s15  ;;  %s503_s20 = scalar_lea.vmem %s3788_s7, %s502_s22 }
  0x28   : > { %2179 = vmatprep.subr.mxu1 %v909_v46  ;;  %v533_v61 = vmul.f32 %v2877_v50, %v513_v57  ;;  %2100 = vmatpush3.msra.mxu0 %v861_v47  ;;  %v891_v5 = vld [vmem:[%s3785_s4 + $0x110] sm:$0xff]  ;;  %v590_v6 = vadd.f32 %v2882_v51, %v588_v60  ;;  %v906_v12 = vld [vmem:[%s3785_s4 + $0x188] sm:$0xff]  ;;  %v554_v14 = vadd.f32 %v2882_v51, %v534_v2  ;;  %v517_v16 = vld [vmem:[%s2863_s12 + $0x20] sm:$0xff]  ;;  %s2063_s26 = sshll.u32 %s479_s13, 3  ;;  %s510_s21 = scalar_lea.vmem %s3789_s8, %s502_s22 }
  0x29   : > { %2180 = vmatpush3.msra.mxu1 %v893_v48  ;;  %v589_v1 = vadd.f32 %v2882_v51, %v587_v55  ;;  %2101 = vmatprep.subr.mxu0 %v876_v49  ;;  %v858_v17 = vld [vmem:[%s3785_s4 + $0x8] sm:$0xff]  ;;  %v555_v21 = vadd.f32 %v2882_v51, %v535_v9  ;;  %v537_v22 = vmul.f32 %v2877_v50, %v517_v16  ;;  %v873_v23 = vld [vmem:[%s3785_s4 + $0x80] sm:$0xff]  ;;  %v952_v35 = vld [vmem:[%s3785_s4 + $0x2f8] sm:$0xff]  ;;  %s3168_s16 = scalar_lea.vmem %s3783_s2, %s2063_s26  ;;  %s3688_s26 = scalar_lea.vmem %s3787_s6, %s3818_s17 }
  0x2a   : > { %2181 = vmatprep.subr.mxu1 %v908_v53  ;;  %v553_v8 = vadd.f32 %v2882_v51, %v533_v61  ;;  %2102 = vmatpush3.msra.mxu0 %v860_v58  ;;  %v890_v18 = vld [vmem:[%s3785_s4 + $0x108] sm:$0xff]  ;;  %v592_v19 = vmax.f32 %v590_v6, 0.0  ;;  %v905_v24 = vld [vmem:[%s3785_s4 + $0x180] sm:$0xff]  ;;  %v570_v26 = vmax.f32 %v554_v14, 0.0  ;;  %v556_v27 = vadd.f32 %v2882_v51, %v536_v15  ;;  %v984_v37 = vld [vmem:[%s3785_s4 + $0x3f8] sm:$0xff] }
  0x2b   : > { %2182 = vmatpush3.msra.mxu1 %v892_v59  ;;  %v591_v13 = vmax.f32 %v589_v1, 0.0  ;;  %2103 = vmatprep.subr.mxu0 %v875_v63  ;;  %v518_v28 = vld [vmem:[%s2863_s12 + $0x28] sm:$0xff]  ;;  %v857_v29 = vld [vmem:[%s3785_s4] sm:$0xff]  ;;  %v571_v32 = vmax.f32 %v555_v21, 0.0  ;;  %v557_v33 = vadd.f32 %v2882_v51, %v537_v22  ;;  %v519_v38 = vld [vmem:[%s2863_s12 + $0x30] sm:$0xff] }
  0x2c   : > { %2183 = vmatprep.subr.mxu1 %v907_v0  ;;  %v569_v20 = vmax.f32 %v553_v8, 0.0  ;;  %2104 = vmatpush3.msra.mxu0 %v859_v4  ;;  %v643_v30 = vsel %vm2915_vm0, 0.0, %v592_v19  ;;  %v889_v31 = vld [vmem:[%s3785_s4 + $0x100] sm:$0xff]  ;;  %v538_v34 = vmul.f32 %v2877_v50, %v518_v28  ;;  %623 = vst [vmem:[#allocation2 + $0x21] sm:$0xff] %v570_v26  ;;  %v572_v36 = vmax.f32 %v556_v27, 0.0  ;;  %v520_v42 = vld [vmem:[%s2863_s12 + $0x38] sm:$0xff] }
  0x2d   : > { %2184 = vmatpush3.msra.mxu1 %v891_v5  ;;  %v642_v25 = vsel %vm2915_vm0, 0.0, %v591_v13  ;;  %2105 = vmatprep.subr.mxu0 %v874_v11  ;;  %645 = vst [vmem:[#allocation2 + $0x9] sm:$0xff] %v643_v30  ;;  %624 = vst [vmem:[#allocation2 + $0x31] sm:$0xff] %v571_v32  ;;  %v573_v39 = vmax.f32 %v557_v33, 0.0  ;;  %v539_v41 = vmul.f32 %v2877_v50, %v519_v38  ;;  %v521_v53 = vld [vmem:[%s2863_s12 + $0x40] sm:$0xff]  ;;  %v936_v3 = vld [vmem:[%s3785_s4 + $0x278] sm:$0xff] }
  0x2e   : > { %2185 = vmatprep.subr.mxu1 %v906_v12  ;;  %644 = vst [vmem:[#allocation2 + $0x1] sm:$0xff] %v642_v25  ;;  %622 = vst [vmem:[#allocation2 + $0x19] sm:$0xff] %v569_v20  ;;  %2106 = vmatpush3.msra.mxu0 %v858_v17  ;;  %v558_v40 = vadd.f32 %v2882_v51, %v538_v34  ;;  %v540_v43 = vmul.f32 %v2877_v50, %v520_v42  ;;  %v951_v6 = vld [vmem:[%s3785_s4 + $0x2f0] sm:$0xff]  ;;  %v968_v8 = vld [vmem:[%s3785_s4 + $0x378] sm:$0xff]  ;;  %s3191_s25 = scalar_select %p646_p11, 1, 0 }
  0x2f   : > { %2186 = vmatpush3.msra.mxu1 %v890_v18  ;;  %2107 = vmatprep.subr.mxu0 %v873_v23  ;;  %625 = vst [vmem:[#allocation2 + $0x39] sm:$0xff] %v572_v36  ;;  %626 = vst [vmem:[#allocation2 + $0x49] sm:$0xff] %v573_v39  ;;  %v559_v45 = vadd.f32 %v2882_v51, %v539_v41  ;;  %v541_v0 = vmul.f32 %v2877_v50, %v521_v53  ;;  %v935_v10 = vld [vmem:[%s3785_s4 + $0x270] sm:$0xff]  ;;  %v522_v13 = vld [vmem:[%s2863_s12 + $0x48] sm:$0xff] }
  0x30   : > { %2187 = vmatprep.subr.mxu1 %v905_v24  ;;  %2108 = vmatpush3.msra.mxu0 %v857_v29  ;;  %v574_v44 = vmax.f32 %v558_v40, 0.0  ;;  %v560_v46 = vadd.f32 %v2882_v51, %v540_v43  ;;  %v950_v17 = vld [vmem:[%s3785_s4 + $0x2e8] sm:$0xff]  ;;  %v983_v21 = vld [vmem:[%s3785_s4 + $0x3f0] sm:$0xff]  ;;  %v542_v22 = vmul.f32 %v2877_v50, %v522_v13  ;;  %v949_v25 = vld [vmem:[%s3785_s4 + $0x2e0] sm:$0xff] }
  0x31   : > { %2188 = vmatpush3.msra.mxu1 %v889_v31  ;;  %2237 = vmatprep.subr.mxu0 %v952_v35  ;;  %v575_v47 = vmax.f32 %v559_v45, 0.0  ;;  %v561_v15 = vadd.f32 %v2882_v51, %v541_v0  ;;  %v934_v20 = vld [vmem:[%s3785_s4 + $0x268] sm:$0xff]  ;;  %v523_v26 = vld [vmem:[%s2863_s12 + $0x50] sm:$0xff]  ;;  %v524_v30 = vld [vmem:[%s2863_s12 + $0x58] sm:$0xff] }
  0x32   : > { %2317 = vmatprep.subr.mxu1 %v984_v37  ;;  %627 = vst [vmem:[#allocation2 + $0x51] sm:$0xff] %v574_v44  ;;  %v576_v52 = vmax.f32 %v560_v46, 0.0  ;;  %v933_v32 = vld [vmem:[%s3785_s4 + $0x260] sm:$0xff]  ;;  %v948_v33 = vld [vmem:[%s3785_s4 + $0x2d8] sm:$0xff]  ;;  %v967_v38 = vld [vmem:[%s3785_s4 + $0x370] sm:$0xff]  ;;  %v562_v39 = vadd.f32 %v2882_v51, %v542_v22  ;;  %v543_v40 = vmul.f32 %v2877_v50, %v523_v26  ;;  %v544_v44 = vmul.f32 %v2877_v50, %v524_v30 }
  0x33   : > { %628 = vst [vmem:[#allocation2 + $0x61] sm:$0xff] %v575_v47  ;;  %v660_v7 = vld [vmem:[#allocation2 + $0x28] sm:$0x3]  ;;  %v577_v29 = vmax.f32 %v561_v15, 0.0  ;;  %v525_v34 = vld [vmem:[%s2863_s12 + $0x60] sm:$0xff]  ;;  %v932_v43 = vld [vmem:[%s3785_s4 + $0x258] sm:$0xff] }
  0x34   : > { %v657_v57 = vld [vmem:[#allocation2 + $0x10] sm:$0x3]  ;;  %629 = vst [vmem:[#allocation2 + $0x69] sm:$0xff] %v576_v52  ;;  %v718_v18 = vrot.slane %v660_v7, 1  ;;  %v775_v24 = vrot.slane %v660_v7, 2  ;;  %v526_v41 = vld [vmem:[%s2863_s12 + $0x68] sm:$0xff]  ;;  %v545_v52 = vmul.f32 %v2877_v50, %v525_v34 }
  0x35   : > { %v655_v48 = vld [vmem:[#allocation2] sm:$0xff]  ;;  %v2972_v49 = vld [vmem:[#allocation2 + $0x18] sm:$0xff]  ;;  %v656_v54 = vld [vmem:[#allocation2 + $0x8] sm:$0xff]  ;;  %v713_v61 = vrot.slane %v657_v57, 1  ;;  %v770_v62 = vrot.slane %v657_v57, 2  ;;  %630 = vst [vmem:[#allocation2 + $0x79] sm:$0xff] %v577_v29  ;;  %v546_v57 = vmul.f32 %v2877_v50, %v526_v41 }
  0x36   : > { %v710_v55 = vrot.slane %v655_v48, 1  ;;  %1217 = vmatprep.mubr.f32.mxu1 %v2972_v49  ;;  %v767_v56 = vrot.slane %v655_v48, 2  ;;  %v2977_v58 = vld [vmem:[#allocation2 + $0x20] sm:$0xff]  ;;  %v711_v59 = vrot.slane %v656_v54, 1  ;;  %v768_v60 = vrot.slane %v656_v54, 2  ;;  %v3008_v14 = vld [vmem:[#allocation2 + $0x30] sm:$0xff] }
  0x37   : > { %v715_v63 = vrot.slane %v2972_v49, 1  ;;  %v716_v5 = vrot.slane %v2977_v58, 1  ;;  %v772_v11 = vrot.slane %v2972_v49, 2  ;;  %v773_v12 = vrot.slane %v2977_v58, 2  ;;  %v3023_v19 = vld [vmem:[#allocation2 + $0x38] sm:$0xff]  ;;  %v527_v45 = vld [vmem:[%s2863_s12 + $0x70] sm:$0xff] }
  0x38   : > { %v712_v1 = vsel %vm709_vm1, %v710_v55, %v711_v59  ;;  %v769_v2 = vsel %vm766_vm2, %v767_v56, %v768_v60  ;;  %v714_v4 = vsel %vm709_vm1, %v711_v59, %v713_v61  ;;  %v771_v9 = vsel %vm766_vm2, %v768_v60, %v770_v62  ;;  %v3060_v37 = vld [vmem:[#allocation2 + $0x40] sm:$0x3]  ;;  %v3084_v47 = vld [vmem:[#allocation2 + $0x48] sm:$0xff]  ;;  %v947_v55 = vld [vmem:[%s3785_s4 + $0x2d0] sm:$0xff] }
  0x39   : > { %1072 = vmatprep.mubr.f32.mxu0 %v712_v1  ;;  %1218 = vmatmul.mubr.f32.vlgmr.msra.gmra.mxu1 %v769_v2  ;;  %v3018_v16 = vsel %vm709_vm1, %v715_v63, %v716_v5  ;;  %v3034_v23 = vsel %vm766_vm2, %v772_v11, %v773_v12  ;;  %v720_v27 = vrot.slane %v3008_v14, 1  ;;  %v721_v28 = vrot.slane %v3023_v19, 1  ;;  %v931_v62 = vld [vmem:[%s3785_s4 + $0x250] sm:$0xff]  ;;  %v982_v63 = vld [vmem:[%s3785_s4 + $0x3e8] sm:$0xff]  ;;  %v528_v2 = vld [vmem:[%s2863_s12 + $0x78] sm:$0xff] }
  0x3a   : > { %1073 = vmatmul.mubr.f32.vlgmr.msra.gmra.mxu0 %v655_v48  ;;  %1222 = vmatprep.mubr.f32.mxu1 %v2977_v58  ;;  %v3048_v31 = vsel %vm709_vm1, %v716_v5, %v718_v18  ;;  %v777_v35 = vrot.slane %v3008_v14, 2  ;;  %v778_v36 = vrot.slane %v3023_v19, 2  ;;  %v3071_v42 = vsel %vm766_vm2, %v773_v12, %v775_v24  ;;  %v930_v11 = vld [vmem:[%s3785_s4 + $0x248] sm:$0xff]  ;;  %v666_v18 = vld [vmem:[#allocation2 + $0x58] sm:$0x3]  ;;  %v929_v30 = vld [vmem:[%s3785_s4 + $0x240] sm:$0xff] }
  0x3b   : > { %2238 = vmatpush3.msra.mxu0 %v936_v3  ;;  %1077 = vmatprep.mubr.f32.mxu0 %v714_v4  ;;  %v3082_v46 = vsel %vm709_vm1, %v720_v27, %v721_v28  ;;  %v578_v48 = vmax.f32 %v562_v39, 0.0  ;;  %v723_v53 = vrot.slane %v3060_v37, 1  ;;  %v564_v56 = vadd.f32 %v2882_v51, %v544_v44  ;;  %v946_v3 = vld [vmem:[%s3785_s4 + $0x2c8] sm:$0xff]  ;;  %v3156_v27 = vld [vmem:[#allocation2 + $0x60] sm:$0xff]  ;;  %v944_v34 = vld [vmem:[%s3785_s4 + $0x2b8] sm:$0xff] }
  0x3c   : > { %2239 = vmatprep.subr.mxu0 %v951_v6  ;;  %2318 = vmatpush3.msra.mxu1 %v968_v8  ;;  %v547_v59 = vmul.f32 %v2877_v50, %v527_v45  ;;  %v3103_v60 = vsel %vm766_vm2, %v777_v35, %v778_v36  ;;  %v780_v61 = vrot.slane %v3060_v37, 2  ;;  %v565_v1 = vadd.f32 %v2882_v51, %v545_v52  ;;  %v980_v37 = vld [vmem:[%s3785_s4 + $0x3d8] sm:$0xff]  ;;  %v669_v44 = vld [vmem:[#allocation2 + $0x70] sm:$0x3] }
  0x3d   : > { %1223 = vmatmul.mubr.f32.gmra.mxu1 %v771_v9  ;;  %2240 = vmatpush3.msra.mxu0 %v935_v10  ;;  %631 = vst [vmem:[#allocation2 + $0x81] sm:$0xff] %v578_v48  ;;  %v580_v4 = vmax.f32 %v564_v56, 0.0  ;;  %v566_v5 = vadd.f32 %v2882_v51, %v546_v57  ;;  %v548_v7 = vmul.f32 %v2877_v50, %v528_v2  ;;  %v725_v8 = vrot.slane %v3084_v47, 1  ;;  %v964_v45 = vld [vmem:[%s3785_s4 + $0x358] sm:$0xff]  ;;  %v943_v48 = vld [vmem:[%s3785_s4 + $0x2b0] sm:$0xff] }
  0x3e   : > { %1078 = vmatmul.mubr.f32.gmra.mxu0 %v656_v54  ;;  %1227 = vmatprep.mubr.f32.mxu1 %v3008_v14  ;;  %v3091_v54 = vld [vmem:[#allocation2 + $0x50] sm:$0xff]  ;;  %v567_v6 = vadd.f32 %v2882_v51, %v547_v59  ;;  %v581_v9 = vmax.f32 %v565_v1, 0.0  ;;  %v3130_v10 = vsel %vm709_vm1, %v721_v28, %v723_v53  ;;  %v782_v22 = vrot.slane %v3084_v47, 2  ;;  %v3220_v57 = vld [vmem:[#allocation2 + $0x78] sm:$0xff] }
  0x3f   : > { %1082 = vmatprep.mubr.f32.mxu0 %v3018_v16  ;;  %2241 = vmatprep.subr.mxu0 %v950_v17  ;;  %633 = vst [vmem:[#allocation2 + $0x99] sm:$0xff] %v580_v4  ;;  %v582_v12 = vmax.f32 %v566_v5, 0.0  ;;  %v568_v15 = vadd.f32 %v2882_v51, %v548_v7  ;;  %v966_v17 = vld [vmem:[%s3785_s4 + $0x368] sm:$0xff]  ;;  %v783_v24 = vrot.slane %v3091_v54, 2  ;;  %v728_v29 = vrot.slane %v666_v18, 1 }
  0x40   : > { %2242 = vmatpush3.msra.mxu0 %v934_v20  ;;  %2319 = vmatprep.subr.mxu1 %v983_v21  ;;  %v583_v13 = vmax.f32 %v567_v6, 0.0  ;;  %v945_v20 = vld [vmem:[%s3785_s4 + $0x2c0] sm:$0xff]  ;;  %634 = vst [vmem:[#allocation2 + $0xa9] sm:$0xff] %v581_v9  ;;  %v3148_v21 = vsel %vm766_vm2, %v778_v36, %v780_v61  ;;  %v785_v36 = vrot.slane %v666_v18, 2  ;;  %v787_v52 = vrot.slane %v3156_v27, 2  ;;  %v594_v61 = vld [vmem:[%s3168_s16 + $0x8] sm:$0xff] }
  0x41   : > { %1228 = vmatmul.mubr.f32.gmra.mxu1 %v3034_v23  ;;  %2243 = vmatprep.subr.mxu0 %v949_v25  ;;  %v981_v25 = vld [vmem:[%s3785_s4 + $0x3e0] sm:$0xff]  ;;  %635 = vst [vmem:[#allocation2 + $0xb1] sm:$0xff] %v582_v12  ;;  %v584_v26 = vmax.f32 %v568_v15, 0.0  ;;  %v3182_v35 = vsel %vm766_vm2, %v782_v22, %v783_v24  ;;  %v733_v59 = vrot.slane %v669_v44, 1  ;;  %v790_v2 = vrot.slane %v669_v44, 2  ;;  %v942_v4 = vld [vmem:[%s3785_s4 + $0x2a8] sm:$0xff] }
  0x42   : > { %1083 = vmatmul.mubr.f32.gmra.mxu0 %v2972_v49  ;;  %1232 = vmatprep.mubr.f32.mxu1 %v3023_v19  ;;  %v563_v49 = vadd.f32 %v2882_v51, %v543_v40  ;;  %636 = vst [vmem:[#allocation2 + $0xc1] sm:$0xff] %v583_v13  ;;  %v730_v40 = vrot.slane %v3156_v27, 1  ;;  %v978_v6 = vld [vmem:[%s3785_s4 + $0x3c8] sm:$0xff]  ;;  %v596_v7 = vmul.f32 %v2877_v50, %v594_v61  ;;  %v941_v22 = vld [vmem:[%s3785_s4 + $0x2a0] sm:$0xff]  ;;  %v939_v61 = vld [vmem:[%s3785_s4 + $0x290] sm:$0xff] }
  0x43   : > { %1087 = vmatprep.mubr.f32.mxu0 %v3048_v31  ;;  %2244 = vmatpush3.msra.mxu0 %v933_v32  ;;  %637 = vst [vmem:[#allocation2 + $0xc9] sm:$0xff] %v584_v26  ;;  %v3171_v32 = vld [vmem:[#allocation2 + $0x68] sm:$0xff] }
  0x44   : > { %2245 = vmatprep.subr.mxu0 %v948_v33  ;;  %2320 = vmatpush3.msra.mxu1 %v967_v38  ;;  %v579_v0 = vmax.f32 %v563_v49, 0.0  ;;  %v965_v33 = vld [vmem:[%s3785_s4 + $0x360] sm:$0xff]  ;;  %v731_v41 = vrot.slane %v3171_v32, 1  ;;  %v3211_v49 = vsel %vm766_vm2, %v783_v24, %v785_v36  ;;  %v788_v53 = vrot.slane %v3171_v32, 2  ;;  %v962_v18 = vld [vmem:[%s3785_s4 + $0x348] sm:$0xff] }
  0x45   : > { %1233 = vmatmul.mubr.f32.gmra.mxu1 %v3071_v42  ;;  %2246 = vmatpush3.msra.mxu0 %v932_v43  ;;  %v593_v38 = vld [vmem:[%s3168_s16] sm:$0xff]  ;;  %v928_v43 = vld [vmem:[%s3785_s4 + $0x238] sm:$0xff]  ;;  %v598_v13 = vadd.f32 %v2882_v51, %v596_v7 }
  0x46   : > { %1088 = vmatmul.mubr.f32.gmra.mxu0 %v2977_v58  ;;  %1237 = vmatprep.mubr.f32.mxu1 %v3084_v47  ;;  %v726_v58 = vrot.slane %v3091_v54, 1  ;;  %632 = vst [vmem:[#allocation2 + $0x91] sm:$0xff] %v579_v0  ;;  %v595_v56 = vmul.f32 %v2877_v50, %v593_v38  ;;  %v648_v0 = vstv %s3191_s25  ;;  %v3231_v1 = vld [vmem:[#allocation2 + $0x80] sm:$0xff]  ;;  %v3242_v5 = vsel %vm766_vm2, %v787_v52, %v788_v53  ;;  %v926_v50 = vld [vmem:[%s3785_s4 + $0x228] sm:$0xff] }
  0x47   : > { %1092 = vmatprep.mubr.f32.mxu0 %v3082_v46  ;;  %2247 = vmatprep.subr.mxu0 %v947_v55  ;;  %v979_v55 = vld [vmem:[%s3785_s4 + $0x3d0] sm:$0xff]  ;;  %vm3253_vm3 = vcmp.eq.s32.totalorder %v648_v0, 1  ;;  %v736_v12 = vrot.slane %v3231_v1, 1  ;;  %v793_v24 = vrot.slane %v3231_v1, 2  ;;  %v600_v26 = vmax.f32 %v598_v13, 0.0  ;;  %v925_v36 = vld [vmem:[%s3785_s4 + $0x220] sm:$0xff] }
  0x48   : > { %2248 = vmatpush3.msra.mxu0 %v931_v62  ;;  %2321 = vmatprep.subr.mxu1 %v982_v63  ;;  %v3160_v28 = vsel %vm709_vm1, %v725_v8, %v726_v58  ;;  %v3194_v39 = vsel %vm709_vm1, %v726_v58, %v728_v29  ;;  %v3224_v62 = vsel %vm709_vm1, %v730_v40, %v731_v41  ;;  %v927_v63 = vld [vmem:[%s3785_s4 + $0x230] sm:$0xff]  ;;  %v961_v40 = vld [vmem:[%s3785_s4 + $0x340] sm:$0xff] }
  0x49   : > { %1238 = vmatmul.mubr.f32.gmra.mxu1 %v3103_v60  ;;  %2249 = vmatprep.subr.mxu0 %v946_v3  ;;  %v963_v3 = vld [vmem:[%s3785_s4 + $0x350] sm:$0xff]  ;;  %v597_v8 = vadd.f32 %v2882_v51, %v595_v56  ;;  %v3251_v58 = vsel %vm709_vm1, %v731_v41, %v733_v59  ;;  %v792_v51 = vrot.slane %v3220_v57, 2  ;;  %v940_v41 = vld [vmem:[%s3785_s4 + $0x298] sm:$0xff]  ;;  %v675_v59 = vld [vmem:[#allocation2 + $0xa0] sm:$0x3] }
  0x4a   : > { %1093 = vmatmul.mubr.f32.gmra.mxu0 %v3008_v14  ;;  %1242 = vmatprep.mubr.f32.mxu1 %v3091_v54  ;;  %v960_v56 = vld [vmem:[%s3785_s4 + $0x338] sm:$0xff]  ;;  %v743_v7 = vrot.slane %v675_v59, 1  ;;  %v3346_v9 = vld [vmem:[#allocation2 + $0xb0] sm:$0xff]  ;;  %v800_v13 = vrot.slane %v675_v59, 2 }
  0x4b   : > { %1097 = vmatprep.mubr.f32.mxu0 %v3130_v10  ;;  %2250 = vmatpush3.msra.mxu0 %v930_v11  ;;  %v735_v11 = vrot.slane %v3220_v57, 1  ;;  %v599_v15 = vmax.f32 %v597_v8, 0.0  ;;  %v959_v8 = vld [vmem:[%s3785_s4 + $0x330] sm:$0xff]  ;;  %v1000_v59 = vld [vmem:[%s3785_s4 + $0x478] sm:$0xff] }
  0x4c   : > { %2322 = vmatpush3.msra.mxu1 %v966_v17  ;;  %2251 = vmatprep.subr.mxu0 %v945_v20  ;;  %v3265_v17 = vsel %vm766_vm2, %v788_v53, %v790_v2  ;;  %v672_v20 = vld [vmem:[#allocation2 + $0x88] sm:$0x3] }
  0x4d   : > { %1243 = vmatmul.mubr.f32.gmra.mxu1 %v3148_v21  ;;  %2323 = vmatprep.subr.mxu1 %v981_v25  ;;  %v977_v25 = vld [vmem:[%s3785_s4 + $0x3c0] sm:$0xff]  ;;  %v650_v29 = vsel %vm3253_vm3, 0.0, %v599_v15  ;;  %v3294_v38 = vld [vmem:[#allocation2 + $0x98] sm:$0xff]  ;;  %v795_v44 = vrot.slane %v672_v20, 2  ;;  %v938_v15 = vld [vmem:[%s3785_s4 + $0x288] sm:$0xff] }
  0x4e   : > { %1098 = vmatmul.mubr.f32.gmra.mxu0 %v3023_v19  ;;  %1247 = vmatprep.mubr.f32.mxu1 %v3156_v27  ;;  %653 = vst [vmem:[#allocation2 + $0xd9] sm:$0xff] %v650_v29  ;;  %v741_v53 = vrot.slane %v3294_v38, 1  ;;  %v798_v2 = vrot.slane %v3294_v38, 2 }
  0x4f   : > { %1102 = vmatprep.mubr.f32.mxu0 %v3160_v28  ;;  %2252 = vmatpush3.msra.mxu0 %v929_v30  ;;  %v3283_v30 = vld [vmem:[#allocation2 + $0x90] sm:$0xff] }
  0x50   : > { %2324 = vmatpush3.msra.mxu1 %v965_v33  ;;  %2253 = vmatprep.subr.mxu0 %v944_v34  ;;  %v3286_v33 = vsel %vm709_vm1, %v735_v11, %v736_v12  ;;  %v738_v34 = vrot.slane %v672_v20, 1  ;;  %v740_v52 = vrot.slane %v3283_v30, 1  ;;  %v797_v0 = vrot.slane %v3283_v30, 2  ;;  %v974_v11 = vld [vmem:[%s3785_s4 + $0x3a8] sm:$0xff] }
  0x51   : > { %1248 = vmatmul.mubr.f32.gmra.mxu1 %v3182_v35  ;;  %2325 = vmatprep.subr.mxu1 %v980_v37  ;;  %v651_v37 = vsel %vm3253_vm3, 0.0, %v600_v26  ;;  %v958_v20 = vld [vmem:[%s3785_s4 + $0x328] sm:$0xff]  ;;  %v678_v26 = vld [vmem:[#allocation2 + $0xb8] sm:$0x3]  ;;  %v3381_v29 = vsel %vm766_vm2, %v798_v2, %v800_v13  ;;  %v969_v13 = vld [vmem:[%s3785_s4 + $0x380] sm:$0xff] }
  0x52   : > { %1103 = vmatmul.mubr.f32.gmra.mxu0 %v3084_v47  ;;  %1252 = vmatprep.mubr.f32.mxu1 %v3171_v32  ;;  %654 = vst [vmem:[#allocation2 + $0xe1] sm:$0xff] %v651_v37  ;;  %v937_v37 = vld [vmem:[%s3785_s4 + $0x280] sm:$0xff] }
  0x53   : > { %1107 = vmatprep.mubr.f32.mxu0 %v3194_v39  ;;  %2254 = vmatpush3.msra.mxu0 %v928_v43  ;;  %v3305_v43 = vsel %vm766_vm2, %v792_v51, %v793_v24  ;;  %v746_v51 = vrot.slane %v3346_v9, 1 }
  0x54   : > { %2326 = vmatpush3.msra.mxu1 %v964_v45  ;;  %2255 = vmatprep.subr.mxu0 %v943_v48  ;;  %v976_v45 = vld [vmem:[%s3785_s4 + $0x3b8] sm:$0xff]  ;;  %v3312_v48 = vsel %vm709_vm1, %v736_v12, %v738_v34  ;;  %v923_v12 = vld [vmem:[%s3785_s4 + $0x210] sm:$0xff] }
  0x55   : > { %1253 = vmatmul.mubr.f32.gmra.mxu1 %v3211_v49  ;;  %2327 = vmatprep.subr.mxu1 %v979_v55  ;;  %v924_v55 = vld [vmem:[%s3785_s4 + $0x218] sm:$0xff] }
  0x56   : > { %1108 = vmatmul.mubr.f32.gmra.mxu0 %v3091_v54  ;;  %1257 = vmatprep.mubr.f32.mxu1 %v3220_v57 }
  0x57   : > { %1112 = vmatprep.mubr.f32.mxu0 %v3224_v62  ;;  %2256 = vmatpush3.msra.mxu0 %v927_v63  ;;  %v3329_v63 = vsel %vm766_vm2, %v793_v24, %v795_v44  ;;  %v973_v24 = vld [vmem:[%s3785_s4 + $0x3a0] sm:$0xff] }
  0x58   : > { %2328 = vmatpush3.msra.mxu1 %v963_v3  ;;  %2257 = vmatprep.subr.mxu0 %v942_v4  ;;  %v975_v3 = vld [vmem:[%s3785_s4 + $0x3b0] sm:$0xff]  ;;  %v3337_v4 = vld [vmem:[#allocation2 + $0xa8] sm:$0xff]  ;;  %v957_v44 = vld [vmem:[%s3785_s4 + $0x320] sm:$0xff] }
  0x59   : > { %1258 = vmatmul.mubr.f32.gmra.mxu1 %v3242_v5  ;;  %2329 = vmatprep.subr.mxu1 %v978_v6  ;;  %v3340_v6 = vsel %vm709_vm1, %v740_v52, %v741_v53  ;;  %v802_v34 = vrot.slane %v3337_v4, 2  ;;  %v972_v52 = vld [vmem:[%s3785_s4 + $0x398] sm:$0xff] }
  0x5a   : > { %1113 = vmatmul.mubr.f32.gmra.mxu0 %v3156_v27  ;;  %1262 = vmatprep.mubr.f32.mxu1 %v3231_v1 }
  0x5b   : > { %1117 = vmatprep.mubr.f32.mxu0 %v3251_v58  ;;  %2258 = vmatpush3.msra.mxu0 %v926_v50  ;;  %v3357_v50 = vsel %vm766_vm2, %v797_v0, %v798_v2  ;;  %v971_v0 = vld [vmem:[%s3785_s4 + $0x390] sm:$0xff] }
  0x5c   : > { %2330 = vmatpush3.msra.mxu1 %v962_v18  ;;  %2259 = vmatprep.subr.mxu0 %v941_v22  ;;  %v3364_v18 = vsel %vm709_vm1, %v741_v53, %v743_v7  ;;  %v745_v22 = vrot.slane %v3337_v4, 1  ;;  %v921_v53 = vld [vmem:[%s3785_s4 + $0x200] sm:$0xff]  ;;  %v955_v7 = vld [vmem:[%s3785_s4 + $0x310] sm:$0xff] }
  0x5d   : > { %1263 = vmatmul.mubr.f32.gmra.mxu1 %v3265_v17  ;;  %2331 = vmatprep.subr.mxu1 %v977_v25  ;;  %v922_v25 = vld [vmem:[%s3785_s4 + $0x208] sm:$0xff] }
  0x5e   : > { %1118 = vmatmul.mubr.f32.gmra.mxu0 %v3171_v32  ;;  %1267 = vmatprep.mubr.f32.mxu1 %v3283_v30 }
  0x5f   : > { %1122 = vmatprep.mubr.f32.mxu0 %v3286_v33  ;;  %2260 = vmatpush3.msra.mxu0 %v925_v36  ;;  %v803_v36 = vrot.slane %v3346_v9, 2 }
  0x60   : > { %2332 = vmatpush3.msra.mxu1 %v961_v40  ;;  %2261 = vmatprep.subr.mxu0 %v940_v41  ;;  %v3389_v40 = vld [vmem:[#allocation2 + $0xc0] sm:$0xff]  ;;  %v3392_v41 = vsel %vm709_vm1, %v745_v22, %v746_v51 }
  0x61   : > { %1268 = vmatmul.mubr.f32.gmra.mxu1 %v3305_v43  ;;  %2333 = vmatprep.subr.mxu1 %v976_v45  ;;  %v748_v45 = vrot.slane %v678_v26, 1  ;;  %v985_v22 = vld [vmem:[%s3785_s4 + $0x400] sm:$0xff] }
  0x62   : > { %1123 = vmatmul.mubr.f32.gmra.mxu0 %v3220_v57  ;;  %1272 = vmatprep.mubr.f32.mxu1 %v3294_v38 }
  0x63   : > { %1127 = vmatprep.mubr.f32.mxu0 %v3312_v48  ;;  %2262 = vmatpush3.msra.mxu0 %v924_v55  ;;  %v3407_v55 = vsel %vm766_vm2, %v802_v34, %v803_v36  ;;  %v3420_v2 = vsel %vm709_vm1, %v746_v51, %v748_v45 }
  0x64   : > { %2334 = vmatpush3.msra.mxu1 %v960_v56  ;;  %2263 = vmatprep.subr.mxu0 %v939_v61  ;;  %v805_v56 = vrot.slane %v678_v26, 2  ;;  %v956_v61 = vld [vmem:[%s3785_s4 + $0x318] sm:$0xff] }
  0x65   : > { %1273 = vmatmul.mubr.f32.gmra.mxu1 %v3329_v63  ;;  %2335 = vmatprep.subr.mxu1 %v975_v3  ;;  %v3423_v3 = vld [vmem:[#allocation2 + $0xc8] sm:$0xff] }
  0x66   : > { %1128 = vmatmul.mubr.f32.gmra.mxu0 %v3231_v1  ;;  %1277 = vmatprep.mubr.f32.mxu1 %v3337_v4 }
  0x67   : > { %1132 = vmatprep.mubr.f32.mxu0 %v3340_v6  ;;  %2336 = vmatpush3.msra.mxu1 %v959_v8  ;;  %v3430_v8 = vsel %vm766_vm2, %v803_v36, %v805_v56 }
  0x68   : > { %2337 = vmatprep.subr.mxu1 %v974_v11  ;;  %2264 = vmatpush3.msra.mxu0 %v923_v12  ;;  %v970_v11 = vld [vmem:[%s3785_s4 + $0x388] sm:$0xff] }
  0x69   : > { %1278 = vmatmul.mubr.f32.gmra.mxu1 %v3357_v50  ;;  %2265 = vmatprep.subr.mxu0 %v938_v15  ;;  %v954_v12 = vld [vmem:[%s3785_s4 + $0x308] sm:$0xff]  ;;  %v953_v15 = vld [vmem:[%s3785_s4 + $0x300] sm:$0xff] }
  0x6a   : > { %1133 = vmatmul.mubr.f32.gmra.mxu0 %v3283_v30  ;;  %1282 = vmatprep.mubr.f32.mxu1 %v3346_v9 }
  0x6b   : > { %1137 = vmatprep.mubr.f32.mxu0 %v3364_v18  ;;  %2338 = vmatpush3.msra.mxu1 %v958_v20  ;;  %v999_v20 = vld [vmem:[%s3785_s4 + $0x470] sm:$0xff] }
  0x6c   : > { %2339 = vmatprep.subr.mxu1 %v973_v24  ;;  %2266 = vmatpush3.msra.mxu0 %v922_v25 }
  0x6d   : > { %1283 = vmatmul.mubr.f32.gmra.mxu1 %v3381_v29  ;;  %2267 = vmatprep.subr.mxu0 %v937_v37 }
  0x6e   : > { %1138 = vmatmul.mubr.f32.gmra.mxu0 %v3294_v38  ;;  %1287 = vmatprep.mubr.f32.mxu1 %v3389_v40 }
  0x6f   : > { %1142 = vmatprep.mubr.f32.mxu0 %v3392_v41  ;;  %2340 = vmatpush3.msra.mxu1 %v957_v44 }
  0x70   : > { %2341 = vmatprep.subr.mxu1 %v972_v52  ;;  %2268 = vmatpush3.msra.mxu0 %v921_v53 }
  0x71   : > { %1288 = vmatmul.mubr.f32.gmra.mxu1 %v3407_v55  ;;  %2429 = vmatprep.subr.mxu0 %v1000_v59 }
  0x72   : > { %1143 = vmatmul.mubr.f32.gmra.mxu0 %v3337_v4  ;;  %2342 = vmatpush3.msra.mxu1 %v956_v61 }
  0x73   : > { %2343 = vmatprep.subr.mxu1 %v971_v0  ;;  %1147 = vmatprep.mubr.f32.mxu0 %v3420_v2 }
  0x74   : > { %1292 = vmatprep.mubr.f32.mxu1 %v3423_v3  ;;  %2344 = vmatpush3.msra.mxu1 %v955_v7 }
  0x75   : > { %1293 = vmatmul.mubr.f32.gmra.mxu1 %v3430_v8  ;;  %2345 = vmatprep.subr.mxu1 %v970_v11 }
  0x76   : > { %1148 = vmatmul.mubr.f32.gmra.mxu0 %v3346_v9  ;;  %2346 = vmatpush3.msra.mxu1 %v954_v12 }
  0x77   : > { %2347 = vmatprep.subr.mxu1 %v969_v13  ;;  %1362 = vmatprep.mubr.f32.mxu0 %v3034_v23  ;;  %v998_v23 = vld [vmem:[%s3785_s4 + $0x468] sm:$0xff] }
  0x78   : > { %2348 = vmatpush3.msra.mxu1 %v953_v15  ;;  %1507 = vmatprep.mubr.f32.mxu1 %v3082_v46 }
  0x79   : > { %1508 = vmatmul.mubr.f32.vlgmr.msra.gmra.mxu1 %v3008_v14  ;;  %2485 = vmatprep.subr.mxu1 %v1000_v59  ;;  %v997_v14 = vld [vmem:[%s3785_s4 + $0x460] sm:$0xff] }
  0x7a   : > { %1363 = vmatmul.mubr.f32.vlgmr.msra.gmra.mxu0 %v3018_v16  ;;  %1512 = vmatprep.mubr.f32.mxu1 %v3130_v10  ;;  %v996_v16 = vld [vmem:[%s3785_s4 + $0x458] sm:$0xff] }
  0x7b   : > { %2430 = vmatpush3.msra.mxu0 %v1000_v59  ;;  %1367 = vmatprep.mubr.f32.mxu0 %v3071_v42  ;;  %v993_v42 = vld [vmem:[%s3785_s4 + $0x440] sm:$0xff] }
  0x7c   : > { %2431 = vmatprep.subr.mxu0 %v999_v20  ;;  %2501 = vmatpush3.msra.mxu1 %v1000_v59 }
  0x7d   : > { %1513 = vmatmul.mubr.f32.gmra.mxu1 %v3023_v19  ;;  %2432 = vmatpush3.msra.mxu0 %v999_v20  ;;  %v995_v19 = vld [vmem:[%s3785_s4 + $0x450] sm:$0xff] }
  0x7e   : > { %1368 = vmatmul.mubr.f32.gmra.mxu0 %v3048_v31  ;;  %1517 = vmatprep.mubr.f32.mxu1 %v3160_v28  ;;  %v994_v31 = vld [vmem:[%s3785_s4 + $0x448] sm:$0xff] }
  0x7f   : > { %1372 = vmatprep.mubr.f32.mxu0 %v3103_v60  ;;  %2433 = vmatprep.subr.mxu0 %v998_v23 }
  0x80   : > { %2434 = vmatpush3.msra.mxu0 %v998_v23  ;;  %2486 = vmatprep.subr.mxu1 %v999_v20 }
  0x81   : > { %1518 = vmatmul.mubr.f32.gmra.mxu1 %v3084_v47  ;;  %2435 = vmatprep.subr.mxu0 %v997_v14  ;;  %v991_v47 = vld [vmem:[%s3785_s4 + $0x430] sm:$0xff] }
  0x82   : > { %1373 = vmatmul.mubr.f32.gmra.mxu0 %v3082_v46  ;;  %1522 = vmatprep.mubr.f32.mxu1 %v3194_v39  ;;  %v992_v46 = vld [vmem:[%s3785_s4 + $0x438] sm:$0xff] }
  0x83   : > { %1377 = vmatprep.mubr.f32.mxu0 %v3148_v21  ;;  %2436 = vmatpush3.msra.mxu0 %v997_v14 }
  0x84   : > { %2437 = vmatprep.subr.mxu0 %v996_v16  ;;  %2502 = vmatpush3.msra.mxu1 %v999_v20 }
  0x85   : > { %1523 = vmatmul.mubr.f32.gmra.mxu1 %v3091_v54  ;;  %2438 = vmatpush3.msra.mxu0 %v996_v16  ;;  %v990_v54 = vld [vmem:[%s3785_s4 + $0x428] sm:$0xff] }
  0x86   : > { %1378 = vmatmul.mubr.f32.gmra.mxu0 %v3130_v10  ;;  %1527 = vmatprep.mubr.f32.mxu1 %v3224_v62  ;;  %v989_v10 = vld [vmem:[%s3785_s4 + $0x420] sm:$0xff] }
  0x87   : > { %1382 = vmatprep.mubr.f32.mxu0 %v3182_v35  ;;  %2439 = vmatprep.subr.mxu0 %v995_v19 }
  0x88   : > { %2440 = vmatpush3.msra.mxu0 %v995_v19  ;;  %2487 = vmatprep.subr.mxu1 %v998_v23 }
  0x89   : > { %1528 = vmatmul.mubr.f32.gmra.mxu1 %v3156_v27  ;;  %2441 = vmatprep.subr.mxu0 %v994_v31  ;;  %v988_v27 = vld [vmem:[%s3785_s4 + $0x418] sm:$0xff] }
  0x8a   : > { %1383 = vmatmul.mubr.f32.gmra.mxu0 %v3160_v28  ;;  %1532 = vmatprep.mubr.f32.mxu1 %v3251_v58  ;;  %v826_v28 = vrot.slane %v3389_v40, 1 }
  0x8b   : > { %1387 = vmatprep.mubr.f32.mxu0 %v3211_v49  ;;  %2503 = vmatpush3.msra.mxu1 %v998_v23 }
  0x8c   : > { %2442 = vmatpush3.msra.mxu0 %v994_v31  ;;  %2488 = vmatprep.subr.mxu1 %v997_v14 }
  0x8d   : > { %1533 = vmatmul.mubr.f32.gmra.mxu1 %v3171_v32  ;;  %2443 = vmatprep.subr.mxu0 %v993_v42  ;;  %v827_v32 = vrot.slane %v3423_v3, 1 }
  0x8e   : > { %1388 = vmatmul.mubr.f32.gmra.mxu0 %v3194_v39  ;;  %1537 = vmatprep.mubr.f32.mxu1 %v3286_v33  ;;  %v681_v39 = vld [vmem:[#allocation2 + $0xd0] sm:$0x3] }
  0x8f   : > { %1392 = vmatprep.mubr.f32.mxu0 %v3242_v5  ;;  %2504 = vmatpush3.msra.mxu1 %v997_v14  ;;  %v836_v25 = vrot.slane %v681_v39, 2 }
  0x90   : > { %2444 = vmatpush3.msra.mxu0 %v993_v42  ;;  %2489 = vmatprep.subr.mxu1 %v996_v16 }
  0x91   : > { %1538 = vmatmul.mubr.f32.gmra.mxu1 %v3220_v57  ;;  %2445 = vmatprep.subr.mxu0 %v992_v46  ;;  %v987_v57 = vld [vmem:[%s3785_s4 + $0x410] sm:$0xff] }
  0x92   : > { %1393 = vmatmul.mubr.f32.gmra.mxu0 %v3224_v62  ;;  %1542 = vmatprep.mubr.f32.mxu1 %v3312_v48  ;;  %v828_v62 = vsel %vm709_vm1, %v826_v28, %v827_v32 }
  0x93   : > { %1397 = vmatprep.mubr.f32.mxu0 %v3265_v17  ;;  %2505 = vmatpush3.msra.mxu1 %v996_v16 }
  0x94   : > { %2446 = vmatpush3.msra.mxu0 %v992_v46  ;;  %2490 = vmatprep.subr.mxu1 %v995_v19 }
  0x95   : > { %1543 = vmatmul.mubr.f32.gmra.mxu1 %v3231_v1  ;;  %2447 = vmatprep.subr.mxu0 %v991_v47  ;;  %v829_v1 = vrot.slane %v681_v39, 1 }
  0x96   : > { %1398 = vmatmul.mubr.f32.gmra.mxu0 %v3251_v58  ;;  %1547 = vmatprep.mubr.f32.mxu1 %v3340_v6  ;;  %v3536_v58 = vld [vmem:[#allocation2 + $0xd8] sm:$0xff] }
  0x97   : > { %1402 = vmatprep.mubr.f32.mxu0 %v3305_v43  ;;  %2506 = vmatpush3.msra.mxu1 %v995_v19  ;;  %v850_v37 = vrot.slane %v3536_v58, 2 }
  0x98   : > { %2448 = vmatpush3.msra.mxu0 %v991_v47  ;;  %2491 = vmatprep.subr.mxu1 %v994_v31 }
  0x99   : > { %1548 = vmatmul.mubr.f32.gmra.mxu1 %v3283_v30  ;;  %2449 = vmatprep.subr.mxu0 %v990_v54  ;;  %v3538_v30 = vld [vmem:[#allocation2 + $0xe0] sm:$0xff] }
  0x9a   : > { %1403 = vmatmul.mubr.f32.gmra.mxu0 %v3286_v33  ;;  %1552 = vmatprep.mubr.f32.mxu1 %v3364_v18  ;;  %v986_v33 = vld [vmem:[%s3785_s4 + $0x408] sm:$0xff] }
  0x9b   : > { %1407 = vmatprep.mubr.f32.mxu0 %v3329_v63  ;;  %2507 = vmatpush3.msra.mxu1 %v994_v31 }
  0x9c   : > { %2450 = vmatpush3.msra.mxu0 %v990_v54  ;;  %2492 = vmatprep.subr.mxu1 %v993_v42 }
  0x9d   : > { %1553 = vmatmul.mubr.f32.gmra.mxu1 %v3294_v38  ;;  %2451 = vmatprep.subr.mxu0 %v989_v10  ;;  %v830_v38 = vsel %vm709_vm1, %v827_v32, %v829_v1 }
  0x9e   : > { %1408 = vmatmul.mubr.f32.gmra.mxu0 %v3312_v48  ;;  %1557 = vmatprep.mubr.f32.mxu1 %v3392_v41  ;;  %v843_v48 = vrot.slane %v3536_v58, 1 }
  0x9f   : > { %1412 = vmatprep.mubr.f32.mxu0 %v3357_v50  ;;  %2508 = vmatpush3.msra.mxu1 %v993_v42 }
  0xa0   : > { %2452 = vmatpush3.msra.mxu0 %v989_v10  ;;  %2493 = vmatprep.subr.mxu1 %v992_v46 }
  0xa1   : > { %1558 = vmatmul.mubr.f32.gmra.mxu1 %v3337_v4  ;;  %2453 = vmatprep.subr.mxu0 %v988_v27  ;;  %v844_v4 = vrot.slane %v3538_v30, 1 }
  0xa2   : > { %1413 = vmatmul.mubr.f32.gmra.mxu0 %v3340_v6  ;;  %1562 = vmatprep.mubr.f32.mxu1 %v3420_v2  ;;  %v833_v6 = vrot.slane %v3389_v40, 2 }
  0xa3   : > { %1417 = vmatprep.mubr.f32.mxu0 %v3381_v29  ;;  %2509 = vmatpush3.msra.mxu1 %v992_v46  ;;  %v845_v51 = vsel %vm709_vm1, %v843_v48, %v844_v4 }
  0xa4   : > { %2454 = vmatpush3.msra.mxu0 %v988_v27  ;;  %2494 = vmatprep.subr.mxu1 %v991_v47 }
  0xa5   : > { %1563 = vmatmul.mubr.f32.gmra.mxu1 %v3346_v9  ;;  %2455 = vmatprep.subr.mxu0 %v987_v57  ;;  %v834_v9 = vrot.slane %v3423_v3, 2 }
  0xa6   : > { %1418 = vmatmul.mubr.f32.gmra.mxu0 %v3364_v18  ;;  %1567 = vmatprep.mubr.f32.mxu1 %v828_v62  ;;  %v684_v18 = vld [vmem:[#allocation2 + $0xe8] sm:$0x3] }
  0xa7   : > { %1422 = vmatprep.mubr.f32.mxu0 %v3407_v55  ;;  %2510 = vmatpush3.msra.mxu1 %v991_v47  ;;  %v835_v24 = vsel %vm766_vm2, %v833_v6, %v834_v9  ;;  %v846_v26 = vrot.slane %v684_v18, 1  ;;  %v837_v34 = vsel %vm766_vm2, %v834_v9, %v836_v25 }
  0xa8   : > { %2495 = vmatprep.subr.mxu1 %v990_v54  ;;  %2456 = vmatpush3.msra.mxu0 %v987_v57 }
  0xa9   : > { %1568 = vmatmul.mubr.f32.gmra.mxu1 %v3389_v40  ;;  %2457 = vmatprep.subr.mxu0 %v986_v33  ;;  %v847_v36 = vsel %vm709_vm1, %v844_v4, %v846_v26  ;;  %v851_v40 = vrot.slane %v3538_v30, 2 }
  0xaa   : > { %1423 = vmatmul.mubr.f32.gmra.mxu0 %v3392_v41  ;;  %1572 = vmatprep.mubr.f32.mxu1 %v830_v38 }
  0xab   : > { %1427 = vmatprep.mubr.f32.mxu0 %v3430_v8  ;;  %2511 = vmatpush3.msra.mxu1 %v990_v54 }
  0xac   : > { %2496 = vmatprep.subr.mxu1 %v989_v10  ;;  %2458 = vmatpush3.msra.mxu0 %v986_v33 }
  0xad   : > { %1573 = vmatmul.mubr.f32.gmra.mxu1 %v3423_v3  ;;  %2459 = vmatprep.subr.mxu0 %v985_v22 }
  0xae   : > { %1428 = vmatmul.mubr.f32.gmra.mxu0 %v3420_v2  ;;  %1577 = vmatprep.mubr.f32.mxu1 %v845_v51 }
  0xaf   : > { %1432 = vmatprep.mubr.f32.mxu0 %v835_v24  ;;  %2512 = vmatpush3.msra.mxu1 %v989_v10 }
  0xb0   : > { %2497 = vmatprep.subr.mxu1 %v988_v27  ;;  %2460 = vmatpush3.msra.mxu0 %v985_v22 }
  0xb1   : > { %1578 = vmatmul.mubr.f32.gmra.mxu1 %v3536_v58 }
  0xb2   : > { %1433 = vmatmul.mubr.f32.gmra.mxu0 %v828_v62  ;;  %2513 = vmatpush3.msra.mxu1 %v988_v27 }
  0xb3   : > { %2498 = vmatprep.subr.mxu1 %v987_v57  ;;  %1437 = vmatprep.mubr.f32.mxu0 %v837_v34 }
  0xb4   : > { %1582 = vmatprep.mubr.f32.mxu1 %v847_v36  ;;  %2514 = vmatpush3.msra.mxu1 %v987_v57 }
  0xb5   : > { %1583 = vmatmul.mubr.f32.gmra.mxu1 %v3538_v30  ;;  %2499 = vmatprep.subr.mxu1 %v986_v33 }
  0xb6   : > { %1438 = vmatmul.mubr.f32.gmra.mxu0 %v830_v38  ;;  %2515 = vmatpush3.msra.mxu1 %v986_v33 }
  0xb7   : > { %2500 = vmatprep.subr.mxu1 %v985_v22  ;;  %2461 = vmatprep.mubr.f32.mxu0 %v3103_v60  ;;  %v853_v60 = vrot.slane %v684_v18, 2 }
  0xb8   : > { %2516 = vmatpush3.msra.mxu1 %v985_v22  ;;  %2473 = vmatprep.mubr.f32.mxu1 %v3357_v50  ;;  %v852_v50 = vsel %vm766_vm2, %v850_v37, %v851_v40 }
  0xb9   : > { %2474 = vmatmul.mubr.f32.vlgmr.msra.gmra.mxu1 %v3381_v29 }
  0xba   : > { %2462 = vmatmul.mubr.f32.vlgmr.msra.gmra.mxu0 %v3148_v21  ;;  %2476 = vmatprep.mubr.f32.mxu1 %v3407_v55  ;;  %v854_v21 = vsel %vm766_vm2, %v851_v40, %v853_v60 }
  0xbb   : > { %2464 = vmatprep.mubr.f32.mxu0 %v3182_v35 }
  0xbd   : > { %2477 = vmatmul.mubr.f32.gmra.mxu1 %v3430_v8 }
  0xbe   : > { %2465 = vmatmul.mubr.f32.gmra.mxu0 %v3211_v49  ;;  %2479 = vmatprep.mubr.f32.mxu1 %v835_v24 }
  0xbf   : > { %2467 = vmatprep.mubr.f32.mxu0 %v3242_v5  ;;  %v3584_v5 = vld [vmem:[%s3786_s5] ss:$0 sm:$0xff] }
  0xc1   : > { %2480 = vmatmul.mubr.f32.gmra.mxu1 %v837_v34 }
  0xc2   : > { %2468 = vmatmul.mubr.f32.gmra.mxu0 %v3265_v17  ;;  %2482 = vmatprep.mubr.f32.mxu1 %v852_v50 }
  0xc3   : > { %2470 = vmatprep.mubr.f32.mxu0 %v3305_v43 }
  0xc5   : > { %2483 = vmatmul.mubr.f32.gmra.mxu1 %v854_v21 }
  0xc6   : > { %2471 = vmatmul.mubr.f32.gmra.mxu0 %v3329_v63 }
  0xf9   : > { %v2189_v35 = vpop.f32.mrf.mxu1 }
  0xfa   : > { %v2109_v29 = vpop.f32.mrf.mxu0 }
  0xfb   : > { %v2190_v49 = vpop.f32.mrf.mxu1 }
  0xfc   : > { %v2110_v41 = vpop.f32.mrf.mxu0  ;;  %v2191_v44 = vadd.f32 %v2190_v49, %v2189_v35 }
  0xfd   : > { %v2111_v45 = vadd.f32 %v2110_v41, %v2109_v29  ;;  %v2192_v17 = vpop.f32.mrf.mxu1 }
  0xfe   : > { %v2112_v52 = vpop.f32.mrf.mxu0 }
  0xff   : > { %v1075_v53 = vadd.f32 %v2111_v45, %v3584_v5  ;;  %v2193_v55 = vpop.f32.mrf.mxu1 }
 0x100   : > { %v2113_v43 = vpop.f32.mrf.mxu0  ;;  %v2194_v56 = vadd.f32 %v2193_v55, %v2192_v17 }
 0x101   : > { %v3587_v59 = vadd.f32 %v2191_v44, %v1075_v53  ;;  %v2114_v63 = vadd.f32 %v2113_v43, %v2112_v52  ;;  %v2195_v61 = vpop.f32.mrf.mxu1 }
 0x102   : > { %v2115_v0 = vpop.f32.mrf.mxu0 }
 0x103   : > { %v1080_v2 = vadd.f32 %v2114_v63, %v3584_v5  ;;  %v2196_v3 = vpop.f32.mrf.mxu1 }
 0x104   : > { %v2116_v7 = vpop.f32.mrf.mxu0  ;;  %v2197_v8 = vadd.f32 %v2196_v3, %v2195_v61 }
 0x105   : > { %v3590_v11 = vadd.f32 %v2194_v56, %v1080_v2  ;;  %v2117_v12 = vadd.f32 %v2116_v7, %v2115_v0  ;;  %v2198_v13 = vpop.f32.mrf.mxu1 }
 0x106   : > { %v2118_v15 = vpop.f32.mrf.mxu0 }
 0x107   : > { %v1085_v20 = vadd.f32 %v2117_v12, %v3584_v5  ;;  %v2199_v23 = vpop.f32.mrf.mxu1 }
 0x108   : > { %v2119_v14 = vpop.f32.mrf.mxu0  ;;  %v2200_v16 = vadd.f32 %v2199_v23, %v2198_v13 }
 0x109   : > { %v3593_v19 = vadd.f32 %v2197_v8, %v1085_v20  ;;  %v2120_v31 = vadd.f32 %v2119_v14, %v2118_v15  ;;  %v2201_v42 = vpop.f32.mrf.mxu1 }
 0x10a   : > { %v2121_v46 = vpop.f32.mrf.mxu0 }
 0x10b   : > { %v1090_v47 = vadd.f32 %v2120_v31, %v3584_v5  ;;  %v2202_v54 = vpop.f32.mrf.mxu1 }
 0x10c   : > { %v2122_v10 = vpop.f32.mrf.mxu0  ;;  %v2203_v27 = vadd.f32 %v2202_v54, %v2201_v42 }
 0x10d   : > { %v3596_v28 = vadd.f32 %v2200_v16, %v1090_v47  ;;  %v2123_v32 = vadd.f32 %v2122_v10, %v2121_v46  ;;  %v2204_v39 = vpop.f32.mrf.mxu1 }
 0x10e   : > { %v2124_v57 = vpop.f32.mrf.mxu0 }
 0x10f   : > { %v1095_v62 = vadd.f32 %v2123_v32, %v3584_v5  ;;  %v2205_v1 = vpop.f32.mrf.mxu1 }
 0x110   : > { %v2125_v58 = vpop.f32.mrf.mxu0  ;;  %v2206_v30 = vadd.f32 %v2205_v1, %v2204_v39 }
 0x111   : > { %v3599_v33 = vadd.f32 %v2203_v27, %v1095_v62  ;;  %v2126_v38 = vadd.f32 %v2125_v58, %v2124_v57  ;;  %v2207_v48 = vpop.f32.mrf.mxu1 }
 0x112   : > { %v2127_v4 = vpop.f32.mrf.mxu0 }
 0x113   : > { %v1100_v6 = vadd.f32 %v2126_v38, %v3584_v5  ;;  %v2208_v9 = vpop.f32.mrf.mxu1 }
 0x114   : > { %v2128_v18 = vpop.f32.mrf.mxu0  ;;  %v2209_v22 = vadd.f32 %v2208_v9, %v2207_v48 }
 0x115   : > { %v3602_v51 = vadd.f32 %v2206_v30, %v1100_v6  ;;  %v2129_v24 = vadd.f32 %v2128_v18, %v2127_v4  ;;  %v2210_v25 = vpop.f32.mrf.mxu1 }
 0x116   : > { %v2130_v26 = vpop.f32.mrf.mxu0 }
 0x117   : > { %3798 = vst [vmem:[#allocation5_spill] sm:$0xff] %v3602_v51  ;;  %v1105_v34 = vadd.f32 %v2129_v24, %v3584_v5  ;;  %v2211_v36 = vpop.f32.mrf.mxu1 }
 0x118   : > { %v2131_v37 = vpop.f32.mrf.mxu0  ;;  %v2212_v40 = vadd.f32 %v2211_v36, %v2210_v25 }
 0x119   : > { %v3605_v60 = vadd.f32 %v2209_v22, %v1105_v34  ;;  %v2132_v50 = vadd.f32 %v2131_v37, %v2130_v26  ;;  %v2213_v21 = vpop.f32.mrf.mxu1 }
 0x11a   : > { %v2133_v35 = vpop.f32.mrf.mxu0 }
 0x11b   : > { %3799 = vst [vmem:[#allocation6_spill] sm:$0xff] %v3605_v60  ;;  %v1110_v29 = vadd.f32 %v2132_v50, %v3584_v5  ;;  %v2214_v49 = vpop.f32.mrf.mxu1 }
 0x11c   : > { %v2134_v41 = vpop.f32.mrf.mxu0  ;;  %v2215_v44 = vadd.f32 %v2214_v49, %v2213_v21 }
 0x11d   : > { %v3608_v45 = vadd.f32 %v2212_v40, %v1110_v29  ;;  %v2135_v17 = vadd.f32 %v2134_v41, %v2133_v35  ;;  %v2216_v52 = vpop.f32.mrf.mxu1 }
 0x11e   : > { %v2136_v53 = vpop.f32.mrf.mxu0 }
 0x11f   : > { %3800 = vst [vmem:[#allocation7_spill] sm:$0xff] %v3608_v45  ;;  %v1115_v55 = vadd.f32 %v2135_v17, %v3584_v5  ;;  %v2217_v43 = vpop.f32.mrf.mxu1 }
 0x120   : > { %v2137_v56 = vpop.f32.mrf.mxu0  ;;  %v2218_v63 = vadd.f32 %v2217_v43, %v2216_v52 }
 0x121   : > { %v3611_v61 = vadd.f32 %v2215_v44, %v1115_v55  ;;  %v2138_v0 = vadd.f32 %v2137_v56, %v2136_v53  ;;  %v2219_v2 = vpop.f32.mrf.mxu1 }
 0x122   : > { %v2139_v3 = vpop.f32.mrf.mxu0 }
 0x123   : > { %v1120_v7 = vadd.f32 %v2138_v0, %v3584_v5  ;;  %v2220_v8 = vpop.f32.mrf.mxu1 }
 0x124   : > { %v2140_v12 = vpop.f32.mrf.mxu0  ;;  %v2221_v13 = vadd.f32 %v2220_v8, %v2219_v2 }
 0x125   : > { %v3614_v15 = vadd.f32 %v2218_v63, %v1120_v7  ;;  %v2141_v20 = vadd.f32 %v2140_v12, %v2139_v3  ;;  %v2222_v23 = vpop.f32.mrf.mxu1 }
 0x126   : > { %v2142_v14 = vpop.f32.mrf.mxu0 }
 0x127   : > { %v1125_v16 = vadd.f32 %v2141_v20, %v3584_v5  ;;  %v2223_v31 = vpop.f32.mrf.mxu1 }
 0x128   : > { %v2143_v42 = vpop.f32.mrf.mxu0  ;;  %v2224_v46 = vadd.f32 %v2223_v31, %v2222_v23 }
 0x129   : > { %v3617_v47 = vadd.f32 %v2221_v13, %v1125_v16  ;;  %v2144_v54 = vadd.f32 %v2143_v42, %v2142_v14  ;;  %v2225_v10 = vpop.f32.mrf.mxu1 }
 0x12a   : > { %v2145_v27 = vpop.f32.mrf.mxu0 }
 0x12b   : > { %3801 = vst [vmem:[#allocation8_spill] sm:$0xff] %v3617_v47  ;;  %v1130_v32 = vadd.f32 %v2144_v54, %v3584_v5  ;;  %v2226_v39 = vpop.f32.mrf.mxu1 }
 0x12c   : > { %v2146_v57 = vpop.f32.mrf.mxu0  ;;  %v2227_v62 = vadd.f32 %v2226_v39, %v2225_v10 }
 0x12d   : > { %v3620_v1 = vadd.f32 %v2224_v46, %v1130_v32  ;;  %v2147_v58 = vadd.f32 %v2146_v57, %v2145_v27  ;;  %v2228_v30 = vpop.f32.mrf.mxu1 }
 0x12e   : > { %v2148_v38 = vpop.f32.mrf.mxu0 }
 0x12f   : > { %v1135_v48 = vadd.f32 %v2147_v58, %v3584_v5  ;;  %v2229_v4 = vpop.f32.mrf.mxu1 }
 0x130   : > { %v2149_v6 = vpop.f32.mrf.mxu0  ;;  %v2230_v9 = vadd.f32 %v2229_v4, %v2228_v30 }
 0x131   : > { %v3623_v18 = vadd.f32 %v2227_v62, %v1135_v48  ;;  %v2150_v22 = vadd.f32 %v2149_v6, %v2148_v38  ;;  %v2231_v24 = vpop.f32.mrf.mxu1 }
 0x132   : > { %v2151_v25 = vpop.f32.mrf.mxu0 }
 0x133   : > { %3802 = vst [vmem:[#allocation9_spill] sm:$0xff] %v3623_v18  ;;  %v1140_v26 = vadd.f32 %v2150_v22, %v3584_v5  ;;  %v2232_v34 = vpop.f32.mrf.mxu1 }
 0x134   : > { %v2152_v36 = vpop.f32.mrf.mxu0  ;;  %v2233_v37 = vadd.f32 %v2232_v34, %v2231_v24 }
 0x135   : > { %v3626_v40 = vadd.f32 %v2230_v9, %v1140_v26  ;;  %v2153_v50 = vadd.f32 %v2152_v36, %v2151_v25  ;;  %v2234_v21 = vpop.f32.mrf.mxu1 }
 0x136   : > { %v2154_v35 = vpop.f32.mrf.mxu0 }
 0x137   : > { %3803 = vst [vmem:[#allocation10_spill] sm:$0xff] %v3626_v40  ;;  %v1145_v29 = vadd.f32 %v2153_v50, %v3584_v5  ;;  %v2235_v49 = vpop.f32.mrf.mxu1 }
 0x138   : > { %v2155_v41 = vpop.f32.mrf.mxu0  ;;  %v2236_v44 = vadd.f32 %v2235_v49, %v2234_v21 }
 0x139   : > { %v3629_v17 = vadd.f32 %v2233_v37, %v1145_v29  ;;  %v2156_v52 = vadd.f32 %v2155_v41, %v2154_v35  ;;  %v3631_v53 = vpop.f32.mrf.mxu1 }
 0x13a   : > { %v2269_v55 = vpop.f32.mrf.mxu0 }
 0x13b   : > { %3804 = vst [vmem:[#allocation11_spill] sm:$0xff] %v3629_v17  ;;  %v1150_v43 = vadd.f32 %v2156_v52, %v3584_v5  ;;  %v2350_v56 = vpop.f32.mrf.mxu1 }
 0x13c   : > { %v2270_v63 = vpop.f32.mrf.mxu0 }
 0x13d   : > { %v3634_v0 = vadd.f32 %v2236_v44, %v1150_v43  ;;  %v2352_v2 = vpop.f32.mrf.mxu1 }
 0x13e   : > { %v2272_v3 = vpop.f32.mrf.mxu0 }
 0x13f   : > { %3805 = vst [vmem:[#allocation12_spill] sm:$0xff] %v3634_v0  ;;  %v2353_v7 = vpop.f32.mrf.mxu1 }
 0x140   : > { %v2273_v8 = vpop.f32.mrf.mxu0 }
 0x141   : > { %v2355_v12 = vpop.f32.mrf.mxu1  ;;  %v2274_v45 = vadd.f32 %v2273_v8, %v2272_v3 }
 0x142   : > { %v2275_v13 = vpop.f32.mrf.mxu0 }
 0x143   : > { %v2356_v20 = vpop.f32.mrf.mxu1 }
 0x144   : > { %v2276_v23 = vpop.f32.mrf.mxu0 }
 0x145   : > { %v2358_v14 = vpop.f32.mrf.mxu1 }
 0x146   : > { %v2278_v16 = vpop.f32.mrf.mxu0 }
 0x147   : > { %v2359_v31 = vpop.f32.mrf.mxu1 }
 0x148   : > { %v2279_v42 = vpop.f32.mrf.mxu0  ;;  %v2360_v3 = vadd.f32 %v2359_v31, %v2358_v14 }
 0x149   : > { %v3636_v46 = vpop.f32.mrf.mxu1 }
 0x14a   : > { %v2281_v54 = vpop.f32.mrf.mxu0 }
 0x14b   : > { %v3638_v5 = vpop.f32.mrf.mxu1 }
 0x14c   : > { %v2282_v10 = vpop.f32.mrf.mxu0 }
 0x14d   : > { %v3640_v27 = vpop.f32.mrf.mxu1 }
 0x14e   : > { %3806 = vst [vmem:[#allocation13_spill] sm:$0xff] %v3640_v27  ;;  %v2284_v32 = vpop.f32.mrf.mxu0 }
 0x14f   : > { %v3642_v39 = vpop.f32.mrf.mxu1 }
 0x150   : > { %3807 = vst [vmem:[#allocation14_spill] sm:$0xff] %v3642_v39  ;;  %v2285_v57 = vpop.f32.mrf.mxu0  ;;  %v2354_v39 = vadd.f32 %v2353_v7, %v2352_v2 }
 0x151   : > { %v3644_v62 = vpop.f32.mrf.mxu1 }
 0x152   : > { %3808 = vst [vmem:[#allocation15_spill] sm:$0xff] %v3644_v62  ;;  %v3646_v58 = vpop.f32.mrf.mxu0 }
 0x153   : > { %3809 = vst [vmem:[#allocation16_spill] sm:$0xff] %v3646_v58  ;;  %v3648_v30 = vpop.f32.mrf.mxu1 }
 0x154   : > { %3810 = vst [vmem:[#allocation17_spill] sm:$0xff] %v3648_v30  ;;  %v3650_v38 = vpop.f32.mrf.mxu0  ;;  %v2277_v30 = vadd.f32 %v2276_v23, %v2275_v13 }
 0x155   : > { %3811 = vst [vmem:[#allocation18_spill] sm:$0xff] %v3650_v38  ;;  %v3652_v48 = vpop.f32.mrf.mxu1  ;;  %v2280_v38 = vadd.f32 %v2279_v42, %v2278_v16  ;;  %v2283_v16 = vadd.f32 %v2282_v10, %v2281_v54 }
 0x156   : > { %3812 = vst [vmem:[#allocation19_spill] sm:$0xff] %v3652_v48  ;;  %v3654_v4 = vpop.f32.mrf.mxu0 }
 0x157   : > { %3813 = vst [vmem:[#allocation20_spill] sm:$0xff] %v3654_v4  ;;  %v3656_v6 = vpop.f32.mrf.mxu1  ;;  %v1380_v23 = vadd.f32 %v2280_v38, %v3596_v28  ;;  %v3681_v54 = vadd.f32 %v2283_v16, %v3599_v33 }
 0x158   : > { %3814 = vst [vmem:[#allocation21_spill] sm:$0xff] %v3656_v6  ;;  %v3658_v9 = vpop.f32.mrf.mxu0  ;;  %v2271_v6 = vadd.f32 %v2270_v63, %v2269_v55  ;;  %v1375_v55 = vadd.f32 %v2277_v30, %v3593_v19  ;;  %v2357_v63 = vadd.f32 %v2356_v20, %v2355_v12  ;;  %v3677_v20 = vadd.f32 %v3638_v5, %v3636_v46 }
 0x159   : > { %3815 = vst [vmem:[#allocation22_spill] sm:$0xff] %v3658_v9  ;;  %v2373_v22 = vpop.f32.mrf.mxu1  ;;  %v2351_v9 = vadd.f32 %v2350_v56, %v3631_v53 }
 0x15a   : > { %v2293_v24 = vpop.f32.mrf.mxu0  ;;  %v1365_v47 = vadd.f32 %v2271_v6, %v3587_v59  ;;  %v1520_v31 = vadd.f32 %v2357_v63, %v1375_v55 }
 0x15b   : > { %v2374_v25 = vpop.f32.mrf.mxu1 }
 0x15c   : > { %v2294_v26 = vpop.f32.mrf.mxu0  ;;  %v2375_v19 = vadd.f32 %v2374_v25, %v2373_v22  ;;  %v3825_v25 = vld [vmem:[#allocation16_spill] sm:$0xff] }
 0x15d   : > { %v2376_v34 = vpop.f32.mrf.mxu1  ;;  %v3831_v63 = vld [vmem:[#allocation19_spill] sm:$0xff] }
 0x15e   : > { %v2296_v36 = vpop.f32.mrf.mxu0 }
 0x15f   : > { %v2377_v37 = vpop.f32.mrf.mxu1 }
 0x160   : > { %v2297_v50 = vpop.f32.mrf.mxu0  ;;  %v2378_v53 = vadd.f32 %v2377_v37, %v2376_v34  ;;  %v3822_v46 = vld [vmem:[#allocation22_spill] sm:$0xff]  ;;  %v3828_v37 = vld [vmem:[#allocation17_spill] sm:$0xff] }
 0x161   : > { %v2379_v21 = vpop.f32.mrf.mxu1  ;;  %v2298_v58 = vadd.f32 %v2297_v50, %v2296_v36  ;;  %v3827_v36 = vld [vmem:[#allocation15_spill] sm:$0xff] }
 0x162   : > { %v2299_v35 = vpop.f32.mrf.mxu0  ;;  %v3702_v50 = vadd.f32 %v3828_v37, %v3827_v36 }
 0x163   : > { %v2380_v29 = vpop.f32.mrf.mxu1  ;;  %v1410_v59 = vadd.f32 %v2298_v58, %v3614_v15 }
 0x164   : > { %v2300_v49 = vpop.f32.mrf.mxu0  ;;  %v2381_v33 = vadd.f32 %v2380_v29, %v2379_v21  ;;  %v3829_v21 = vld [vmem:[#allocation10_spill] sm:$0xff] }
 0x165   : > { %v2382_v41 = vpop.f32.mrf.mxu1  ;;  %v2301_v42 = vadd.f32 %v2300_v49, %v2299_v35 }
 0x166   : > { %v2302_v44 = vpop.f32.mrf.mxu0 }
 0x167   : > { %v2383_v52 = vpop.f32.mrf.mxu1 }
 0x168   : > { %v2303_v43 = vpop.f32.mrf.mxu0  ;;  %v2384_v14 = vadd.f32 %v2383_v52, %v2382_v41 }
 0x169   : > { %v3660_v17 = vpop.f32.mrf.mxu1  ;;  %v2304_v8 = vadd.f32 %v2303_v43, %v2302_v44  ;;  %v3830_v43 = vld [vmem:[#allocation7_spill] sm:$0xff] }
 0x16a   : > { %3816 = vst [vmem:[#allocation23_spill] sm:$0xff] %v3660_v17  ;;  %v2305_v60 = vpop.f32.mrf.mxu0  ;;  %v1370_v17 = vadd.f32 %v2274_v45, %v3590_v11  ;;  %v1510_v11 = vadd.f32 %v2351_v9, %v1365_v47  ;;  %v2286_v45 = vadd.f32 %v2285_v57, %v2284_v32  ;;  %v1555_v32 = vadd.f32 %v2378_v53, %v1410_v59  ;;  %v3833_v53 = vld [vmem:[#allocation9_spill] sm:$0xff] }
 0x16b   : > { %v3662_v0 = vpop.f32.mrf.mxu1  ;;  %v1420_v28 = vadd.f32 %v2304_v8, %v3620_v1  ;;  %v1525_v57 = vadd.f32 %v2360_v3, %v1380_v23  ;;  %v3821_v1 = vld [vmem:[#allocation20_spill] sm:$0xff]  ;;  %v3832_v3 = vld [vmem:[#allocation21_spill] sm:$0xff] }
 0x16c   : > { %3817 = vst [vmem:[#allocation24_spill] sm:$0xff] %v3662_v0  ;;  %v2306_v18 = vpop.f32.mrf.mxu0  ;;  %v2295_v0 = vadd.f32 %v2294_v26, %v2293_v24  ;;  %v1515_v12 = vadd.f32 %v2354_v39, %v1370_v17  ;;  %v3820_v17 = vld [vmem:[#allocation14_spill] sm:$0xff]  ;;  %v2292_v5 = vadd.f32 %v3822_v46, %v3821_v1  ;;  %v3823_v39 = vld [vmem:[#allocation8_spill] sm:$0xff]  ;;  %v2372_v8 = vadd.f32 %v3832_v3, %v3831_v63 }
 0x16d   : > { %v2388_v48 = vpop.f32.mrf.mxu1  ;;  %v1415_v58 = vadd.f32 %v2301_v42, %v3823_v39  ;;  %v2307_v38 = vadd.f32 %v2306_v18, %v2305_v60  ;;  %v3826_v26 = vld [vmem:[#allocation18_spill] sm:$0xff]  ;;  %v1565_v41 = vadd.f32 %v2384_v14, %v1420_v28 }
 0x16e   : > { %v2308_v40 = vpop.f32.mrf.mxu0  ;;  %v1405_v2 = vadd.f32 %v2295_v0, %v3611_v61  ;;  %v3819_v61 = vld [vmem:[#allocation13_spill] sm:$0xff]  ;;  %v2289_v34 = vadd.f32 %v3826_v26, %v3825_v25  ;;  %v1400_v55 = vadd.f32 %v2292_v5, %v3830_v43  ;;  %v3837_v1 = vld [vmem:[#allocation6_spill] sm:$0xff] }
 0x16f   : > { %v2389_v62 = vpop.f32.mrf.mxu1  ;;  %v2366_v0 = vadd.f32 %v3820_v17, %v3819_v61  ;;  %v1560_v59 = vadd.f32 %v2381_v33, %v1415_v58  ;;  %v1425_v42 = vadd.f32 %v2307_v38, %v3833_v53  ;;  %v3838_v33 = vld [vmem:[#allocation11_spill] sm:$0xff] }
 0x170   : > { %v2309_v51 = vpop.f32.mrf.mxu0  ;;  %v1550_v24 = vadd.f32 %v2375_v19, %v1405_v2  ;;  %v2390_v44 = vadd.f32 %v2389_v62, %v2388_v48  ;;  %v1395_v46 = vadd.f32 %v2289_v34, %v3837_v1  ;;  %v1545_v34 = vadd.f32 %v2372_v8, %v1400_v55 }
 0x171   : > { %v3666_v4 = vpop.f32.mrf.mxu1  ;;  %v2310_v47 = vadd.f32 %v2309_v51, %v2308_v40  ;;  %v3824_v40 = vld [vmem:[#allocation5_spill] sm:$0xff]  ;;  %v3834_v62 = vld [vmem:[#allocation23_spill] sm:$0xff] }
 0x172   : > { %v2311_v27 = vpop.f32.mrf.mxu0  ;;  %v1390_v30 = vadd.f32 %v2286_v45, %v3824_v40 }
 0x173   : > { %v3670_v13 = vpop.f32.mrf.mxu1  ;;  %v1430_v29 = vadd.f32 %v2310_v47, %v3829_v21  ;;  %v3835_v48 = vld [vmem:[#allocation24_spill] sm:$0xff] }
 0x174   : > { %v2312_v56 = vpop.f32.mrf.mxu0  ;;  %v2387_v45 = vadd.f32 %v3835_v48, %v3834_v62  ;;  %v1535_v58 = vadd.f32 %v2366_v0, %v1390_v30 }
 0x175   : > { %v2394_v6 = vpop.f32.mrf.mxu1  ;;  %v2313_v2 = vadd.f32 %v2312_v56, %v2311_v27  ;;  %v1575_v56 = vadd.f32 %v2390_v44, %v1430_v29 }
 0x176   : > { %v2314_v7 = vpop.f32.mrf.mxu0  ;;  %v1570_v38 = vadd.f32 %v2387_v45, %v1425_v42 }
 0x177   : > { %v2395_v15 = vpop.f32.mrf.mxu1 }
 0x178   : > { %v2315_v10 = vpop.f32.mrf.mxu0  ;;  %v2396_v61 = vadd.f32 %v2395_v15, %v2394_v6  ;;  %v2393_v6 = vadd.f32 %v3670_v13, %v3666_v4 }
 0x179   : > { %v2475_v51 = vpop.f32.mrf.mxu1  ;;  %v2316_v60 = vadd.f32 %v2315_v10, %v2314_v7  ;;  %v3836_v10 = vld [vmem:[#allocation12_spill] sm:$0xff] }
 0x17a   : > { %v2463_v9 = vpop.f32.mrf.mxu0  ;;  %v3696_v22 = vadd.f32 %v2475_v51, %v1555_v32  ;;  %v1435_v51 = vadd.f32 %v2313_v2, %v3838_v33 }
 0x17b   : > { %v1660_v35 = vadd.f32 %v2463_v9, %v1515_v12  ;;  %v1694_v49 = vpop.f32.mrf.mxu1  ;;  %v1440_v32 = vadd.f32 %v2316_v60, %v3836_v10 }
 0x17c   : > { %1802 = vst [vmem:[%s3688_s26 + $0x48] sm:$0xff] %v3696_v22  ;;  %v1654_v18 = vpop.f32.mrf.mxu0  ;;  %v3707_v52 = vadd.f32 %v1694_v49, %v1550_v24 }
 0x17d   : > { %1794 = vst [vmem:[%s3688_s26 + $0x8] sm:$0xff] %v1660_v35  ;;  %v1655_v23 = vadd.f32 %v1654_v18, %v1510_v11  ;;  %v2478_v16 = vpop.f32.mrf.mxu1  ;;  %v1756_v12 = vmul.f32 %v1660_v35, %v1660_v35  ;;  %v1585_v4 = vadd.f32 %v2396_v61, %v1440_v32 }
 0x17e   : > { %1801 = vst [vmem:[%s3688_s26 + $0x40] sm:$0xff] %v3707_v52  ;;  %v2466_v19 = vpop.f32.mrf.mxu0  ;;  %v3718_v7 = vadd.f32 %v2478_v16, %v1565_v41  ;;  %v1763_v45 = vmul.f32 %v3707_v52, %v3707_v52 }
 0x17f   : > { %v1733_v28 = vadd.f32 %v1660_v35, %v1655_v23  ;;  %v1755_v14 = vmul.f32 %v1655_v23, %v1655_v23  ;;  %1793 = vst [vmem:[%s3688_s26] sm:$0xff] %v1655_v23  ;;  %v1670_v11 = vadd.f32 %v2466_v19, %v1525_v57  ;;  %v1704_v47 = vpop.f32.mrf.mxu1 }
 0x180   : > { %1804 = vst [vmem:[%s3688_s26 + $0x58] sm:$0xff] %v3718_v7  ;;  %v1664_v17 = vpop.f32.mrf.mxu0  ;;  %v3724_v27 = vadd.f32 %v1704_v47, %v1560_v59  ;;  %v1766_v32 = vmul.f32 %v3718_v7, %v3718_v7 }
 0x181   : > { %v1771_v5 = vadd.f32 %v1756_v12, %v1755_v14  ;;  %1796 = vst [vmem:[%s3688_s26 + $0x18] sm:$0xff] %v1670_v11  ;;  %v1665_v39 = vadd.f32 %v1664_v17, %v1520_v31  ;;  %v2481_v57 = vpop.f32.mrf.mxu1  ;;  %v1530_v31 = vadd.f32 %v3677_v20, %v3681_v54  ;;  %v1758_v13 = vmul.f32 %v1670_v11, %v1670_v11 }
 0x182   : > { %1803 = vst [vmem:[%s3688_s26 + $0x50] sm:$0xff] %v3724_v27  ;;  %v2469_v15 = vpop.f32.mrf.mxu0  ;;  %v1720_v40 = vadd.f32 %v2481_v57, %v1575_v56  ;;  %v1540_v20 = vadd.f32 %v3702_v50, %v1395_v46  ;;  %v1580_v54 = vadd.f32 %v2393_v6, %v1435_v51  ;;  %v1764_v12 = vmul.f32 %v3696_v22, %v3696_v22 }
 0x183   : > { %v1734_v9 = vadd.f32 %v1733_v28, %v1665_v39  ;;  %v1757_v24 = vmul.f32 %v1665_v39, %v1665_v39  ;;  %1795 = vst [vmem:[%s3688_s26 + $0x10] sm:$0xff] %v1665_v39  ;;  %v1680_v25 = vadd.f32 %v2469_v15, %v1535_v58  ;;  %v1714_v0 = vpop.f32.mrf.mxu1 }
 0x184   : > { %1806 = vst [vmem:[%s3688_s26 + $0x68] sm:$0xff] %v1720_v40  ;;  %v1674_v30 = vpop.f32.mrf.mxu0  ;;  %v1715_v26 = vadd.f32 %v1714_v0, %v1570_v38 }
 0x185   : > { %v1772_v36 = vadd.f32 %v1771_v5, %v1757_v24  ;;  %1798 = vst [vmem:[%s3688_s26 + $0x28] sm:$0xff] %v1680_v25  ;;  %v1675_v37 = vadd.f32 %v1674_v30, %v1530_v31  ;;  %v1735_v35 = vadd.f32 %v1734_v9, %v1670_v11  ;;  %v2484_v49 = vpop.f32.mrf.mxu1  ;;  %v1760_v3 = vmul.f32 %v1680_v25, %v1680_v25 }
 0x186   : > { %1805 = vst [vmem:[%s3688_s26 + $0x60] sm:$0xff] %v1715_v26  ;;  %v2472_v41 = vpop.f32.mrf.mxu0  ;;  %v1730_v21 = vadd.f32 %v2484_v49, %v1585_v4  ;;  %v1765_v11 = vmul.f32 %v3724_v27, %v3724_v27  ;;  %v1767_v17 = vmul.f32 %v1715_v26, %v1715_v26 }
 0x187   : > { %v1736_v29 = vadd.f32 %v1735_v35, %v1675_v37  ;;  %v1759_v44 = vmul.f32 %v1675_v37, %v1675_v37  ;;  %v1773_v60 = vadd.f32 %v1772_v36, %v1758_v13  ;;  %1797 = vst [vmem:[%s3688_s26 + $0x20] sm:$0xff] %v1675_v37  ;;  %v1690_v18 = vadd.f32 %v2472_v41, %v1545_v34  ;;  %v1724_v43 = vpop.f32.mrf.mxu1 }
 0x188   : > { %1808 = vst [vmem:[%s3688_s26 + $0x78] sm:$0xff] %v1730_v21  ;;  %v1684_v55 = vpop.f32.mrf.mxu0  ;;  %v1725_v63 = vadd.f32 %v1724_v43, %v1580_v54  ;;  %v1770_v33 = vmul.f32 %v1730_v21, %v1730_v21 }
 0x189   : > { %v1774_v8 = vadd.f32 %v1773_v60, %v1759_v44  ;;  %1800 = vst [vmem:[%s3688_s26 + $0x38] sm:$0xff] %v1690_v18  ;;  %v1685_v23 = vadd.f32 %v1684_v55, %v1540_v20  ;;  %v1737_v16 = vadd.f32 %v1736_v29, %v1680_v25  ;;  %v1762_v42 = vmul.f32 %v1690_v18, %v1690_v18 }
 0x18a   : > { %1807 = vst [vmem:[%s3688_s26 + $0x70] sm:$0xff] %v1725_v63  ;;  %v1769_v58 = vmul.f32 %v1725_v63, %v1725_v63 }
 0x18b   : > { %v1738_v59 = vadd.f32 %v1737_v16, %v1685_v23  ;;  %v1761_v50 = vmul.f32 %v1685_v23, %v1685_v23  ;;  %v1775_v53 = vadd.f32 %v1774_v8, %v1760_v3  ;;  %1799 = vst [vmem:[%s3688_s26 + $0x30] sm:$0xff] %v1685_v23 }
 0x18d   : > { %v1739_v62 = vadd.f32 %v1738_v59, %v1690_v18  ;;  %v1776_v48 = vadd.f32 %v1775_v53, %v1761_v50 }
 0x18f   : > { %v1740_v2 = vadd.f32 %v1739_v62, %v3707_v52  ;;  %v1777_v19 = vadd.f32 %v1776_v48, %v1762_v42 }
 0x191   : > { %v1741_v28 = vadd.f32 %v1740_v2, %v3696_v22  ;;  %v1778_v14 = vadd.f32 %v1777_v19, %v1763_v45  ;;  %v1768_v22 = vmul.f32 %v1720_v40, %v1720_v40 }
 0x193   : > { %v1779_v47 = vadd.f32 %v1778_v14, %v1764_v12  ;;  %v1742_v10 = vadd.f32 %v1741_v28, %v3724_v27 }
 0x195   : > { %v1743_v61 = vadd.f32 %v1742_v10, %v3718_v7  ;;  %v1780_v52 = vadd.f32 %v1779_v47, %v1765_v11 }
 0x197   : > { %v1744_v56 = vadd.f32 %v1743_v61, %v1715_v26  ;;  %v1781_v1 = vadd.f32 %v1780_v52, %v1766_v32 }
 0x199   : > { %v1745_v46 = vadd.f32 %v1744_v56, %v1720_v40  ;;  %v1782_v5 = vadd.f32 %v1781_v1, %v1767_v17 }
 0x19b   : > { %v1746_v39 = vadd.f32 %v1745_v46, %v1725_v63  ;;  %v1783_v57 = vadd.f32 %v1782_v5, %v1768_v22 }
 0x19d   : > { %v1747_v27 = vadd.f32 %v1746_v39, %v1730_v21  ;;  %v1784_v51 = vadd.f32 %v1783_v57, %v1769_v58 }
 0x19f   : > { %v1748_v6 = vrot.slane %v1747_v27, 4  ;;  %v1785_v15 = vadd.f32 %v1784_v51, %v1770_v33 }
 0x1a1   : > { %v1749_v7 = vadd.f32 %v1748_v6, %v1747_v27  ;;  %v1786_v38 = vrot.slane %v1785_v15, 4 }
 0x1a3   : > { %v1750_v9 = vrot.slane %v1749_v7, 2  ;;  %v1787_v24 = vadd.f32 %v1786_v38, %v1785_v15 }
 0x1a5   : > { %v1751_v25 = vadd.f32 %v1750_v9, %v1749_v7  ;;  %v1788_v31 = vrot.slane %v1787_v24, 2 }
 0x1a7   : > { %v1752_v40 = vrot.slane %v1751_v25, 1  ;;  %v1789_v0 = vadd.f32 %v1788_v31, %v1787_v24 }
 0x1a9   : > { %v1753_v30 = vadd.f32 %v1752_v40, %v1751_v25  ;;  %v1790_v26 = vrot.slane %v1789_v0, 1 }
 0x1ab   : > { %1754 = vst [vmem:[%s503_s20] sm:$0x1] %v1753_v30  ;;  %v1791_v34 = vadd.f32 %v1790_v26, %v1789_v0 }
 0x1ad   : > { %1792 = vst [vmem:[%s510_s21] sm:$0x1] %v1791_v34 }
 0x1ae PF: > { %s19_s9 = sadd.s32 1, %s2596_s9   ;;  %s3839_s13 = sld [smem:[#allocation3_spill]] }
 0x1af   : > { %p16_p13 = scmp.ge.s32.totalorder %s19_s9, 6   ;;  %s3840_s12 = sld [smem:[#allocation4_spill]] }
 0x1b0   : > { %s3841_s27 = smov %s2588_s29  ;;  %s3842_s28 = smov %s2592_s30 }
 0x1b1   :  { %18 = sbr.rel (!%p16_p13) target bundleno = 3 (0x3), region = 106 }
 0x1b4   : > { %s3843_s29 = smov %s3839_s13 }
 0x1b5   : > { %s3844_s30 = smov %s3840_s12 }

</bundles_post_ra>
